<compile_context>
chip_gen: v7x
topology: tpu7x:2x2x1
jax: 0.10.0
libtpu: 0.0.40
codegen_flags: <defaults>
</compile_context>

<pallas_src>
import functools

import numpy as np
import jax
import jax.numpy as jnp
from jax.experimental import pallas as pl
from jax.experimental.pallas import tpu as pltpu

NEG_SLOPE = 0.01  # F.leaky_relu default negative_slope


def _tree_sum(parts):
    """Balanced pairwise sum (keeps dot results independent, no serial chain)."""
    parts = list(parts)
    while len(parts) > 1:
        nxt = [a + b for a, b in zip(parts[0::2], parts[1::2])]
        if len(parts) % 2:
            nxt.append(parts[-1])
        parts = nxt
    return parts[0]


# ---------------------------------------------------------------------------
# Fused kernel.
# ---------------------------------------------------------------------------
def _actor_kernel(x1_ref, x2_ref, w1_ref, b1_ref, w2_ref, b2_ref,
                  wconv_ref, bconv_ref, cmask_ref, pool_ref,
                  w3_hbm_ref, b3_ref, w4_hbm_ref, b4_ref,
                  whead_ref, bhead_ref,
                  out_ref,
                  w3_vmem, w4_vmem, dma_sem,
                  *, action_std_init, width, num_pool, act_dim):
    f32 = jnp.float32

    # ---- start the big weight DMAs first so they overlap branch-1 + conv work ----
    w3_copy = pltpu.make_async_copy(w3_hbm_ref, w3_vmem, dma_sem.at[0])
    w4_copy = pltpu.make_async_copy(w4_hbm_ref, w4_vmem, dma_sem.at[1])
    w3_copy.start()
    w4_copy.start()

    def leaky_relu(v):
        return jnp.where(v >= 0, v, NEG_SLOPE * v)

    # ---- branch 1: x1 -> fc1 -> leaky_relu -> fc2 -> leaky_relu ------- (1, 16) ----
    h1 = leaky_relu(jnp.dot(x1_ref[...], w1_ref[...],
                            preferred_element_type=f32) + b1_ref[...])
    h1 = leaky_relu(jnp.dot(h1, w2_ref[...],
                            preferred_element_type=f32) + b2_ref[...])

    # ---- branch 2 (batch row 0 only): 3x3 conv, padding=1, in-kernel -------------
    # x0: (3, H*W) with flat spatial index f = i*W + j.  Each kernel tap (kh, kw) is a
    # lane roll by -(di*W + dj) plus a constant validity mask (zero padding), followed
    # by a VPU channel contraction (8,1)*(1,HW) broadcast-FMAs.  Taps are tree-summed.
    x0 = x2_ref[0]                                    # (3, H*W) f32
    hw = x0.shape[-1]
    tap_parts = []
    for kh in range(3):
        for kw in range(3):
            di, dj = kh - 1, kw - 1
            off = di * width + dj
            t = kh * 3 + kw
            if off == 0:
                xs = x0                               # centre tap: no shift, no mask
            else:
                xs = pltpu.roll(x0, shift=(-off) % hw, axis=1)
                xs = xs * cmask_ref[t:t + 1, :]       # zero out padded-border taps
            part = (wconv_ref[:, 3 * t:3 * t + 1] * xs[0:1, :]
                    + wconv_ref[:, 3 * t + 1:3 * t + 2] * xs[1:2, :]
                    + wconv_ref[:, 3 * t + 2:3 * t + 3] * xs[2:3, :])
            tap_parts.append(part)                    # (8, H*W)
    conv = _tree_sum(tap_parts) + bconv_ref[...]      # (8, H*W)
    yr = jnp.maximum(conv, 0.0)                       # ReLU before pooling

    # ---- ReLU'd conv -> 2x2 avg pool as one constant matmul ----------- (8, NP) ----
    # pool_ref columns are ordered h2*W2 + w2, so `pooled` is already in NCHW order.
    pooled = jnp.dot(yr, pool_ref[...], preferred_element_type=f32)

    # ---- fc3 + ReLU: 8 independent per-channel dots, balanced tree sum ------------
    w3_copy.wait()
    pooled_bf = pooled.astype(w3_vmem.dtype)          # single bf16 cast
    fc3_parts = [
        jnp.dot(pooled_bf[c:c + 1, :],
                w3_vmem[c * num_pool:(c + 1) * num_pool, :],
                preferred_element_type=f32)
        for c in range(8)
    ]
    h3 = jnp.maximum(_tree_sum(fc3_parts) + b3_ref[...], 0.0)          # (1, 1024)

    # ---- fc4 + ReLU --------------------------------------------------- (1, 48) ----
    w4_copy.wait()
    h4 = jnp.maximum(jnp.dot(h3.astype(w4_vmem.dtype), w4_vmem[...],
                             preferred_element_type=f32) + b4_ref[...], 0.0)

    # ---- packed heads on x3 = cat([x1_feat, conv_feat[0]], -1) ------- (1, 2A) ----
    whead = whead_ref[...]                            # (64, 2A) = [mu | sigma] packed
    lin = (jnp.dot(h1, whead[:16, :], preferred_element_type=f32)
           + jnp.dot(h4, whead[16:, :], preferred_element_type=f32)
           + bhead_ref[...])
    mu = lin / (1.0 + jnp.abs(lin))                   # softsign
    sg = action_std_init * jax.nn.sigmoid(lin)
    lane = jax.lax.broadcasted_iota(jnp.int32, lin.shape, 1)
    out_ref[...] = jnp.where(lane < act_dim, mu, sg)  # [mu | sigma]


# ---------------------------------------------------------------------------
# Wrapper (jit this).  Only leaf-input bitcast reshapes happen outside the kernel.
# ---------------------------------------------------------------------------
def actor_forward(params, x1, x2, action_std_init=0.6):
    B, Cin, H, W = x2.shape
    assert Cin == 3 and H % 2 == 0 and W % 2 == 0
    H2, W2 = H // 2, W // 2
    NP = H2 * W2
    A = params["bhead"].shape[-1] // 2

    # Row-major collapses of leaf inputs -> XLA bitcasts (no dependent fusion/launch).
    x1_row = x1.reshape(1, -1).astype(jnp.float32)
    x2_flat = x2.astype(jnp.float32).reshape(B, Cin, H * W)

    inputs = (x1_row, x2_flat,
              params["w1"], params["b1"], params["w2"], params["b2"],
              params["wconv"], params["bconv"], params["cmask"], params["pool"],
              params["w3"], params["b3"], params["w4"], params["b4"],
              params["whead"], params["bhead"])

    vmem = pl.BlockSpec(memory_space=pltpu.MemorySpace.VMEM)
    hbm = pl.BlockSpec(memory_space=pl.ANY)   # manual overlapped DMA in-kernel
    in_specs = [vmem] * len(inputs)
    in_specs[10] = hbm                        # w3
    in_specs[12] = hbm                        # w4

    S0 = x1_row.shape[-1]
    flops = 2 * (S0 * 64 + 64 * 16 + 8 * 27 * H * W + 8 * H * W * NP
                 + 8 * NP * 1024 + 1024 * 48 + 64 * 2 * A)
    bytes_accessed = sum(int(a.size) * a.dtype.itemsize for a in inputs) + 2 * A * 4

    kernel = functools.partial(_actor_kernel,
                               action_std_init=float(action_std_init),
                               width=W, num_pool=NP, act_dim=A)
    out = pl.pallas_call(
        kernel,
        out_shape=jax.ShapeDtypeStruct((1, 2 * A), jnp.float32),
        in_specs=in_specs,
        out_specs=vmem,
        scratch_shapes=[
            pltpu.VMEM(params["w3"].shape, jnp.bfloat16),   # fc3 weights land here
            pltpu.VMEM(params["w4"].shape, jnp.bfloat16),   # fc4 weights land here
            pltpu.SemaphoreType.DMA((2,)),
        ],
        compiler_params=pltpu.CompilerParams(
            vmem_limit_bytes=8 * 1024 * 1024),   # footprint ~1.6 MiB; 32 MiB was excessive
        cost_estimate=pl.CostEstimate(flops=flops, transcendentals=4 * A,
                                      bytes_accessed=bytes_accessed),
    )(*inputs)
    return out[0, :A], out[0, A:]


# ---------------------------------------------------------------------------
# Pure-JAX reference (same parameters, straightforward ops) for a numeric check.
# ---------------------------------------------------------------------------
def actor_reference(params, x1, x2, action_std_init=0.6):
    h1 = x1.reshape(1, -1) @ params["w1"] + params["b1"]
    h1 = jnp.where(h1 >= 0, h1, NEG_SLOPE * h1)
    h1 = h1 @ params["w2"] + params["b2"]
    h1 = jnp.where(h1 >= 0, h1, NEG_SLOPE * h1)

    wc = params["wconv"].reshape(8, 3, 3, 3).transpose(0, 3, 1, 2)   # -> OIHW
    conv = jax.lax.conv_general_dilated(
        x2[0:1].astype(jnp.float32), wc, window_strides=(1, 1),
        padding=((1, 1), (1, 1)), dimension_numbers=("NCHW", "OIHW", "NCHW"))
    conv = jnp.maximum(conv + params["bconv"].reshape(1, 8, 1, 1), 0.0)
    _, C, H, W = conv.shape
    pooled = conv.reshape(1, C, H // 2, 2, W // 2, 2).mean(axis=(3, 5))
    h3 = jnp.maximum(pooled.reshape(1, -1) @ params["w3"].astype(jnp.float32)
                     + params["b3"], 0.0)
    h4 = jnp.maximum(h3 @ params["w4"].astype(jnp.float32) + params["b4"], 0.0)
    x3 = jnp.concatenate([h1, h4], axis=1)
    lin = x3 @ params["whead"] + params["bhead"]
    A = lin.shape[-1] // 2
    mu = lin[0, :A] / (1.0 + jnp.abs(lin[0, :A]))
    sigma = action_std_init * jax.nn.sigmoid(lin[0, A:])
    return mu, sigma


# ---------------------------------------------------------------------------
# Deterministic synthetic parameter init (PyTorch-default-style uniform bounds),
# stored directly in the kernel-friendly layouts described above.
# ---------------------------------------------------------------------------
def init_params(key, state_dim, action_dim):
    S0 = state_dim[0]
    H, W = state_dim[1]
    H2, W2 = H // 2, W // 2
    keys = jax.random.split(key, 8)

    def lin(k, fan_in, fan_out):
        bound = 1.0 / (fan_in ** 0.5)
        kw_, kb = jax.random.split(k)
        w = jax.random.uniform(kw_, (fan_in, fan_out), jnp.float32, -bound, bound)
        b = jax.random.uniform(kb, (1, fan_out), jnp.float32, -bound, bound)
        return w, b

    p = {}
    p["w1"], p["b1"] = lin(keys[0], S0, 64)
    p["w2"], p["b2"] = lin(keys[1], 64, 16)

    # conv weight: torch layout (out=8, in=3, kh, kw) -> (8, 27), column = (kh*3+kw)*3 + cin
    cbound = 1.0 / (27.0 ** 0.5)
    wc_t = jax.random.uniform(keys[2], (8, 3, 3, 3), jnp.float32, -cbound, cbound)
    p["wconv"] = jnp.transpose(wc_t, (0, 2, 3, 1)).reshape(8, 27)
    p["bconv"] = jax.random.uniform(keys[3], (8, 1), jnp.float32, -cbound, cbound)

    # constant zero-padding validity mask per conv tap, flattened over (i, j)
    ii, jj = np.meshgrid(np.arange(H), np.arange(W), indexing="ij")
    masks = []
    for kh in range(3):
        for kw in range(3):
            di, dj = kh - 1, kw - 1
            valid = (ii + di >= 0) & (ii + di < H) & (jj + dj >= 0) & (jj + dj < W)
            masks.append(valid.reshape(-1))
    p["cmask"] = jnp.asarray(np.stack(masks, 0).astype(np.float32))       # (9, H*W)

    # constant 2x2 average-pool matrix; output column order = h2*W2 + w2 (NCHW spatial)
    pool = np.zeros((H * W, H2 * W2), np.float32)
    for i in range(H):
        for j in range(W):
            pool[i * W + j, (i // 2) * W2 + (j // 2)] = 0.25
    p["pool"] = jnp.asarray(pool)

    w3, p["b3"] = lin(keys[4], H * W * 2, 1024)   # rows in NCHW flatten order (= fc3.weight.T)
    p["w3"] = w3.astype(jnp.bfloat16)             # bf16 weights, f32 accumulation
    w4, p["b4"] = lin(keys[5], 1024, 48)
    p["w4"] = w4.astype(jnp.bfloat16)

    wmu, bmu = lin(keys[6], 64, action_dim)
    wsig, bsig = lin(keys[7], 64, action_dim)
    p["whead"] = jnp.concatenate([wmu, wsig], axis=1)   # (64, 2A) packed heads
    p["bhead"] = jnp.concatenate([bmu, bsig], axis=1)   # (1, 2A)
    return p


if __name__ == "__main__":
    key = jax.random.PRNGKey(0)
    state_dim = (8, (16, 16))   # state_dim[0]=8 flat features, 16x16 image
    action_dim = 4
    kp, k1, k2 = jax.random.split(key, 3)

    params = init_params(kp, state_dim, action_dim)
    x1 = jax.random.normal(k1, (state_dim[0],), jnp.float32)
    x2 = jax.random.normal(k2, (2, 3, state_dim[1][0], state_dim[1][1]), jnp.float32)

    fwd = jax.jit(actor_forward, static_argnames=("action_std_init",))
    mu, sigma = fwd(params, x1, x2, action_std_init=0.6)
    jax.block_until_ready((mu, sigma))
    assert mu.shape == (action_dim,) and sigma.shape == (action_dim,)

    # numeric check vs a plain-JAX reference (loose tol: bf16 weights/activations)
    mu_ref, sg_ref = actor_reference(params, x1, x2, action_std_init=0.6)
    np.testing.assert_allclose(np.asarray(mu), np.asarray(mu_ref), atol=3e-2)
    np.testing.assert_allclose(np.asarray(sigma), np.asarray(sg_ref), atol=3e-2)

    print("KERNEL_OK")
</pallas_src>

<mosaic_0001>
module attributes {stable_mosaic.version = 11 : i64} {
  func.func @_actor_kernel(%arg0: memref<1x8xf32, #tpu.memory_space<vmem>>, %arg1: memref<2x3x256xf32, #tpu.memory_space<vmem>>, %arg2: memref<8x64xf32, #tpu.memory_space<vmem>>, %arg3: memref<1x64xf32, #tpu.memory_space<vmem>>, %arg4: memref<64x16xf32, #tpu.memory_space<vmem>>, %arg5: memref<1x16xf32, #tpu.memory_space<vmem>>, %arg6: memref<8x27xf32, #tpu.memory_space<vmem>>, %arg7: memref<8x1xf32, #tpu.memory_space<vmem>>, %arg8: memref<9x256xf32, #tpu.memory_space<vmem>>, %arg9: memref<256x64xf32, #tpu.memory_space<vmem>>, %arg10: memref<512x1024xbf16, #tpu.memory_space<any>>, %arg11: memref<1x1024xf32, #tpu.memory_space<vmem>>, %arg12: memref<1024x48xbf16, #tpu.memory_space<any>>, %arg13: memref<1x48xf32, #tpu.memory_space<vmem>>, %arg14: memref<64x8xf32, #tpu.memory_space<vmem>>, %arg15: memref<1x8xf32, #tpu.memory_space<vmem>>, %arg16: memref<1x8xf32, #tpu.memory_space<vmem>>, %arg17: memref<512x1024xbf16, #tpu.memory_space<vmem>>, %arg18: memref<1024x48xbf16, #tpu.memory_space<vmem>>, %arg19: memref<2x!tpu.dma_semaphore, #tpu.memory_space<semaphore_mem>>) attributes {dimension_semantics = [], scalar_prefetch = 0 : i64, scratch_operands = 3 : i64, tpu.core_type = #tpu.core_type<tc>} {
    %c0_i32 = arith.constant 0 : i32
    %0 = tpu.memref_slice %arg19[%c0_i32] : memref<2x!tpu.dma_semaphore, #tpu.memory_space<semaphore_mem>> -> memref<1x!tpu.dma_semaphore, #tpu.memory_space<semaphore_mem>>
    %1 = tpu.memref_squeeze %0 : memref<1x!tpu.dma_semaphore, #tpu.memory_space<semaphore_mem>> -> memref<!tpu.dma_semaphore, #tpu.memory_space<semaphore_mem>>
    tpu.enqueue_dma source(%arg10 : memref<512x1024xbf16, #tpu.memory_space<any>>) target(%arg17 : memref<512x1024xbf16, #tpu.memory_space<vmem>>) target_semaphore(%1 : memref<!tpu.dma_semaphore, #tpu.memory_space<semaphore_mem>>)
    %c1_i32 = arith.constant 1 : i32
    %2 = tpu.memref_slice %arg19[%c1_i32] : memref<2x!tpu.dma_semaphore, #tpu.memory_space<semaphore_mem>> -> memref<1x!tpu.dma_semaphore, #tpu.memory_space<semaphore_mem>>
    %3 = tpu.memref_squeeze %2 : memref<1x!tpu.dma_semaphore, #tpu.memory_space<semaphore_mem>> -> memref<!tpu.dma_semaphore, #tpu.memory_space<semaphore_mem>>
    tpu.enqueue_dma source(%arg12 : memref<1024x48xbf16, #tpu.memory_space<any>>) target(%arg18 : memref<1024x48xbf16, #tpu.memory_space<vmem>>) target_semaphore(%3 : memref<!tpu.dma_semaphore, #tpu.memory_space<semaphore_mem>>)
    %c0 = arith.constant 0 : index
    %c0_0 = arith.constant 0 : index
    %4 = vector.load %arg0[%c0, %c0_0] : memref<1x8xf32, #tpu.memory_space<vmem>>, vector<1x8xf32>
    %c0_1 = arith.constant 0 : index
    %c0_2 = arith.constant 0 : index
    %5 = vector.load %arg2[%c0_1, %c0_2] : memref<8x64xf32, #tpu.memory_space<vmem>>, vector<8x64xf32>
    %cst = arith.constant dense<0.000000e+00> : vector<1x64xf32>
    %6 = tpu.matmul %4, %5, %cst {dimension_numbers = #tpu.dot_dimension_numbers<[1], [0], [0], [1], [0, 0, 1, 1], [], []>} : vector<1x8xf32>, vector<8x64xf32>, vector<1x64xf32> -> vector<1x64xf32>
    %c0_3 = arith.constant 0 : index
    %c0_4 = arith.constant 0 : index
    %7 = vector.load %arg3[%c0_3, %c0_4] : memref<1x64xf32, #tpu.memory_space<vmem>>, vector<1x64xf32>
    %8 = arith.addf %6, %7 : vector<1x64xf32>
    %cst_5 = arith.constant 0.000000e+00 : f32
    %9 = vector.broadcast %cst_5 : f32 to vector<1x64xf32>
    %10 = arith.cmpf oge, %8, %9 : vector<1x64xf32>
    %cst_6 = arith.constant 0.00999999977 : f32
    %11 = vector.broadcast %cst_6 : f32 to vector<1x64xf32>
    %12 = arith.mulf %11, %8 : vector<1x64xf32>
    %13 = arith.select %10, %8, %12 : vector<1x64xi1>, vector<1x64xf32>
    %c0_7 = arith.constant 0 : index
    %c0_8 = arith.constant 0 : index
    %14 = vector.load %arg4[%c0_7, %c0_8] : memref<64x16xf32, #tpu.memory_space<vmem>>, vector<64x16xf32>
    %cst_9 = arith.constant dense<0.000000e+00> : vector<1x16xf32>
    %15 = tpu.matmul %13, %14, %cst_9 {dimension_numbers = #tpu.dot_dimension_numbers<[1], [0], [0], [1], [0, 0, 1, 1], [], []>} : vector<1x64xf32>, vector<64x16xf32>, vector<1x16xf32> -> vector<1x16xf32>
    %c0_10 = arith.constant 0 : index
    %c0_11 = arith.constant 0 : index
    %16 = vector.load %arg5[%c0_10, %c0_11] : memref<1x16xf32, #tpu.memory_space<vmem>>, vector<1x16xf32>
    %17 = arith.addf %15, %16 : vector<1x16xf32>
    %cst_12 = arith.constant 0.000000e+00 : f32
    %18 = vector.broadcast %cst_12 : f32 to vector<1x16xf32>
    %19 = arith.cmpf oge, %17, %18 : vector<1x16xf32>
    %cst_13 = arith.constant 0.00999999977 : f32
    %20 = vector.broadcast %cst_13 : f32 to vector<1x16xf32>
    %21 = arith.mulf %20, %17 : vector<1x16xf32>
    %22 = arith.select %19, %17, %21 : vector<1x16xi1>, vector<1x16xf32>
    %c0_14 = arith.constant 0 : index
    %c0_15 = arith.constant 0 : index
    %c0_16 = arith.constant 0 : index
    %23 = vector.load %arg1[%c0_14, %c0_15, %c0_16] : memref<2x3x256xf32, #tpu.memory_space<vmem>>, vector<1x3x256xf32>
    %24 = vector.shape_cast %23 : vector<1x3x256xf32> to vector<3x256xf32>
    %c17_i32 = arith.constant 17 : i32
    %25 = tpu.dynamic_rotate %24 by %c17_i32 dim 1 : vector<3x256xf32>, i32 -> vector<3x256xf32>
    %c0_17 = arith.constant 0 : index
    %c0_18 = arith.constant 0 : index
    %26 = vector.load %arg8[%c0_17, %c0_18] : memref<9x256xf32, #tpu.memory_space<vmem>>, vector<1x256xf32>
    %27 = vector.broadcast %26 : vector<1x256xf32> to vector<3x256xf32>
    %28 = arith.mulf %25, %27 : vector<3x256xf32>
    %c0_19 = arith.constant 0 : index
    %c0_20 = arith.constant 0 : index
    %29 = vector.load %arg6[%c0_19, %c0_20] : memref<8x27xf32, #tpu.memory_space<vmem>>, vector<8x1xf32>
    %30 = vector.extract_strided_slice %28 {offsets = [0, 0], sizes = [1, 256], strides = [1, 1]} : vector<3x256xf32> to vector<1x256xf32>
    %31 = vector.broadcast %29 : vector<8x1xf32> to vector<8x256xf32>
    %32 = vector.broadcast %30 : vector<1x256xf32> to vector<8x256xf32>
    %33 = arith.mulf %31, %32 : vector<8x256xf32>
    %c0_21 = arith.constant 0 : index
    %c1 = arith.constant 1 : index
    %34 = vector.load %arg6[%c0_21, %c1] : memref<8x27xf32, #tpu.memory_space<vmem>>, vector<8x1xf32>
    %35 = vector.extract_strided_slice %28 {offsets = [1, 0], sizes = [1, 256], strides = [1, 1]} : vector<3x256xf32> to vector<1x256xf32>
    %36 = vector.broadcast %34 : vector<8x1xf32> to vector<8x256xf32>
    %37 = vector.broadcast %35 : vector<1x256xf32> to vector<8x256xf32>
    %38 = arith.mulf %36, %37 : vector<8x256xf32>
    %39 = arith.addf %33, %38 : vector<8x256xf32>
    %c0_22 = arith.constant 0 : index
    %c2 = arith.constant 2 : index
    %40 = vector.load %arg6[%c0_22, %c2] : memref<8x27xf32, #tpu.memory_space<vmem>>, vector<8x1xf32>
    %41 = vector.extract_strided_slice %28 {offsets = [2, 0], sizes = [1, 256], strides = [1, 1]} : vector<3x256xf32> to vector<1x256xf32>
    %42 = vector.broadcast %40 : vector<8x1xf32> to vector<8x256xf32>
    %43 = vector.broadcast %41 : vector<1x256xf32> to vector<8x256xf32>
    %44 = arith.mulf %42, %43 : vector<8x256xf32>
    %45 = arith.addf %39, %44 : vector<8x256xf32>
    %c16_i32 = arith.constant 16 : i32
    %46 = tpu.dynamic_rotate %24 by %c16_i32 dim 1 : vector<3x256xf32>, i32 -> vector<3x256xf32>
    %c1_23 = arith.constant 1 : index
    %c0_24 = arith.constant 0 : index
    %47 = vector.load %arg8[%c1_23, %c0_24] : memref<9x256xf32, #tpu.memory_space<vmem>>, vector<1x256xf32>
    %48 = vector.broadcast %47 : vector<1x256xf32> to vector<3x256xf32>
    %49 = arith.mulf %46, %48 : vector<3x256xf32>
    %c0_25 = arith.constant 0 : index
    %c3 = arith.constant 3 : index
    %50 = vector.load %arg6[%c0_25, %c3] : memref<8x27xf32, #tpu.memory_space<vmem>>, vector<8x1xf32>
    %51 = vector.extract_strided_slice %49 {offsets = [0, 0], sizes = [1, 256], strides = [1, 1]} : vector<3x256xf32> to vector<1x256xf32>
    %52 = vector.broadcast %50 : vector<8x1xf32> to vector<8x256xf32>
    %53 = vector.broadcast %51 : vector<1x256xf32> to vector<8x256xf32>
    %54 = arith.mulf %52, %53 : vector<8x256xf32>
    %c0_26 = arith.constant 0 : index
    %c4 = arith.constant 4 : index
    %55 = vector.load %arg6[%c0_26, %c4] : memref<8x27xf32, #tpu.memory_space<vmem>>, vector<8x1xf32>
    %56 = vector.extract_strided_slice %49 {offsets = [1, 0], sizes = [1, 256], strides = [1, 1]} : vector<3x256xf32> to vector<1x256xf32>
    %57 = vector.broadcast %55 : vector<8x1xf32> to vector<8x256xf32>
    %58 = vector.broadcast %56 : vector<1x256xf32> to vector<8x256xf32>
    %59 = arith.mulf %57, %58 : vector<8x256xf32>
    %60 = arith.addf %54, %59 : vector<8x256xf32>
    %c0_27 = arith.constant 0 : index
    %c5 = arith.constant 5 : index
    %61 = vector.load %arg6[%c0_27, %c5] : memref<8x27xf32, #tpu.memory_space<vmem>>, vector<8x1xf32>
    %62 = vector.extract_strided_slice %49 {offsets = [2, 0], sizes = [1, 256], strides = [1, 1]} : vector<3x256xf32> to vector<1x256xf32>
    %63 = vector.broadcast %61 : vector<8x1xf32> to vector<8x256xf32>
    %64 = vector.broadcast %62 : vector<1x256xf32> to vector<8x256xf32>
    %65 = arith.mulf %63, %64 : vector<8x256xf32>
    %66 = arith.addf %60, %65 : vector<8x256xf32>
    %c15_i32 = arith.constant 15 : i32
    %67 = tpu.dynamic_rotate %24 by %c15_i32 dim 1 : vector<3x256xf32>, i32 -> vector<3x256xf32>
    %c2_28 = arith.constant 2 : index
    %c0_29 = arith.constant 0 : index
    %68 = vector.load %arg8[%c2_28, %c0_29] : memref<9x256xf32, #tpu.memory_space<vmem>>, vector<1x256xf32>
    %69 = vector.broadcast %68 : vector<1x256xf32> to vector<3x256xf32>
    %70 = arith.mulf %67, %69 : vector<3x256xf32>
    %c0_30 = arith.constant 0 : index
    %c6 = arith.constant 6 : index
    %71 = vector.load %arg6[%c0_30, %c6] : memref<8x27xf32, #tpu.memory_space<vmem>>, vector<8x1xf32>
    %72 = vector.extract_strided_slice %70 {offsets = [0, 0], sizes = [1, 256], strides = [1, 1]} : vector<3x256xf32> to vector<1x256xf32>
    %73 = vector.broadcast %71 : vector<8x1xf32> to vector<8x256xf32>
    %74 = vector.broadcast %72 : vector<1x256xf32> to vector<8x256xf32>
    %75 = arith.mulf %73, %74 : vector<8x256xf32>
    %c0_31 = arith.constant 0 : index
    %c7 = arith.constant 7 : index
    %76 = vector.load %arg6[%c0_31, %c7] : memref<8x27xf32, #tpu.memory_space<vmem>>, vector<8x1xf32>
    %77 = vector.extract_strided_slice %70 {offsets = [1, 0], sizes = [1, 256], strides = [1, 1]} : vector<3x256xf32> to vector<1x256xf32>
    %78 = vector.broadcast %76 : vector<8x1xf32> to vector<8x256xf32>
    %79 = vector.broadcast %77 : vector<1x256xf32> to vector<8x256xf32>
    %80 = arith.mulf %78, %79 : vector<8x256xf32>
    %81 = arith.addf %75, %80 : vector<8x256xf32>
    %c0_32 = arith.constant 0 : index
    %c8 = arith.constant 8 : index
    %82 = vector.load %arg6[%c0_32, %c8] : memref<8x27xf32, #tpu.memory_space<vmem>>, vector<8x1xf32>
    %83 = vector.extract_strided_slice %70 {offsets = [2, 0], sizes = [1, 256], strides = [1, 1]} : vector<3x256xf32> to vector<1x256xf32>
    %84 = vector.broadcast %82 : vector<8x1xf32> to vector<8x256xf32>
    %85 = vector.broadcast %83 : vector<1x256xf32> to vector<8x256xf32>
    %86 = arith.mulf %84, %85 : vector<8x256xf32>
    %87 = arith.addf %81, %86 : vector<8x256xf32>
    %c1_i32_33 = arith.constant 1 : i32
    %88 = tpu.dynamic_rotate %24 by %c1_i32_33 dim 1 : vector<3x256xf32>, i32 -> vector<3x256xf32>
    %c3_34 = arith.constant 3 : index
    %c0_35 = arith.constant 0 : index
    %89 = vector.load %arg8[%c3_34, %c0_35] : memref<9x256xf32, #tpu.memory_space<vmem>>, vector<1x256xf32>
    %90 = vector.broadcast %89 : vector<1x256xf32> to vector<3x256xf32>
    %91 = arith.mulf %88, %90 : vector<3x256xf32>
    %c0_36 = arith.constant 0 : index
    %c9 = arith.constant 9 : index
    %92 = vector.load %arg6[%c0_36, %c9] : memref<8x27xf32, #tpu.memory_space<vmem>>, vector<8x1xf32>
    %93 = vector.extract_strided_slice %91 {offsets = [0, 0], sizes = [1, 256], strides = [1, 1]} : vector<3x256xf32> to vector<1x256xf32>
    %94 = vector.broadcast %92 : vector<8x1xf32> to vector<8x256xf32>
    %95 = vector.broadcast %93 : vector<1x256xf32> to vector<8x256xf32>
    %96 = arith.mulf %94, %95 : vector<8x256xf32>
    %c0_37 = arith.constant 0 : index
    %c10 = arith.constant 10 : index
    %97 = vector.load %arg6[%c0_37, %c10] : memref<8x27xf32, #tpu.memory_space<vmem>>, vector<8x1xf32>
    %98 = vector.extract_strided_slice %91 {offsets = [1, 0], sizes = [1, 256], strides = [1, 1]} : vector<3x256xf32> to vector<1x256xf32>
    %99 = vector.broadcast %97 : vector<8x1xf32> to vector<8x256xf32>
    %100 = vector.broadcast %98 : vector<1x256xf32> to vector<8x256xf32>
    %101 = arith.mulf %99, %100 : vector<8x256xf32>
    %102 = arith.addf %96, %101 : vector<8x256xf32>
    %c0_38 = arith.constant 0 : index
    %c11 = arith.constant 11 : index
    %103 = vector.load %arg6[%c0_38, %c11] : memref<8x27xf32, #tpu.memory_space<vmem>>, vector<8x1xf32>
    %104 = vector.extract_strided_slice %91 {offsets = [2, 0], sizes = [1, 256], strides = [1, 1]} : vector<3x256xf32> to vector<1x256xf32>
    %105 = vector.broadcast %103 : vector<8x1xf32> to vector<8x256xf32>
    %106 = vector.broadcast %104 : vector<1x256xf32> to vector<8x256xf32>
    %107 = arith.mulf %105, %106 : vector<8x256xf32>
    %108 = arith.addf %102, %107 : vector<8x256xf32>
    %c0_39 = arith.constant 0 : index
    %c12 = arith.constant 12 : index
    %109 = vector.load %arg6[%c0_39, %c12] : memref<8x27xf32, #tpu.memory_space<vmem>>, vector<8x1xf32>
    %110 = vector.extract_strided_slice %24 {offsets = [0, 0], sizes = [1, 256], strides = [1, 1]} : vector<3x256xf32> to vector<1x256xf32>
    %111 = vector.broadcast %109 : vector<8x1xf32> to vector<8x256xf32>
    %112 = vector.broadcast %110 : vector<1x256xf32> to vector<8x256xf32>
    %113 = arith.mulf %111, %112 : vector<8x256xf32>
    %c0_40 = arith.constant 0 : index
    %c13 = arith.constant 13 : index
    %114 = vector.load %arg6[%c0_40, %c13] : memref<8x27xf32, #tpu.memory_space<vmem>>, vector<8x1xf32>
    %115 = vector.extract_strided_slice %24 {offsets = [1, 0], sizes = [1, 256], strides = [1, 1]} : vector<3x256xf32> to vector<1x256xf32>
    %116 = vector.broadcast %114 : vector<8x1xf32> to vector<8x256xf32>
    %117 = vector.broadcast %115 : vector<1x256xf32> to vector<8x256xf32>
    %118 = arith.mulf %116, %117 : vector<8x256xf32>
    %119 = arith.addf %113, %118 : vector<8x256xf32>
    %c0_41 = arith.constant 0 : index
    %c14 = arith.constant 14 : index
    %120 = vector.load %arg6[%c0_41, %c14] : memref<8x27xf32, #tpu.memory_space<vmem>>, vector<8x1xf32>
    %121 = vector.extract_strided_slice %24 {offsets = [2, 0], sizes = [1, 256], strides = [1, 1]} : vector<3x256xf32> to vector<1x256xf32>
    %122 = vector.broadcast %120 : vector<8x1xf32> to vector<8x256xf32>
    %123 = vector.broadcast %121 : vector<1x256xf32> to vector<8x256xf32>
    %124 = arith.mulf %122, %123 : vector<8x256xf32>
    %125 = arith.addf %119, %124 : vector<8x256xf32>
    %c255_i32 = arith.constant 255 : i32
    %126 = tpu.dynamic_rotate %24 by %c255_i32 dim 1 : vector<3x256xf32>, i32 -> vector<3x256xf32>
    %c5_42 = arith.constant 5 : index
    %c0_43 = arith.constant 0 : index
    %127 = vector.load %arg8[%c5_42, %c0_43] : memref<9x256xf32, #tpu.memory_space<vmem>>, vector<1x256xf32>
    %128 = vector.broadcast %127 : vector<1x256xf32> to vector<3x256xf32>
    %129 = arith.mulf %126, %128 : vector<3x256xf32>
    %c0_44 = arith.constant 0 : index
    %c15 = arith.constant 15 : index
    %130 = vector.load %arg6[%c0_44, %c15] : memref<8x27xf32, #tpu.memory_space<vmem>>, vector<8x1xf32>
    %131 = vector.extract_strided_slice %129 {offsets = [0, 0], sizes = [1, 256], strides = [1, 1]} : vector<3x256xf32> to vector<1x256xf32>
    %132 = vector.broadcast %130 : vector<8x1xf32> to vector<8x256xf32>
    %133 = vector.broadcast %131 : vector<1x256xf32> to vector<8x256xf32>
    %134 = arith.mulf %132, %133 : vector<8x256xf32>
    %c0_45 = arith.constant 0 : index
    %c16 = arith.constant 16 : index
    %135 = vector.load %arg6[%c0_45, %c16] : memref<8x27xf32, #tpu.memory_space<vmem>>, vector<8x1xf32>
    %136 = vector.extract_strided_slice %129 {offsets = [1, 0], sizes = [1, 256], strides = [1, 1]} : vector<3x256xf32> to vector<1x256xf32>
    %137 = vector.broadcast %135 : vector<8x1xf32> to vector<8x256xf32>
    %138 = vector.broadcast %136 : vector<1x256xf32> to vector<8x256xf32>
    %139 = arith.mulf %137, %138 : vector<8x256xf32>
    %140 = arith.addf %134, %139 : vector<8x256xf32>
    %c0_46 = arith.constant 0 : index
    %c17 = arith.constant 17 : index
    %141 = vector.load %arg6[%c0_46, %c17] : memref<8x27xf32, #tpu.memory_space<vmem>>, vector<8x1xf32>
    %142 = vector.extract_strided_slice %129 {offsets = [2, 0], sizes = [1, 256], strides = [1, 1]} : vector<3x256xf32> to vector<1x256xf32>
    %143 = vector.broadcast %141 : vector<8x1xf32> to vector<8x256xf32>
    %144 = vector.broadcast %142 : vector<1x256xf32> to vector<8x256xf32>
    %145 = arith.mulf %143, %144 : vector<8x256xf32>
    %146 = arith.addf %140, %145 : vector<8x256xf32>
    %c241_i32 = arith.constant 241 : i32
    %147 = tpu.dynamic_rotate %24 by %c241_i32 dim 1 : vector<3x256xf32>, i32 -> vector<3x256xf32>
    %c6_47 = arith.constant 6 : index
    %c0_48 = arith.constant 0 : index
    %148 = vector.load %arg8[%c6_47, %c0_48] : memref<9x256xf32, #tpu.memory_space<vmem>>, vector<1x256xf32>
    %149 = vector.broadcast %148 : vector<1x256xf32> to vector<3x256xf32>
    %150 = arith.mulf %147, %149 : vector<3x256xf32>
    %c0_49 = arith.constant 0 : index
    %c18 = arith.constant 18 : index
    %151 = vector.load %arg6[%c0_49, %c18] : memref<8x27xf32, #tpu.memory_space<vmem>>, vector<8x1xf32>
    %152 = vector.extract_strided_slice %150 {offsets = [0, 0], sizes = [1, 256], strides = [1, 1]} : vector<3x256xf32> to vector<1x256xf32>
    %153 = vector.broadcast %151 : vector<8x1xf32> to vector<8x256xf32>
    %154 = vector.broadcast %152 : vector<1x256xf32> to vector<8x256xf32>
    %155 = arith.mulf %153, %154 : vector<8x256xf32>
    %c0_50 = arith.constant 0 : index
    %c19 = arith.constant 19 : index
    %156 = vector.load %arg6[%c0_50, %c19] : memref<8x27xf32, #tpu.memory_space<vmem>>, vector<8x1xf32>
    %157 = vector.extract_strided_slice %150 {offsets = [1, 0], sizes = [1, 256], strides = [1, 1]} : vector<3x256xf32> to vector<1x256xf32>
    %158 = vector.broadcast %156 : vector<8x1xf32> to vector<8x256xf32>
    %159 = vector.broadcast %157 : vector<1x256xf32> to vector<8x256xf32>
    %160 = arith.mulf %158, %159 : vector<8x256xf32>
    %161 = arith.addf %155, %160 : vector<8x256xf32>
    %c0_51 = arith.constant 0 : index
    %c20 = arith.constant 20 : index
    %162 = vector.load %arg6[%c0_51, %c20] : memref<8x27xf32, #tpu.memory_space<vmem>>, vector<8x1xf32>
    %163 = vector.extract_strided_slice %150 {offsets = [2, 0], sizes = [1, 256], strides = [1, 1]} : vector<3x256xf32> to vector<1x256xf32>
    %164 = vector.broadcast %162 : vector<8x1xf32> to vector<8x256xf32>
    %165 = vector.broadcast %163 : vector<1x256xf32> to vector<8x256xf32>
    %166 = arith.mulf %164, %165 : vector<8x256xf32>
    %167 = arith.addf %161, %166 : vector<8x256xf32>
    %c240_i32 = arith.constant 240 : i32
    %168 = tpu.dynamic_rotate %24 by %c240_i32 dim 1 : vector<3x256xf32>, i32 -> vector<3x256xf32>
    %c7_52 = arith.constant 7 : index
    %c0_53 = arith.constant 0 : index
    %169 = vector.load %arg8[%c7_52, %c0_53] : memref<9x256xf32, #tpu.memory_space<vmem>>, vector<1x256xf32>
    %170 = vector.broadcast %169 : vector<1x256xf32> to vector<3x256xf32>
    %171 = arith.mulf %168, %170 : vector<3x256xf32>
    %c0_54 = arith.constant 0 : index
    %c21 = arith.constant 21 : index
    %172 = vector.load %arg6[%c0_54, %c21] : memref<8x27xf32, #tpu.memory_space<vmem>>, vector<8x1xf32>
    %173 = vector.extract_strided_slice %171 {offsets = [0, 0], sizes = [1, 256], strides = [1, 1]} : vector<3x256xf32> to vector<1x256xf32>
    %174 = vector.broadcast %172 : vector<8x1xf32> to vector<8x256xf32>
    %175 = vector.broadcast %173 : vector<1x256xf32> to vector<8x256xf32>
    %176 = arith.mulf %174, %175 : vector<8x256xf32>
    %c0_55 = arith.constant 0 : index
    %c22 = arith.constant 22 : index
    %177 = vector.load %arg6[%c0_55, %c22] : memref<8x27xf32, #tpu.memory_space<vmem>>, vector<8x1xf32>
    %178 = vector.extract_strided_slice %171 {offsets = [1, 0], sizes = [1, 256], strides = [1, 1]} : vector<3x256xf32> to vector<1x256xf32>
    %179 = vector.broadcast %177 : vector<8x1xf32> to vector<8x256xf32>
    %180 = vector.broadcast %178 : vector<1x256xf32> to vector<8x256xf32>
    %181 = arith.mulf %179, %180 : vector<8x256xf32>
    %182 = arith.addf %176, %181 : vector<8x256xf32>
    %c0_56 = arith.constant 0 : index
    %c23 = arith.constant 23 : index
    %183 = vector.load %arg6[%c0_56, %c23] : memref<8x27xf32, #tpu.memory_space<vmem>>, vector<8x1xf32>
    %184 = vector.extract_strided_slice %171 {offsets = [2, 0], sizes = [1, 256], strides = [1, 1]} : vector<3x256xf32> to vector<1x256xf32>
    %185 = vector.broadcast %183 : vector<8x1xf32> to vector<8x256xf32>
    %186 = vector.broadcast %184 : vector<1x256xf32> to vector<8x256xf32>
    %187 = arith.mulf %185, %186 : vector<8x256xf32>
    %188 = arith.addf %182, %187 : vector<8x256xf32>
    %c239_i32 = arith.constant 239 : i32
    %189 = tpu.dynamic_rotate %24 by %c239_i32 dim 1 : vector<3x256xf32>, i32 -> vector<3x256xf32>
    %c8_57 = arith.constant 8 : index
    %c0_58 = arith.constant 0 : index
    %190 = vector.load %arg8[%c8_57, %c0_58] : memref<9x256xf32, #tpu.memory_space<vmem>>, vector<1x256xf32>
    %191 = vector.broadcast %190 : vector<1x256xf32> to vector<3x256xf32>
    %192 = arith.mulf %189, %191 : vector<3x256xf32>
    %c0_59 = arith.constant 0 : index
    %c24 = arith.constant 24 : index
    %193 = vector.load %arg6[%c0_59, %c24] : memref<8x27xf32, #tpu.memory_space<vmem>>, vector<8x1xf32>
    %194 = vector.extract_strided_slice %192 {offsets = [0, 0], sizes = [1, 256], strides = [1, 1]} : vector<3x256xf32> to vector<1x256xf32>
    %195 = vector.broadcast %193 : vector<8x1xf32> to vector<8x256xf32>
    %196 = vector.broadcast %194 : vector<1x256xf32> to vector<8x256xf32>
    %197 = arith.mulf %195, %196 : vector<8x256xf32>
    %c0_60 = arith.constant 0 : index
    %c25 = arith.constant 25 : index
    %198 = vector.load %arg6[%c0_60, %c25] : memref<8x27xf32, #tpu.memory_space<vmem>>, vector<8x1xf32>
    %199 = vector.extract_strided_slice %192 {offsets = [1, 0], sizes = [1, 256], strides = [1, 1]} : vector<3x256xf32> to vector<1x256xf32>
    %200 = vector.broadcast %198 : vector<8x1xf32> to vector<8x256xf32>
    %201 = vector.broadcast %199 : vector<1x256xf32> to vector<8x256xf32>
    %202 = arith.mulf %200, %201 : vector<8x256xf32>
    %203 = arith.addf %197, %202 : vector<8x256xf32>
    %c0_61 = arith.constant 0 : index
    %c26 = arith.constant 26 : index
    %204 = vector.load %arg6[%c0_61, %c26] : memref<8x27xf32, #tpu.memory_space<vmem>>, vector<8x1xf32>
    %205 = vector.extract_strided_slice %192 {offsets = [2, 0], sizes = [1, 256], strides = [1, 1]} : vector<3x256xf32> to vector<1x256xf32>
    %206 = vector.broadcast %204 : vector<8x1xf32> to vector<8x256xf32>
    %207 = vector.broadcast %205 : vector<1x256xf32> to vector<8x256xf32>
    %208 = arith.mulf %206, %207 : vector<8x256xf32>
    %209 = arith.addf %203, %208 : vector<8x256xf32>
    %210 = arith.addf %45, %66 : vector<8x256xf32>
    %211 = arith.addf %87, %108 : vector<8x256xf32>
    %212 = arith.addf %125, %146 : vector<8x256xf32>
    %213 = arith.addf %167, %188 : vector<8x256xf32>
    %214 = arith.addf %210, %211 : vector<8x256xf32>
    %215 = arith.addf %212, %213 : vector<8x256xf32>
    %216 = arith.addf %214, %215 : vector<8x256xf32>
    %217 = arith.addf %216, %209 : vector<8x256xf32>
    %c0_62 = arith.constant 0 : index
    %c0_63 = arith.constant 0 : index
    %218 = vector.load %arg7[%c0_62, %c0_63] : memref<8x1xf32, #tpu.memory_space<vmem>>, vector<8x1xf32>
    %219 = vector.broadcast %218 : vector<8x1xf32> to vector<8x256xf32>
    %220 = arith.addf %217, %219 : vector<8x256xf32>
    %cst_64 = arith.constant 0.000000e+00 : f32
    %221 = vector.broadcast %cst_64 : f32 to vector<8x256xf32>
    %222 = arith.maximumf %220, %221 : vector<8x256xf32>
    %c0_65 = arith.constant 0 : index
    %c0_66 = arith.constant 0 : index
    %223 = vector.load %arg9[%c0_65, %c0_66] : memref<256x64xf32, #tpu.memory_space<vmem>>, vector<256x64xf32>
    %cst_67 = arith.constant dense<0.000000e+00> : vector<8x64xf32>
    %224 = tpu.matmul %222, %223, %cst_67 {dimension_numbers = #tpu.dot_dimension_numbers<[1], [0], [0], [1], [0, 0, 1, 1], [], []>} : vector<8x256xf32>, vector<256x64xf32>, vector<8x64xf32> -> vector<8x64xf32>
    %c0_i32_68 = arith.constant 0 : i32
    %225 = tpu.memref_slice %arg19[%c0_i32_68] : memref<2x!tpu.dma_semaphore, #tpu.memory_space<semaphore_mem>> -> memref<1x!tpu.dma_semaphore, #tpu.memory_space<semaphore_mem>>
    %226 = tpu.memref_squeeze %225 : memref<1x!tpu.dma_semaphore, #tpu.memory_space<semaphore_mem>> -> memref<!tpu.dma_semaphore, #tpu.memory_space<semaphore_mem>>
    tpu.wait_dma2 semaphore(%226 : memref<!tpu.dma_semaphore, #tpu.memory_space<semaphore_mem>>) src(%arg10 : memref<512x1024xbf16, #tpu.memory_space<any>>) dst(%arg17 : memref<512x1024xbf16, #tpu.memory_space<vmem>>)
    %227 = arith.truncf %224 : vector<8x64xf32> to vector<8x64xbf16>
    %228 = vector.extract_strided_slice %227 {offsets = [0, 0], sizes = [1, 64], strides = [1, 1]} : vector<8x64xbf16> to vector<1x64xbf16>
    %c0_69 = arith.constant 0 : index
    %c0_70 = arith.constant 0 : index
    %229 = vector.load %arg17[%c0_69, %c0_70] : memref<512x1024xbf16, #tpu.memory_space<vmem>>, vector<64x1024xbf16>
    %cst_71 = arith.constant dense<0.000000e+00> : vector<1x1024xf32>
    %230 = tpu.matmul %228, %229, %cst_71 {dimension_numbers = #tpu.dot_dimension_numbers<[1], [0], [0], [1], [0, 0, 1, 1], [], []>} : vector<1x64xbf16>, vector<64x1024xbf16>, vector<1x1024xf32> -> vector<1x1024xf32>
    %231 = vector.extract_strided_slice %227 {offsets = [1, 0], sizes = [1, 64], strides = [1, 1]} : vector<8x64xbf16> to vector<1x64xbf16>
    %c64 = arith.constant 64 : index
    %c0_72 = arith.constant 0 : index
    %232 = vector.load %arg17[%c64, %c0_72] : memref<512x1024xbf16, #tpu.memory_space<vmem>>, vector<64x1024xbf16>
    %cst_73 = arith.constant dense<0.000000e+00> : vector<1x1024xf32>
    %233 = tpu.matmul %231, %232, %cst_73 {dimension_numbers = #tpu.dot_dimension_numbers<[1], [0], [0], [1], [0, 0, 1, 1], [], []>} : vector<1x64xbf16>, vector<64x1024xbf16>, vector<1x1024xf32> -> vector<1x1024xf32>
    %234 = vector.extract_strided_slice %227 {offsets = [2, 0], sizes = [1, 64], strides = [1, 1]} : vector<8x64xbf16> to vector<1x64xbf16>
    %c128 = arith.constant 128 : index
    %c0_74 = arith.constant 0 : index
    %235 = vector.load %arg17[%c128, %c0_74] : memref<512x1024xbf16, #tpu.memory_space<vmem>>, vector<64x1024xbf16>
    %cst_75 = arith.constant dense<0.000000e+00> : vector<1x1024xf32>
    %236 = tpu.matmul %234, %235, %cst_75 {dimension_numbers = #tpu.dot_dimension_numbers<[1], [0], [0], [1], [0, 0, 1, 1], [], []>} : vector<1x64xbf16>, vector<64x1024xbf16>, vector<1x1024xf32> -> vector<1x1024xf32>
    %237 = vector.extract_strided_slice %227 {offsets = [3, 0], sizes = [1, 64], strides = [1, 1]} : vector<8x64xbf16> to vector<1x64xbf16>
    %c192 = arith.constant 192 : index
    %c0_76 = arith.constant 0 : index
    %238 = vector.load %arg17[%c192, %c0_76] : memref<512x1024xbf16, #tpu.memory_space<vmem>>, vector<64x1024xbf16>
    %cst_77 = arith.constant dense<0.000000e+00> : vector<1x1024xf32>
    %239 = tpu.matmul %237, %238, %cst_77 {dimension_numbers = #tpu.dot_dimension_numbers<[1], [0], [0], [1], [0, 0, 1, 1], [], []>} : vector<1x64xbf16>, vector<64x1024xbf16>, vector<1x1024xf32> -> vector<1x1024xf32>
    %240 = vector.extract_strided_slice %227 {offsets = [4, 0], sizes = [1, 64], strides = [1, 1]} : vector<8x64xbf16> to vector<1x64xbf16>
    %c256 = arith.constant 256 : index
    %c0_78 = arith.constant 0 : index
    %241 = vector.load %arg17[%c256, %c0_78] : memref<512x1024xbf16, #tpu.memory_space<vmem>>, vector<64x1024xbf16>
    %cst_79 = arith.constant dense<0.000000e+00> : vector<1x1024xf32>
    %242 = tpu.matmul %240, %241, %cst_79 {dimension_numbers = #tpu.dot_dimension_numbers<[1], [0], [0], [1], [0, 0, 1, 1], [], []>} : vector<1x64xbf16>, vector<64x1024xbf16>, vector<1x1024xf32> -> vector<1x1024xf32>
    %243 = vector.extract_strided_slice %227 {offsets = [5, 0], sizes = [1, 64], strides = [1, 1]} : vector<8x64xbf16> to vector<1x64xbf16>
    %c320 = arith.constant 320 : index
    %c0_80 = arith.constant 0 : index
    %244 = vector.load %arg17[%c320, %c0_80] : memref<512x1024xbf16, #tpu.memory_space<vmem>>, vector<64x1024xbf16>
    %cst_81 = arith.constant dense<0.000000e+00> : vector<1x1024xf32>
    %245 = tpu.matmul %243, %244, %cst_81 {dimension_numbers = #tpu.dot_dimension_numbers<[1], [0], [0], [1], [0, 0, 1, 1], [], []>} : vector<1x64xbf16>, vector<64x1024xbf16>, vector<1x1024xf32> -> vector<1x1024xf32>
    %246 = vector.extract_strided_slice %227 {offsets = [6, 0], sizes = [1, 64], strides = [1, 1]} : vector<8x64xbf16> to vector<1x64xbf16>
    %c384 = arith.constant 384 : index
    %c0_82 = arith.constant 0 : index
    %247 = vector.load %arg17[%c384, %c0_82] : memref<512x1024xbf16, #tpu.memory_space<vmem>>, vector<64x1024xbf16>
    %cst_83 = arith.constant dense<0.000000e+00> : vector<1x1024xf32>
    %248 = tpu.matmul %246, %247, %cst_83 {dimension_numbers = #tpu.dot_dimension_numbers<[1], [0], [0], [1], [0, 0, 1, 1], [], []>} : vector<1x64xbf16>, vector<64x1024xbf16>, vector<1x1024xf32> -> vector<1x1024xf32>
    %249 = vector.extract_strided_slice %227 {offsets = [7, 0], sizes = [1, 64], strides = [1, 1]} : vector<8x64xbf16> to vector<1x64xbf16>
    %c448 = arith.constant 448 : index
    %c0_84 = arith.constant 0 : index
    %250 = vector.load %arg17[%c448, %c0_84] : memref<512x1024xbf16, #tpu.memory_space<vmem>>, vector<64x1024xbf16>
    %cst_85 = arith.constant dense<0.000000e+00> : vector<1x1024xf32>
    %251 = tpu.matmul %249, %250, %cst_85 {dimension_numbers = #tpu.dot_dimension_numbers<[1], [0], [0], [1], [0, 0, 1, 1], [], []>} : vector<1x64xbf16>, vector<64x1024xbf16>, vector<1x1024xf32> -> vector<1x1024xf32>
    %252 = arith.addf %230, %233 : vector<1x1024xf32>
    %253 = arith.addf %236, %239 : vector<1x1024xf32>
    %254 = arith.addf %242, %245 : vector<1x1024xf32>
    %255 = arith.addf %248, %251 : vector<1x1024xf32>
    %256 = arith.addf %252, %253 : vector<1x1024xf32>
    %257 = arith.addf %254, %255 : vector<1x1024xf32>
    %258 = arith.addf %256, %257 : vector<1x1024xf32>
    %c0_86 = arith.constant 0 : index
    %c0_87 = arith.constant 0 : index
    %259 = vector.load %arg11[%c0_86, %c0_87] : memref<1x1024xf32, #tpu.memory_space<vmem>>, vector<1x1024xf32>
    %260 = arith.addf %258, %259 : vector<1x1024xf32>
    %cst_88 = arith.constant 0.000000e+00 : f32
    %261 = vector.broadcast %cst_88 : f32 to vector<1x1024xf32>
    %262 = arith.maximumf %260, %261 : vector<1x1024xf32>
    %c1_i32_89 = arith.constant 1 : i32
    %263 = tpu.memref_slice %arg19[%c1_i32_89] : memref<2x!tpu.dma_semaphore, #tpu.memory_space<semaphore_mem>> -> memref<1x!tpu.dma_semaphore, #tpu.memory_space<semaphore_mem>>
    %264 = tpu.memref_squeeze %263 : memref<1x!tpu.dma_semaphore, #tpu.memory_space<semaphore_mem>> -> memref<!tpu.dma_semaphore, #tpu.memory_space<semaphore_mem>>
    tpu.wait_dma2 semaphore(%264 : memref<!tpu.dma_semaphore, #tpu.memory_space<semaphore_mem>>) src(%arg12 : memref<1024x48xbf16, #tpu.memory_space<any>>) dst(%arg18 : memref<1024x48xbf16, #tpu.memory_space<vmem>>)
    %265 = arith.truncf %262 : vector<1x1024xf32> to vector<1x1024xbf16>
    %c0_90 = arith.constant 0 : index
    %c0_91 = arith.constant 0 : index
    %266 = vector.load %arg18[%c0_90, %c0_91] : memref<1024x48xbf16, #tpu.memory_space<vmem>>, vector<1024x48xbf16>
    %cst_92 = arith.constant dense<0.000000e+00> : vector<1x48xf32>
    %267 = tpu.matmul %265, %266, %cst_92 {dimension_numbers = #tpu.dot_dimension_numbers<[1], [0], [0], [1], [0, 0, 1, 1], [], []>} : vector<1x1024xbf16>, vector<1024x48xbf16>, vector<1x48xf32> -> vector<1x48xf32>
    %c0_93 = arith.constant 0 : index
    %c0_94 = arith.constant 0 : index
    %268 = vector.load %arg13[%c0_93, %c0_94] : memref<1x48xf32, #tpu.memory_space<vmem>>, vector<1x48xf32>
    %269 = arith.addf %267, %268 : vector<1x48xf32>
    %cst_95 = arith.constant 0.000000e+00 : f32
    %270 = vector.broadcast %cst_95 : f32 to vector<1x48xf32>
    %271 = arith.maximumf %269, %270 : vector<1x48xf32>
    %c0_96 = arith.constant 0 : index
    %c0_97 = arith.constant 0 : index
    %272 = vector.load %arg14[%c0_96, %c0_97] : memref<64x8xf32, #tpu.memory_space<vmem>>, vector<64x8xf32>
    %273 = vector.extract_strided_slice %272 {offsets = [0, 0], sizes = [16, 8], strides = [1, 1]} : vector<64x8xf32> to vector<16x8xf32>
    %cst_98 = arith.constant dense<0.000000e+00> : vector<1x8xf32>
    %274 = tpu.matmul %22, %273, %cst_98 {dimension_numbers = #tpu.dot_dimension_numbers<[1], [0], [0], [1], [0, 0, 1, 1], [], []>} : vector<1x16xf32>, vector<16x8xf32>, vector<1x8xf32> -> vector<1x8xf32>
    %275 = vector.extract_strided_slice %272 {offsets = [16, 0], sizes = [48, 8], strides = [1, 1]} : vector<64x8xf32> to vector<48x8xf32>
    %cst_99 = arith.constant dense<0.000000e+00> : vector<1x8xf32>
    %276 = tpu.matmul %271, %275, %cst_99 {dimension_numbers = #tpu.dot_dimension_numbers<[1], [0], [0], [1], [0, 0, 1, 1], [], []>} : vector<1x48xf32>, vector<48x8xf32>, vector<1x8xf32> -> vector<1x8xf32>
    %277 = arith.addf %274, %276 : vector<1x8xf32>
    %c0_100 = arith.constant 0 : index
    %c0_101 = arith.constant 0 : index
    %278 = vector.load %arg15[%c0_100, %c0_101] : memref<1x8xf32, #tpu.memory_space<vmem>>, vector<1x8xf32>
    %279 = arith.addf %277, %278 : vector<1x8xf32>
    %280 = math.absf %279 : vector<1x8xf32>
    %cst_102 = arith.constant 1.000000e+00 : f32
    %281 = vector.broadcast %cst_102 : f32 to vector<1x8xf32>
    %282 = arith.addf %281, %280 : vector<1x8xf32>
    %283 = arith.divf %279, %282 : vector<1x8xf32>
    %284 = arith.negf %279 : vector<1x8xf32>
    %285 = math.exp %284 : vector<1x8xf32>
    %cst_103 = arith.constant 1.000000e+00 : f32
    %286 = vector.broadcast %cst_103 : f32 to vector<1x8xf32>
    %287 = arith.addf %286, %285 : vector<1x8xf32>
    %288 = arith.divf %286, %287 : vector<1x8xf32>
    %cst_104 = arith.constant 6.000000e-01 : f32
    %289 = vector.broadcast %cst_104 : f32 to vector<1x8xf32>
    %290 = arith.mulf %289, %288 : vector<1x8xf32>
    %291 = tpu.iota {dimensions = array<i32: 1>} : vector<1x8xi32>
    %c4_i32 = arith.constant 4 : i32
    %292 = vector.broadcast %c4_i32 : i32 to vector<1x8xi32>
    %293 = arith.cmpi slt, %291, %292 : vector<1x8xi32>
    %294 = arith.select %293, %283, %290 : vector<1x8xi1>, vector<1x8xf32>
    %c0_105 = arith.constant 0 : index
    %c0_106 = arith.constant 0 : index
    %295 = vector.load %arg16[%c0_105, %c0_106] : memref<1x8xf32, #tpu.memory_space<vmem>>, vector<1x8xf32>
    tpu.vector_store %arg16[%c0_105, %c0_106], %294 {strides = array<i32>} : memref<1x8xf32, #tpu.memory_space<vmem>>, vector<1x8xf32>,
    return
  }
}

</mosaic_0001>

<bundles_post_ra>
// kernel: actor_forward.1
= control target key start
LH: loop header
LB: loop body
LE: loop exit
PB: predicated region body
PF: predicated region fallthrough
CT: control target
= control target key end

     0   :  { %s5057_s0 = inlined_call_operand.vmem [shape: f32[1,8], index: 0, kind: input, shape index: {}]   ;;  %s5058_s1 = inlined_call_operand.vmem [shape: f32[2,3,256], index: 1, kind: input, shape index: {}]   ;;  %s5059_s2 = inlined_call_operand.vmem [shape: f32[8,64], index: 2, kind: input, shape index: {}]   ;;  %s5060_s3 = inlined_call_operand.vmem [shape: f32[1,64], index: 3, kind: input, shape index: {}]   ;;  %s5061_s4 = inlined_call_operand.vmem [shape: f32[64,16], index: 4, kind: input, shape index: {}]   ;;  %s5062_s5 = inlined_call_operand.vmem [shape: f32[1,16], index: 5, kind: input, shape index: {}]   ;;  %s5063_s6 = inlined_call_operand.vmem [shape: f32[8,27], index: 6, kind: input, shape index: {}]   ;;  %s5064_s7 = inlined_call_operand.vmem [shape: f32[8,1], index: 7, kind: input, shape index: {}]   ;;  %s5065_s8 = inlined_call_operand.vmem [shape: f32[9,256], index: 8, kind: input, shape index: {}]   ;;  %s5066_s9 = inlined_call_operand.vmem [shape: f32[256,64], index: 9, kind: input, shape index: {}]   ;;  %s5067_s10 = inlined_call_operand.hbm [shape: bf16[512,1024], index: 10, kind: input, shape index: {}]   ;;  %s5068_s11 = inlined_call_operand.vmem [shape: f32[1,1024], index: 11, kind: input, shape index: {}]   ;;  %s5069_s12 = inlined_call_operand.vmem [shape: bf16[1024,48], index: 12, kind: input, shape index: {}]   ;;  %s5070_s13 = inlined_call_operand.vmem [shape: f32[1,48], index: 13, kind: input, shape index: {}]   ;;  %s5071_s14 = inlined_call_operand.vmem [shape: f32[64,8], index: 14, kind: input, shape index: {}]   ;;  %s5072_s15 = inlined_call_operand.vmem [shape: f32[1,8], index: 15, kind: input, shape index: {}]   ;;  %s5073_s16 = inlined_call_operand.vmem [shape: f32[1,8], index: 16, kind: output, shape index: {}]  }
   0x1   :  { %5081 = sst [smem:[#allocation68_spill]] %s5057_s0 }
   0x2   :  { %s54_s21 = sld [smem:[#allocation0]]   ;;  %s3695_s22 = smov [#allocation2]  }
   0x3   :  { %s62_s23 = sshll.u32 %s3695_s22, 4  ;;  %s3696_s24 = smov 1024   ;;  %s63_s23 = int_to_ptr.vmem [resolvable:$true] %s62_s23 }
   0x4   :  { %66 = sst [smem:[#allocation6]] %s3696_s24  ;;  %s3697_s25 = smov 8  }
   0x5   :  { %68 = sst [smem:[#allocation6 + $0x1]] %s3696_s24  ;;  %s3698_s26 = smov 64  }
   0x6   :  { %70 = sst [smem:[#allocation6 + $0x2]] %s3697_s25  ;;  %s3699_s28 = smov 128  }
   0x7   :  { %72 = sst [smem:[#allocation6 + $0x3]] %s3698_s26  ;;  %s3700_s30 = smov 2  }
   0x8   :  { %s3313_s27 = sshll.u32 %s54_s21, 26  ;;  %74 = sst [smem:[#allocation6 + $0x4]] %s3699_s28 }
   0x9   :  { %s3314_s29 = sadd.s32 134217728, %s3313_s27  ;;  %76 = sst [smem:[#allocation6 + $0x5]] %s3700_s30 }
   0xa   :  { %s3701_s0 = smov 512   ;;  %80 = sst [smem:[#allocation6 + $0x7]] %s3698_s26 }
   0xb   :  { %78 = sst [smem:[#allocation6 + $0x6]] %s3701_s0  ;;  %s3702_s17 = smov 4  }
   0xc   :  { %82 = sst [smem:[#allocation6 + $0x8]] %s3702_s17  ;;  %s3703_s18 = smov [#allocation4]  }
   0xd   :  { %s3704_s19 = smov [#allocation5]  }
   0xe   :  { %84 = dma.general %s5067_s10, 32768, %s63_s23, %s3703_s18, %s3704_s19, [#allocation6], %s3314_s29, 0  }
   0xf   :  { %v3834_v0 = vld [vmem:[%s5069_s12] sm:$0xff]  ;;  %v3839_v1 = vld [vmem:[%s5069_s12 + $0x8] sm:$0xff]  ;;  %v3844_v2 = vld [vmem:[%s5069_s12 + $0x10] sm:$0xff] }
  0x10   :  { %5082 = vst [vmem:[#allocation10_spill] sm:$0xff] %v3839_v1  ;;  %5083 = vst [vmem:[#allocation11_spill] sm:$0xff] %v3844_v2  ;;  %v3849_v3 = vld [vmem:[%s5069_s12 + $0x18] sm:$0xff]  ;;  %v3854_v4 = vld [vmem:[%s5069_s12 + $0x20] sm:$0xff] }
  0x11   :  { %5084 = vst [vmem:[#allocation12_spill] sm:$0xff] %v3849_v3  ;;  %5085 = vst [vmem:[#allocation13_spill] sm:$0xff] %v3854_v4  ;;  %v3859_v5 = vld [vmem:[%s5069_s12 + $0x28] sm:$0xff]  ;;  %v3864_v6 = vld [vmem:[%s5069_s12 + $0x30] sm:$0xff] }
  0x12   :  { %5086 = vst [vmem:[#allocation14_spill] sm:$0xff] %v3859_v5  ;;  %5087 = vst [vmem:[#allocation15_spill] sm:$0xff] %v3864_v6  ;;  %v3869_v7 = vld [vmem:[%s5069_s12 + $0x38] sm:$0xff]  ;;  %v3874_v8 = vld [vmem:[%s5069_s12 + $0x40] sm:$0xff] }
  0x13   :  { %5088 = vst [vmem:[#allocation16_spill] sm:$0xff] %v3869_v7  ;;  %v3879_v9 = vld [vmem:[%s5069_s12 + $0x48] sm:$0xff]  ;;  %v3884_v10 = vld [vmem:[%s5069_s12 + $0x50] sm:$0xff]  ;;  %v3889_v11 = vld [vmem:[%s5069_s12 + $0x58] sm:$0xff] }
  0x14   :  { %5089 = vst [vmem:[#allocation17_spill] sm:$0xff] %v3884_v10  ;;  %5090 = vst [vmem:[#allocation18_spill] sm:$0xff] %v3889_v11  ;;  %v3894_v12 = vld [vmem:[%s5069_s12 + $0x60] sm:$0xff]  ;;  %v3899_v13 = vld [vmem:[%s5069_s12 + $0x68] sm:$0xff] }
  0x15   :  { %5091 = vst [vmem:[#allocation19_spill] sm:$0xff] %v3894_v12  ;;  %5092 = vst [vmem:[#allocation20_spill] sm:$0xff] %v3899_v13  ;;  %v3904_v14 = vld [vmem:[%s5069_s12 + $0x70] sm:$0xff]  ;;  %v3909_v15 = vld [vmem:[%s5069_s12 + $0x78] sm:$0xff] }
  0x16   :  { %5093 = vst [vmem:[#allocation21_spill] sm:$0xff] %v3904_v14  ;;  %5094 = vst [vmem:[#allocation22_spill] sm:$0xff] %v3909_v15  ;;  %v3914_v16 = vld [vmem:[%s5069_s12 + $0x80] sm:$0xff]  ;;  %v3919_v17 = vld [vmem:[%s5069_s12 + $0x88] sm:$0xff] }
  0x17   :  { %5095 = vst [vmem:[#allocation23_spill] sm:$0xff] %v3919_v17  ;;  %v3924_v18 = vld [vmem:[%s5069_s12 + $0x90] sm:$0xff]  ;;  %v3929_v19 = vld [vmem:[%s5069_s12 + $0x98] sm:$0xff]  ;;  %v3934_v20 = vld [vmem:[%s5069_s12 + $0xa0] sm:$0xff] }
  0x18   :  { %5096 = vst [vmem:[#allocation24_spill] sm:$0xff] %v3924_v18  ;;  %5097 = vst [vmem:[#allocation25_spill] sm:$0xff] %v3929_v19  ;;  %v3939_v21 = vld [vmem:[%s5069_s12 + $0xa8] sm:$0xff]  ;;  %v3944_v22 = vld [vmem:[%s5069_s12 + $0xb0] sm:$0xff] }
  0x19   :  { %5098 = vst [vmem:[#allocation26_spill] sm:$0xff] %v3934_v20  ;;  %5099 = vst [vmem:[#allocation27_spill] sm:$0xff] %v3939_v21  ;;  %v3949_v23 = vld [vmem:[%s5069_s12 + $0xb8] sm:$0xff]  ;;  %v3954_v24 = vld [vmem:[%s5069_s12 + $0xc0] sm:$0xff] }
  0x1a   :  { %5100 = vst [vmem:[#allocation28_spill] sm:$0xff] %v3944_v22  ;;  %5101 = vst [vmem:[#allocation29_spill] sm:$0xff] %v3949_v23  ;;  %v3959_v25 = vld [vmem:[%s5069_s12 + $0xc8] sm:$0xff]  ;;  %v3964_v26 = vld [vmem:[%s5069_s12 + $0xd0] sm:$0xff] }
  0x1b   :  { %5102 = vst [vmem:[#allocation30_spill] sm:$0xff] %v3964_v26  ;;  %v3969_v27 = vld [vmem:[%s5069_s12 + $0xd8] sm:$0xff]  ;;  %v3974_v28 = vld [vmem:[%s5069_s12 + $0xe0] sm:$0xff]  ;;  %v3979_v29 = vld [vmem:[%s5069_s12 + $0xe8] sm:$0xff] }
  0x1c   :  { %5103 = vst [vmem:[#allocation31_spill] sm:$0xff] %v3969_v27  ;;  %5104 = vst [vmem:[#allocation32_spill] sm:$0xff] %v3974_v28  ;;  %v3984_v30 = vld [vmem:[%s5069_s12 + $0xf0] sm:$0xff]  ;;  %v3989_v31 = vld [vmem:[%s5069_s12 + $0xf8] sm:$0xff] }
  0x1d   :  { %5105 = vst [vmem:[#allocation33_spill] sm:$0xff] %v3979_v29  ;;  %5106 = vst [vmem:[#allocation34_spill] sm:$0xff] %v3984_v30  ;;  %v3994_v32 = vld [vmem:[%s5069_s12 + $0x100] sm:$0xff]  ;;  %v3999_v33 = vld [vmem:[%s5069_s12 + $0x108] sm:$0xff] }
  0x1e   :  { %5107 = vst [vmem:[#allocation35_spill] sm:$0xff] %v3989_v31  ;;  %5108 = vst [vmem:[#allocation36_spill] sm:$0xff] %v3994_v32  ;;  %v4004_v34 = vld [vmem:[%s5069_s12 + $0x110] sm:$0xff]  ;;  %v4009_v35 = vld [vmem:[%s5069_s12 + $0x118] sm:$0xff] }
  0x1f   :  { %5109 = vst [vmem:[#allocation37_spill] sm:$0xff] %v3999_v33  ;;  %5110 = vst [vmem:[#allocation38_spill] sm:$0xff] %v4004_v34  ;;  %v4014_v36 = vld [vmem:[%s5069_s12 + $0x120] sm:$0xff]  ;;  %v4019_v37 = vld [vmem:[%s5069_s12 + $0x128] sm:$0xff] }
  0x20   :  { %5111 = vst [vmem:[#allocation39_spill] sm:$0xff] %v4009_v35  ;;  %5112 = vst [vmem:[#allocation40_spill] sm:$0xff] %v4014_v36  ;;  %v4024_v38 = vld [vmem:[%s5069_s12 + $0x130] sm:$0xff]  ;;  %v4029_v39 = vld [vmem:[%s5069_s12 + $0x138] sm:$0xff] }
  0x21   :  { %5113 = vst [vmem:[#allocation41_spill] sm:$0xff] %v4019_v37  ;;  %5114 = vst [vmem:[#allocation42_spill] sm:$0xff] %v4024_v38  ;;  %v4034_v40 = vld [vmem:[%s5069_s12 + $0x140] sm:$0xff]  ;;  %v4039_v41 = vld [vmem:[%s5069_s12 + $0x148] sm:$0xff] }
  0x22   :  { %5115 = vst [vmem:[#allocation43_spill] sm:$0xff] %v4029_v39  ;;  %5116 = vst [vmem:[#allocation44_spill] sm:$0xff] %v4034_v40  ;;  %v4044_v42 = vld [vmem:[%s5069_s12 + $0x150] sm:$0xff]  ;;  %v4049_v43 = vld [vmem:[%s5069_s12 + $0x158] sm:$0xff]  ;;  %v3705_v39 = vmov 3  }
  0x23   :  { %5117 = vst [vmem:[#allocation45_spill] sm:$0xff] %v4039_v41  ;;  %5118 = vst [vmem:[#allocation46_spill] sm:$0xff] %v4044_v42  ;;  %v4054_v44 = vld [vmem:[%s5069_s12 + $0x160] sm:$0xff]  ;;  %v4059_v45 = vld [vmem:[%s5069_s12 + $0x168] sm:$0xff]  ;;  %3657 = vset.pattern.permute.xlu1 %v3705_v39 }
  0x24   :  { %5119 = vst [vmem:[#allocation47_spill] sm:$0xff] %v4049_v43  ;;  %5120 = vst [vmem:[#allocation48_spill] sm:$0xff] %v4054_v44  ;;  %v4064_v46 = vld [vmem:[%s5069_s12 + $0x170] sm:$0xff]  ;;  %v4069_v47 = vld [vmem:[%s5069_s12 + $0x178] sm:$0xff] }
  0x25   :  { %5121 = vst [vmem:[#allocation49_spill] sm:$0xff] %v4059_v45  ;;  %5122 = vst [vmem:[#allocation50_spill] sm:$0xff] %v4064_v46  ;;  %v4074_v48 = vld [vmem:[%s5069_s12 + $0x180] sm:$0xff]  ;;  %v4079_v49 = vld [vmem:[%s5069_s12 + $0x188] sm:$0xff] }
  0x26   :  { %5123 = vst [vmem:[#allocation51_spill] sm:$0xff] %v4069_v47  ;;  %5124 = vst [vmem:[#allocation52_spill] sm:$0xff] %v4074_v48  ;;  %v4084_v50 = vld [vmem:[%s5069_s12 + $0x190] sm:$0xff]  ;;  %v4089_v51 = vld [vmem:[%s5069_s12 + $0x198] sm:$0xff]  ;;  %v5074_v47 = vmov 0  }
  0x27   :  { %5125 = vst [vmem:[#allocation53_spill] sm:$0xff] %v4079_v49  ;;  %5126 = vst [vmem:[#allocation54_spill] sm:$0xff] %v4084_v50  ;;  %v4094_v52 = vld [vmem:[%s5069_s12 + $0x1a0] sm:$0xff]  ;;  %v4099_v53 = vld [vmem:[%s5069_s12 + $0x1a8] sm:$0xff]  ;;  %3655 = vset.pattern.permute.xlu0 %v5074_v47 }
  0x28   :  { %5127 = vst [vmem:[#allocation55_spill] sm:$0xff] %v4089_v51  ;;  %5128 = vst [vmem:[#allocation56_spill] sm:$0xff] %v4094_v52  ;;  %v4104_v54 = vld [vmem:[%s5069_s12 + $0x1b0] sm:$0xff]  ;;  %v4109_v55 = vld [vmem:[%s5069_s12 + $0x1b8] sm:$0xff] }
  0x29   :  { %5129 = vst [vmem:[#allocation57_spill] sm:$0xff] %v4099_v53  ;;  %5130 = vst [vmem:[#allocation58_spill] sm:$0xff] %v4104_v54  ;;  %v4114_v56 = vld [vmem:[%s5069_s12 + $0x1c0] sm:$0xff]  ;;  %v4119_v57 = vld [vmem:[%s5069_s12 + $0x1c8] sm:$0xff] }
  0x2a   :  { %5131 = vst [vmem:[#allocation59_spill] sm:$0xff] %v4109_v55  ;;  %5132 = vst [vmem:[#allocation60_spill] sm:$0xff] %v4114_v56  ;;  %v4124_v58 = vld [vmem:[%s5069_s12 + $0x1d0] sm:$0xff]  ;;  %v4129_v59 = vld [vmem:[%s5069_s12 + $0x1d8] sm:$0xff] }
  0x2b   :  { %5133 = vst [vmem:[#allocation61_spill] sm:$0xff] %v4119_v57  ;;  %5134 = vst [vmem:[#allocation62_spill] sm:$0xff] %v4124_v58  ;;  %v4134_v60 = vld [vmem:[%s5069_s12 + $0x1e0] sm:$0xff]  ;;  %v4139_v61 = vld [vmem:[%s5069_s12 + $0x1e8] sm:$0xff] }
  0x2c   :  { %5135 = vst [vmem:[#allocation63_spill] sm:$0xff] %v4129_v59  ;;  %5136 = vst [vmem:[#allocation64_spill] sm:$0xff] %v4134_v60  ;;  %v4144_v62 = vld [vmem:[%s5069_s12 + $0x1f0] sm:$0xff]  ;;  %v4149_v63 = vld [vmem:[%s5069_s12 + $0x1f8] sm:$0xff] }
  0x2d   :  { %5137 = vst [vmem:[#allocation65_spill] sm:$0xff] %v4139_v61  ;;  %5138 = vst [vmem:[#allocation66_spill] sm:$0xff] %v4144_v62  ;;  %v4154_v55 = vld [vmem:[%s5063_s6] sm:$0xff] }
  0x2e   :  { %5139 = vst [vmem:[#allocation67_spill] sm:$0xff] %v4149_v63 }
  0x2f   :  { %253 = vsyncadd [#allocation4 + $0x1], 8192  ;;  %v255_v54 = vld [vmem:[%s5059_s2] sm:$0xff]  ;;  %520 = vperm.xlu1 %3657, %v4154_v55   ;;  %450 = vperm.xlu0 %3655, %v4154_v55   ;;  %s5140_s26 = sld [smem:[#allocation68_spill]]  ;;  %v5076_v38 = vmov 0.0   ;;  %vm257_vm0 = vcmask 64512   ;;  %v428_v51 = vlaneseq }
  0x30   :  { %3505 = vmatprep.subr.mxu0 %v5076_v38  ;;  %vm3708_vm1 = vmmov 0   ;;  %v3709_v39 = vmov 4   ;;  %v3710_v47 = vmov 1   ;;  %v3711_v62 = vmov 6   ;;  %s3720_s30 = smov 17   ;;  %s3722_s0 = smov 16  }
  0x31   :  { %3506 = vmatpush3.msra.mxu0 %v255_v54  ;;  %3507 = vmatprep.mubr.msk.f32.mxu0 %vm3708_vm1, %v5076_v38  ;;  %v3712_v46 = vmov 7   ;;  %v3713_v54 = vmov 9   ;;  %s3731_s10 = smov 113   ;;  %s3733_s23 = smov 15   ;;  %v1105_v61 = vld [vmem:[%s5066_s9 + $0x90] sm:$0xff]  ;;  %v3741_v52 = vmov 25  }
  0x32   :  { %3526 = vmatprep.mubr.msk.f32.mxu1 %vm3708_vm1, %v5076_v38  ;;  %v3726_v38 = vmov 22   ;;  %s3735_s29 = smov 111   ;;  %s3736_s17 = smov 1   ;;  %v1089_v45 = vld [vmem:[%s5066_s9 + $0x10] sm:$0xff]  ;;  %v4379_v35 = vshrl.u32 %v428_v51, 7  ;;  %v4385_v50 = vand.u32 127, %v428_v51 }
  0x33   :  { %3658 = vset.pattern.permute.xlu1 %v3709_v39  ;;  %3656 = vset.pattern.permute.xlu0 %v3710_v47  ;;  %v3715_v47 = vmov 10   ;;  %v3716_v39 = vmov 16   ;;  %s3740_s18 = smov 112   ;;  %v433_v33 = vld [vmem:[%s5065_s8] ss:$8 sm:$0x3] }
  0x34   :  { %534 = vperm.xlu1 %3658, %v4154_v55   ;;  %464 = vperm.xlu0 %3656, %v4154_v55   ;;  %v4388_v34 = vsub.s32 1, %v4379_v35  ;;  %v5080_v58 = vsub.s32 5, %v4379_v35  ;;  %v4392_v49 = vsub.s32 0, %v4379_v35  ;;  %vm430_vm2 = vcmp.lt.s32.totalorder %v4385_v50, 17 }
  0x35   :  { %v254_v63 = vld [vmem:[%s5140_s26] sm:$0x1]  ;;  %v3317_v51 = vld [vmem:[%s5065_s8 + $0x1] ss:$8 sm:$0x3]  ;;  %vm499_vm3 = vcmp.lt.s32.totalorder %v4385_v50, 16 }
  0x36   :  { %3508 = vmatmul.mubr.msk.f32.vlgmr.msra.gmra.mrb[0].mxu0 %vm257_vm0, %v254_v63  ;;  %v3714_v63 = vmov 12   ;;  %v438_v23 = vrot.slane %v433_v33, %v4392_v49  ;;  %v442_v7 = vrot.slane %v433_v33, %v4388_v34  ;;  %v508_v22 = vrot.slane %v3317_v51, %v4392_v49  ;;  %v4502_v2 = vld [vmem:[%s5065_s8 + $0x6] ss:$8 sm:$0x3] }
  0x37   :  { %v5142_v14 = vsub.s32 4, %v4379_v35  ;;  %v4436_v29 = vsub.s32 2, %v4379_v35  ;;  %vm569_vm4 = vcmp.lt.s32.totalorder %v4385_v50, 15  ;;  %vm639_vm5 = vcmp.lt.s32.totalorder %v4385_v50, 1 }
  0x38   :  { %3659 = vset.pattern.permute.xlu1 %v3711_v62  ;;  %3660 = vset.pattern.permute.xlu0 %v3712_v46  ;;  %v3717_v46 = vmov 13   ;;  %v3718_v62 = vmov 21   ;;  %v5143_v27 = vsub.s32 6, %v4379_v35  ;;  %vm785_vm6 = vcmp.lt.s32.totalorder %v4385_v50, 127 }
  0x39   :  { %590 = vperm.xlu1 %3659, %v4154_v55   ;;  %604 = vperm.xlu0 %3660, %v4154_v55   ;;  %vm855_vm7 = vcmp.lt.s32.totalorder %v4385_v50, 113  ;;  %vm925_vm8 = vcmp.lt.s32.totalorder %v4385_v50, 112  ;;  %vm343_vm10 = vcmask 523264   ;;  %vm995_vm11 = vcmp.lt.s32.totalorder %v4385_v50, 111 }
  0x3d   :  { %3661 = vset.pattern.permute.xlu1 %v3713_v54  ;;  %3663 = vset.pattern.permute.xlu0 %v3714_v63  ;;  %v4181_v54 = vld [vmem:[%s5058_s1] sm:$0x77]  ;;  %s3729_s1 = smov 127  }
  0x3e   :  { %660 = vperm.xlu1 %3661, %v4154_v55   ;;  %706 = vperm.xlu0 %3663, %v4154_v55   ;;  %v4187_v63 = vcombine.high %v4181_v54, %v4181_v54  ;;  %v736_v41 = vrot.slane %v4181_v54, %v4388_v34  ;;  %v4406_v48 = vrot.slane %v4181_v54, %v5080_v58 }
  0x3f   :  { %v712_v40 = vrot.slane %v4181_v54, %v4392_v49  ;;  %v512_v58 = vrot.slane %v3317_v51, %v4388_v34  ;;  %v4426_v21 = vrot.slane %v4181_v54, %v5142_v14  ;;  %v762_v3 = vrot.slane %v4181_v54, %v4436_v29 }
  0x40   :  { %v4419_v32 = vrot.slane %v736_v41, %v4388_v34  ;;  %v4478_v11 = vrot.slane %v4181_v54, %v5143_v27 }
  0x41   :  { %v722_v30 = vrot.slane %v712_v40, %v4392_v49  ;;  %v726_v19 = vrot.slane %v4426_v21, %v4392_v49 }
  0x42   :  { %3662 = vset.pattern.permute.xlu1 %v3715_v47  ;;  %3666 = vset.pattern.permute.xlu0 %v3716_v39  ;;  %v3719_v47 = vmov 15   ;;  %v3721_v39 = vmov 5  }
  0x43   :  { %674 = vperm.xlu1 %3662, %v4154_v55   ;;  %820 = vperm.xlu0 %3666, %v4154_v55  }
  0x47   :  { %3664 = vset.pattern.permute.xlu1 %v3717_v46  ;;  %3669 = vset.pattern.permute.xlu0 %v3718_v62  ;;  %v3723_v46 = vmov 18   ;;  %v3724_v62 = vmov 19  }
  0x48   :  { %730 = vperm.xlu1 %3664, %v4154_v55   ;;  %946 = vperm.xlu0 %3669, %v4154_v55  }
  0x4c   :  { %3665 = vset.pattern.permute.xlu1 %v3719_v47  ;;  %426 = vrot.lane.b32.xlu0 %v4187_v63, %s3720_s30  ;;  %v3725_v47 = vmov 8  }
  0x4d   :  { %806 = vperm.xlu1 %3665, %v4154_v55   ;;  %3672 = vset.pattern.permute.xlu0 %v3721_v39  ;;  %v3727_v39 = vmov 11  }
  0x50   :  { %495 = vrot.lane.b32.xlu0 %v4181_v54, %s3722_s0 }
  0x51   :  { %3667 = vset.pattern.permute.xlu1 %v3723_v46  ;;  %v3728_v46 = vmov 2  }
  0x52   :  { %876 = vperm.xlu1 %3667, %v4154_v55  }
  0x54   :  { %550 = vperm.xlu0 %3672, %v4154_v55  }
  0x56   :  { %3668 = vset.pattern.permute.xlu1 %v3724_v62  ;;  %v3730_v62 = vmov 20  }
  0x57   :  { %890 = vperm.xlu1 %3668, %v4154_v55  }
  0x58   :  { %3673 = vset.pattern.permute.xlu0 %v3725_v47  ;;  %v3734_v47 = vmov 23  }
  0x59   :  { %620 = vperm.xlu0 %3673, %v4154_v55  }
  0x5b   :  { %3670 = vset.pattern.permute.xlu1 %v3726_v38  ;;  %v3732_v38 = vmov 14  }
  0x5c   :  { %960 = vperm.xlu1 %3670, %v4154_v55  }
  0x5d   :  { %3674 = vset.pattern.permute.xlu0 %v3727_v39  ;;  %v3737_v39 = vmov 26  }
  0x5e   :  { %690 = vperm.xlu0 %3674, %v4154_v55  }
  0x60   :  { %424 = vrot.lane.b32.xlu1 %v4181_v54, %s3720_s30 }
  0x61   :  { %3671 = vset.pattern.permute.xlu1 %v3728_v46  ;;  %v5141_v46 = vmov 0  }
  0x62   :  { %783 = vrot.lane.b32.xlu0 %v4187_v63, %s3729_s1 }
  0x63   :  { %3677 = vset.pattern.permute.xlu0 %v3730_v62  ;;  %v3738_v62 = vmov 17  }
  0x64   :  { %480 = vperm.xlu1 %3671, %v4154_v55  }
  0x66   :  { %851 = vrot.lane.b32.xlu0 %v4181_v54, %s3731_s10 }
  0x68   :  { %497 = vrot.lane.b32.xlu1 %v4187_v63, %s3722_s0 }
  0x69   :  { %3675 = vset.pattern.permute.xlu1 %v3732_v38  ;;  %v3739_v38 = vmov 24  }
  0x6a   :  { %906 = vperm.xlu0 %3677, %v4154_v55  }
  0x6c   :  { %565 = vrot.lane.b32.xlu1 %v4181_v54, %s3733_s23 }
  0x6e   :  { %3678 = vset.pattern.permute.xlu0 %v3734_v47  ;;  %v1103_v47 = vld [vmem:[%s5066_s9 + $0x80] sm:$0xff] }
  0x6f   :  { %976 = vperm.xlu0 %3678, %v4154_v55  }
  0x70   :  { %567 = vrot.lane.b32.xlu1 %v4187_v63, %s3733_s23 }
  0x73   :  { %991 = vrot.lane.b32.xlu0 %v4181_v54, %s3735_s29 }
  0x74   :  { %635 = vrot.lane.b32.xlu1 %v4181_v54, %s3736_s17  ;;  %3681 = vset.pattern.permute.xlu0 %v3737_v39  ;;  %v1104_v39 = vld [vmem:[%s5066_s9 + $0x88] sm:$0xff] }
  0x75   :  { %v3563_v53 = vpack.c.bf16 %v1104_v39, %v1103_v47  ;;  %v1106_v47 = vld [vmem:[%s5066_s9 + $0x98] sm:$0xff] }
  0x76   :  { %v3567_v39 = vpack.c.bf16 %v1106_v47, %v1105_v61  ;;  %v1091_v47 = vld [vmem:[%s5066_s9 + $0x20] sm:$0xff] }
  0x77   :  { %1046 = vperm.xlu0 %3681, %v4154_v55   ;;  %3564 = vmatprep.subr.bf16.mxu0 %v3563_v53  ;;  %v1108_v53 = vld [vmem:[%s5066_s9 + $0xa8] sm:$0xff] }
  0x78   :  { %637 = vrot.lane.b32.xlu1 %v4187_v63, %s3736_s17 }
  0x7b   :  { %3683 = vset.pattern.permute.xlu0 %v5141_v46 }
  0x7c   :  { %756 = vperm.xlu1 %3675, %v4154_v55  }
  0x80   :  { %781 = vrot.lane.b32.xlu1 %v4181_v54, %s3729_s1 }
  0x81   :  { %3676 = vset.pattern.permute.xlu1 %v3738_v62  ;;  %v1087_v62 = vld [vmem:[%s5066_s9] sm:$0xff] }
  0x84   :  { %836 = vperm.xlu1 %3676, %v4154_v55  }
  0x88   :  { %853 = vrot.lane.b32.xlu1 %v4187_v63, %s3731_s10 }
  0x89   :  { %3679 = vset.pattern.permute.xlu1 %v3739_v38  ;;  %v1088_v38 = vld [vmem:[%s5066_s9 + $0x8] sm:$0xff] }
  0x8a   :  { %v3565_v37 = vpack.c.bf16 %v1088_v38, %v1087_v62  ;;  %v1090_v62 = vld [vmem:[%s5066_s9 + $0x18] sm:$0xff] }
  0x8b   :  { %v3569_v38 = vpack.c.bf16 %v1090_v62, %v1089_v45  ;;  %v1092_v45 = vld [vmem:[%s5066_s9 + $0x28] sm:$0xff] }
  0x8c   :  { %921 = vrot.lane.b32.xlu1 %v4181_v54, %s3740_s18  ;;  %3566 = vmatpush3.bf16.msra.mxu0 %v3565_v37  ;;  %v1107_v37 = vld [vmem:[%s5066_s9 + $0xa0] sm:$0xff]  ;;  %v3573_v62 = vpack.c.bf16 %v1092_v45, %v1091_v47  ;;  %v1110_v47 = vld [vmem:[%s5066_s9 + $0xb8] sm:$0xff]  ;;  %v5078_v45 = vmov 0.0|0.0  }
  0x8d   :  { %3568 = vmatprep.subr.bf16.mxu0 %v3567_v39  ;;  %v3571_v61 = vpack.c.bf16 %v1108_v53, %v1107_v37  ;;  %v334_v39 = vld [vmem:[%s5061_s4] sm:$0xff]  ;;  %v1109_v53 = vld [vmem:[%s5066_s9 + $0xb0] sm:$0xff]  ;;  %3551 = vmatprep.subr.bf16.mxu1 %v5078_v45 }
  0x8e   :  { %v3575_v36 = vpack.c.bf16 %v1110_v47, %v1109_v53  ;;  %v1077_v53 = vld [vmem:[%s5064_s7] sm:$0xff] }
  0x90   :  { %923 = vrot.lane.b32.xlu1 %v4187_v63, %s3740_s18  ;;  %3570 = vmatpush3.bf16.msra.mxu0 %v3569_v38  ;;  %v335_v38 = vld [vmem:[%s5061_s4 + $0x8] sm:$0xff] }
  0x91   :  { %3572 = vmatprep.subr.bf16.mxu0 %v3571_v61  ;;  %v3552_v37 = vpack.c.bf16 %v335_v38, %v334_v39  ;;  %v1094_v61 = vld [vmem:[%s5066_s9 + $0x38] sm:$0xff] }
  0x93   :  { %3553 = vmatpush3.bf16.msra.mxu1 %v3552_v37  ;;  %v1111_v37 = vld [vmem:[%s5066_s9 + $0xc0] sm:$0xff] }
  0x94   :  { %1016 = vperm.xlu1 %3679, %v4154_v55   ;;  %3574 = vmatpush3.bf16.msra.mxu0 %v3573_v62  ;;  %v337_v62 = vld [vmem:[%s5061_s4 + $0x18] sm:$0xff] }
  0x95   :  { %3576 = vmatprep.subr.bf16.mxu0 %v3575_v36  ;;  %3554 = vmatprep.subr.bf16.mxu1 %v5078_v45  ;;  %v1112_v36 = vld [vmem:[%s5066_s9 + $0xc8] sm:$0xff] }
  0x96   :  { %v3579_v47 = vpack.c.bf16 %v1112_v36, %v1111_v37  ;;  %v1113_v37 = vld [vmem:[%s5066_s9 + $0xd0] sm:$0xff] }
  0x98   :  { %3680 = vset.pattern.permute.xlu1 %v3741_v52  ;;  %v1093_v52 = vld [vmem:[%s5066_s9 + $0x30] sm:$0xff] }
  0x99   :  { %1030 = vperm.xlu1 %3680, %v4154_v55   ;;  %v3577_v39 = vpack.c.bf16 %v1094_v61, %v1093_v52  ;;  %v336_v55 = vld [vmem:[%s5061_s4 + $0x10] sm:$0xff]  ;;  %v1096_v52 = vld [vmem:[%s5066_s9 + $0x48] sm:$0xff] }
  0x9a   :  { %v3555_v38 = vpack.c.bf16 %v337_v62, %v336_v55  ;;  %v338_v55 = vld [vmem:[%s5061_s4 + $0x20] sm:$0xff]  ;;  %v339_v62 = vld [vmem:[%s5061_s4 + $0x28] sm:$0xff] }
  0x9b   :  { %3578 = vmatpush3.bf16.msra.mxu0 %v3577_v39  ;;  %v3558_v39 = vpack.c.bf16 %v339_v62, %v338_v55  ;;  %v341_v55 = vld [vmem:[%s5061_s4 + $0x38] sm:$0xff]  ;;  %v1115_v62 = vld [vmem:[%s5066_s9 + $0xe0] sm:$0xff] }
  0x9c   :  { %3556 = vmatpush3.bf16.msra.mxu1 %v3555_v38  ;;  %3580 = vmatprep.subr.bf16.mxu0 %v3579_v47  ;;  %v1114_v38 = vld [vmem:[%s5066_s9 + $0xd8] sm:$0xff] }
  0x9d   :  { %993 = vrot.lane.b32.xlu1 %v4187_v63, %s3735_s29  ;;  %v1095_v63 = vld [vmem:[%s5066_s9 + $0x40] sm:$0xff]  ;;  %3557 = vmatprep.subr.bf16.mxu1 %v5078_v45  ;;  %v3583_v36 = vpack.c.bf16 %v1114_v38, %v1113_v37  ;;  %v1098_v47 = vld [vmem:[%s5066_s9 + $0x58] sm:$0xff] }
  0x9e   :  { %3682 = vset.pattern.permute.xlu1 %v5141_v46  ;;  %v3581_v61 = vpack.c.bf16 %v1096_v52, %v1095_v63  ;;  %v1097_v63 = vld [vmem:[%s5066_s9 + $0x50] sm:$0xff]  ;;  %v1099_v38 = vld [vmem:[%s5066_s9 + $0x60] sm:$0xff] }
  0x9f   :  { %v340_v52 = vld [vmem:[%s5061_s4 + $0x30] sm:$0xff] }
  0xa0   :  { %3582 = vmatpush3.bf16.msra.mxu0 %v3581_v61  ;;  %3559 = vmatpush3.bf16.msra.mxu1 %v3558_v39  ;;  %v3561_v61 = vpack.c.bf16 %v341_v55, %v340_v52  ;;  %v1116_v39 = vld [vmem:[%s5066_s9 + $0xe8] sm:$0xff]  ;;  %v1101_v55 = vld [vmem:[%s5066_s9 + $0x70] sm:$0xff] }
  0xa1   :  { %1080 = vperm.xlu1 %3682, %v1077_v53   ;;  %v3585_v53 = vpack.c.bf16 %v1098_v47, %v1097_v63  ;;  %3584 = vmatprep.subr.bf16.mxu0 %v3583_v36  ;;  %v3587_v37 = vpack.c.bf16 %v1116_v39, %v1115_v62  ;;  %v1100_v36 = vld [vmem:[%s5066_s9 + $0x68] sm:$0xff]  ;;  %v1117_v47 = vld [vmem:[%s5066_s9 + $0xf0] sm:$0xff] }
  0xa2   :  { %3560 = vmatprep.subr.bf16.mxu1 %v5078_v45  ;;  %v3589_v63 = vpack.c.bf16 %v1100_v36, %v1099_v38 }
  0xa4   :  { %3586 = vmatpush3.bf16.msra.mxu0 %v3585_v53  ;;  %3562 = vmatpush3.bf16.msra.mxu1 %v3561_v61  ;;  %v1118_v53 = vld [vmem:[%s5066_s9 + $0xf8] sm:$0xff] }
  0xa5   :  { %3588 = vmatprep.subr.bf16.mxu0 %v3587_v37  ;;  %v3591_v52 = vpack.c.bf16 %v1118_v53, %v1117_v47  ;;  %v1102_v61 = vld [vmem:[%s5066_s9 + $0x78] sm:$0xff] }
  0xa6   :  { %v3593_v62 = vpack.c.bf16 %v1102_v61, %v1101_v55 }
  0xa8   :  { %3590 = vmatpush3.bf16.msra.mxu0 %v3589_v63 }
  0xa9   :  { %3592 = vmatprep.subr.bf16.mxu0 %v3591_v52 }
  0xac   :  { %3594 = vmatpush3.bf16.msra.mxu0 %v3593_v62 }
  0xae   :  { %v4351_v39 = vpop.permute.xlu1 %520  ;;  %v4359_v63 = vpop.permute.xlu0 %450 }
  0xb3   :  { %v4353_v37 = vpop.permute.xlu1 %534  ;;  %v4363_v53 = vpop.permute.xlu0 %464 }
  0xb8   :  { %v4355_v38 = vpop.permute.xlu1 %590  ;;  %v4367_v60 = vpop.permute.xlu0 %604 }
  0xbd   :  { %v4357_v36 = vpop.permute.xlu1 %660  ;;  %v4371_v55 = vpop.permute.xlu0 %706 }
  0xc2   :  { %v4361_v47 = vpop.permute.xlu1 %674  ;;  %v4375_v62 = vpop.permute.xlu0 %820 }
  0xc7   :  { %v4365_v45 = vpop.permute.xlu1 %730  ;;  %v4383_v43 = vpop.permute.xlu0 %946 }
  0xc8   :  { %v4534_v26 = vmul.f32 %v4419_v32, %v4365_v45 }
  0xcb   :  { %v427_v57 = vpop.permute.xlu0 %426 }
  0xcc   :  { %v4369_v52 = vpop.permute.xlu1 %806 }
  0xcf   :  { %v496_v6 = vpop.permute.xlu0 %495 }
  0xd1   :  { %v4373_v61 = vpop.permute.xlu1 %876 }
  0xd6   :  { %v4377_v44 = vpop.permute.xlu1 %890 }
  0xdb   :  { %v4381_v59 = vpop.permute.xlu1 %960 }
  0xdf   :  { %v425_v42 = vpop.permute.xlu1 %424 }
  0xe0   :  { %v431_v31 = vsel %vm430_vm2, %v425_v42, %v427_v57  ;;  %v432_v15 = vsel %vm430_vm2, %v427_v57, %v425_v42  ;;  %v3318_v42 = vld [vmem:[%s5065_s8 + $0x2] ss:$8 sm:$0x3] }
  0xe1   :  { %v4431_v57 = vmul.f32 %v438_v23, %v432_v15  ;;  %v4433_v51 = vmul.f32 %v442_v7, %v431_v31  ;;  %v578_v20 = vrot.slane %v3318_v42, %v4392_v49  ;;  %v582_v15 = vrot.slane %v3318_v42, %v4388_v34 }
  0xe3   :  { %v4409_v56 = vpop.permute.xlu1 %480  ;;  %v456_v40 = vrot.slane %v4431_v57, %v4392_v49  ;;  %v474_v42 = vrot.slane %v4433_v51, %v4388_v34 }
  0xe5   :  { %v461_v18 = vmul.f32 %v456_v40, %v4359_v63  ;;  %v476_v54 = vmul.f32 %v474_v42, %v4363_v53  ;;  %v4505_v40 = vrot.slane %v762_v3, %v4436_v29 }
  0xe7   :  { %v498_v33 = vpop.permute.xlu1 %497 }
  0xe8   :  { %v500_v5 = vsel %vm499_vm3, %v496_v6, %v498_v33  ;;  %v501_v41 = vsel %vm499_vm3, %v498_v33, %v496_v6  ;;  %v470_v33 = vrot.slane %v4431_v57, %v4388_v34 }
  0xe9   :  { %v4439_v13 = vmul.f32 %v508_v22, %v501_v41  ;;  %v4441_v14 = vmul.f32 %v512_v58, %v500_v5  ;;  %v460_v58 = vrot.slane %v4433_v51, %v4392_v49  ;;  %v3319_v41 = vld [vmem:[%s5065_s8 + $0x3] ss:$8 sm:$0x3] }
  0xea   :  { %v652_v21 = vrot.slane %v3319_v41, %v4388_v34 }
  0xeb   :  { %v526_v6 = vrot.slane %v4439_v13, %v4392_v49  ;;  %v530_v23 = vrot.slane %v4441_v14, %v4392_v49  ;;  %v540_v22 = vrot.slane %v4439_v13, %v4388_v34  ;;  %v544_v5 = vrot.slane %v4441_v14, %v4388_v34  ;;  %v566_v31 = vpop.permute.xlu1 %565 }
  0xec   :  { %v462_v27 = vmul.f32 %v460_v58, %v4359_v63 }
  0xed   :  { %v531_v7 = vmul.f32 %v526_v6, %v4351_v39  ;;  %v532_v4 = vmul.f32 %v530_v23, %v4351_v39  ;;  %v545_v28 = vmul.f32 %v540_v22, %v4353_v37  ;;  %v546_v12 = vmul.f32 %v544_v5, %v4353_v37  ;;  %v551_v23 = vpop.permute.xlu0 %550  ;;  %v4489_v5 = vld [vmem:[%s5065_s8 + $0x5] ss:$8 sm:$0x3] }
  0xee   :  { %v648_v37 = vrot.slane %v3319_v41, %v4392_v49 }
  0xef   :  { %v4480_v6 = vadd.f32 %v545_v28, %v531_v7  ;;  %v4482_v39 = vadd.f32 %v546_v12, %v532_v4  ;;  %v568_v22 = vpop.permute.xlu1 %567  ;;  %v475_v12 = vmul.f32 %v470_v33, %v4363_v53  ;;  %v490_v53 = vrot.slane %v4433_v51, %v4436_v29 }
  0xf0   :  { %v570_v28 = vsel %vm569_vm4, %v566_v31, %v568_v22  ;;  %v571_v4 = vsel %vm569_vm4, %v568_v22, %v566_v31  ;;  %v4529_v51 = vmul.f32 %v726_v19, %v4371_v55  ;;  %v478_v31 = vadd.f32 %v476_v54, %v462_v27 }
  0xf1   :  { %v585_v7 = vmul.f32 %v578_v20, %v571_v4  ;;  %v586_v41 = vmul.f32 %v582_v15, %v570_v28  ;;  %v486_v20 = vrot.slane %v4431_v57, %v4436_v29  ;;  %v621_v42 = vpop.permute.xlu0 %620  ;;  %v4526_v57 = vmul.f32 %v722_v30, %v4371_v55 }
  0xf2   :  { %v477_v58 = vadd.f32 %v475_v12, %v461_v18  ;;  %v5144_v4 = vrot.slane %v4406_v48, %v4388_v34  ;;  %v556_v30 = vrot.slane %v4439_v13, %v4436_v29  ;;  %v560_v19 = vrot.slane %v4441_v14, %v4436_v29 }
  0xf3   :  { %v596_v15 = vrot.slane %v585_v7, %v4392_v49  ;;  %v600_v3 = vrot.slane %v586_v41, %v4392_v49  ;;  %v636_v33 = vpop.permute.xlu1 %635  ;;  %v610_v22 = vrot.slane %v585_v7, %v4388_v34  ;;  %v614_v28 = vrot.slane %v586_v41, %v4388_v34 }
  0xf4   :  { %v4540_v10 = vmul.f32 %v5144_v4, %v4365_v45  ;;  %v491_v18 = vmul.f32 %v486_v20, %v4409_v56  ;;  %v492_v55 = vmul.f32 %v490_v53, %v4409_v56  ;;  %v561_v53 = vmul.f32 %v556_v30, %v551_v23 }
  0xf5   :  { %v601_v27 = vmul.f32 %v596_v15, %v4355_v38  ;;  %v602_v32 = vmul.f32 %v600_v3, %v4355_v38  ;;  %v691_v54 = vpop.permute.xlu0 %690  ;;  %v615_v48 = vmul.f32 %v610_v22, %v4367_v60  ;;  %v616_v45 = vmul.f32 %v614_v28, %v4367_v60 }
  0xf6   :  { %v493_v4 = vadd.f32 %v491_v18, %v477_v58  ;;  %v494_v20 = vadd.f32 %v492_v55, %v478_v31  ;;  %v562_v15 = vmul.f32 %v560_v19, %v551_v23  ;;  %v626_v38 = vrot.slane %v585_v7, %v4436_v29 }
  0xf7   :  { %v638_v12 = vpop.permute.xlu1 %637  ;;  %v630_v3 = vrot.slane %v586_v41, %v4436_v29  ;;  %v618_v58 = vadd.f32 %v616_v45, %v602_v32  ;;  %v563_v19 = vadd.f32 %v561_v53, %v4480_v6  ;;  %v5145_v6 = vrot.slane %v4489_v5, %v4392_v49 }
  0xf8   :  { %v640_v13 = vsel %vm639_vm5, %v636_v33, %v638_v12  ;;  %v641_v14 = vsel %vm639_vm5, %v638_v12, %v636_v33  ;;  %v617_v33 = vadd.f32 %v615_v48, %v601_v27  ;;  %v564_v18 = vadd.f32 %v562_v15, %v4482_v39 }
  0xf9   :  { %v655_v63 = vmul.f32 %v648_v37, %v641_v14  ;;  %v656_v56 = vmul.f32 %v652_v21, %v640_v13  ;;  %v784_v30 = vpop.permute.xlu0 %783  ;;  %v631_v55 = vmul.f32 %v626_v38, %v621_v42  ;;  %v632_v27 = vmul.f32 %v630_v3, %v621_v42 }
  0xfa   :  { %v5146_v42 = vrot.slane %v4489_v5, %v4388_v34  ;;  %v1062_v15 = vadd.f32 %v564_v18, %v494_v20  ;;  %v5147_v3 = vrot.slane %v4478_v11, %v4436_v29  ;;  %v3322_v5 = vld [vmem:[%s5065_s8 + $0x7] ss:$8 sm:$0x3] }
  0xfb   :  { %v666_v22 = vrot.slane %v655_v63, %v4392_v49  ;;  %v670_v60 = vrot.slane %v656_v56, %v4392_v49  ;;  %v680_v28 = vrot.slane %v655_v63, %v4388_v34  ;;  %v684_v17 = vrot.slane %v656_v56, %v4388_v34  ;;  %v757_v1 = vpop.permute.xlu1 %756 }
  0xfc   :  { %v696_v37 = vrot.slane %v655_v63, %v4436_v29  ;;  %v700_v21 = vrot.slane %v656_v56, %v4436_v29  ;;  %v633_v13 = vadd.f32 %v631_v55, %v617_v33  ;;  %v777_v38 = vmul.f32 %v4505_v40, %v757_v1 }
  0xfd   :  { %v671_v23 = vmul.f32 %v666_v22, %v4357_v36  ;;  %v672_v7 = vmul.f32 %v670_v60, %v4357_v36  ;;  %v685_v41 = vmul.f32 %v680_v28, %v4361_v47  ;;  %v686_v31 = vmul.f32 %v684_v17, %v4361_v47 }
  0xfe   :  { %v701_v12 = vmul.f32 %v696_v37, %v691_v54  ;;  %v702_v48 = vmul.f32 %v700_v21, %v691_v54  ;;  %v634_v36 = vadd.f32 %v632_v27, %v618_v58  ;;  %v1061_v54 = vadd.f32 %v563_v19, %v493_v4 }
  0xff   :  { %v687_v63 = vadd.f32 %v685_v41, %v671_v23  ;;  %v688_v32 = vadd.f32 %v686_v31, %v672_v7  ;;  %v782_v45 = vpop.permute.xlu1 %781  ;;  %v778_v22 = vmul.f32 %v5147_v3, %v757_v1  ;;  %v256_v1 = vld [vmem:[%s5060_s3] sm:$0x1]  ;;  %v934_v55 = vrot.slane %v3322_v5, %v4392_v49 }
 0x100   :  { %v786_v14 = vsel %vm785_vm6, %v782_v45, %v784_v30  ;;  %v787_v17 = vsel %vm785_vm6, %v784_v30, %v782_v45  ;;  %v753_v30 = vadd.f32 %v4534_v26, %v4526_v57 }
 0x101   :  { %v703_v47 = vadd.f32 %v701_v12, %v687_v63  ;;  %v704_v56 = vadd.f32 %v702_v48, %v688_v32  ;;  %v801_v39 = vmul.f32 %v5145_v6, %v786_v14  ;;  %v802_v53 = vmul.f32 %v5146_v42, %v787_v17  ;;  %v852_v63 = vpop.permute.xlu0 %851 }
 0x102   :  { %v5148_v17 = vrot.slane %v4502_v2, %v4392_v49 }
 0x103   :  { %v1063_v60 = vadd.f32 %v703_v47, %v633_v13  ;;  %v1064_v28 = vadd.f32 %v704_v56, %v634_v36  ;;  %v812_v33 = vrot.slane %v801_v39, %v4392_v49  ;;  %v816_v58 = vrot.slane %v802_v53, %v4392_v49  ;;  %v837_v37 = vpop.permute.xlu1 %836 }
 0x104   :  { %v826_v4 = vrot.slane %v801_v39, %v4388_v34  ;;  %v830_v20 = vrot.slane %v802_v53, %v4388_v34  ;;  %v842_v40 = vrot.slane %v801_v39, %v4436_v29  ;;  %v846_v11 = vrot.slane %v802_v53, %v4436_v29 }
 0x105   :  { %v817_v21 = vmul.f32 %v812_v33, %v4369_v52  ;;  %v818_v23 = vmul.f32 %v816_v58, %v4369_v52  ;;  %v4600_v41 = vadd.f32 %v1063_v60, %v1061_v54  ;;  %v4602_v31 = vadd.f32 %v1064_v28, %v1062_v15 }
 0x106   :  { %v831_v19 = vmul.f32 %v826_v4, %v4375_v62  ;;  %v832_v18 = vmul.f32 %v830_v20, %v4375_v62  ;;  %v754_v52 = vadd.f32 %v4540_v10, %v4529_v51  ;;  %v847_v32 = vmul.f32 %v842_v40, %v837_v37 }
 0x107   :  { %v848_v12 = vmul.f32 %v846_v11, %v837_v37  ;;  %v854_v48 = vpop.permute.xlu1 %853  ;;  %v779_v62 = vadd.f32 %v777_v38, %v753_v30  ;;  %v5149_v10 = vrot.slane %v4502_v2, %v4388_v34  ;;  %v938_v60 = vrot.slane %v3322_v5, %v4388_v34  ;;  %v907_v11 = vpop.permute.xlu0 %906 }
 0x108   :  { %v833_v13 = vadd.f32 %v831_v19, %v817_v21  ;;  %v834_v36 = vadd.f32 %v832_v18, %v818_v23  ;;  %v856_v26 = vsel %vm855_vm7, %v852_v63, %v854_v48  ;;  %v857_v57 = vsel %vm855_vm7, %v854_v48, %v852_v63 }
 0x109   :  { %v327_v7 = vpop.f32.mrb[0].mxu0  ;;  %v780_v14 = vadd.f32 %v778_v22, %v754_v52  ;;  %v871_v47 = vmul.f32 %v5148_v17, %v856_v26  ;;  %v872_v51 = vmul.f32 %v5149_v10, %v857_v57  ;;  %v3323_v17 = vld [vmem:[%s5065_s8 + $0x10] ss:$8 sm:$0x3] }
 0x10a   :  { %v3509_v27 = vpop.f32.mrb[1].mxu0  ;;  %v328_v45 = vadd.f32 %v327_v7, %v256_v1  ;;  %v849_v56 = vadd.f32 %v847_v32, %v833_v13  ;;  %v850_v6 = vadd.f32 %v848_v12, %v834_v36 }
 0x10b   :  { %v882_v42 = vrot.slane %v871_v47, %v4392_v49  ;;  %v886_v53 = vrot.slane %v872_v51, %v4392_v49  ;;  %v896_v54 = vrot.slane %v871_v47, %v4388_v34  ;;  %v900_v15 = vrot.slane %v872_v51, %v4388_v34  ;;  %v922_v38 = vpop.permute.xlu1 %921  ;;  %v977_v36 = vpop.permute.xlu0 %976 }
 0x10c   :  { %vm331_vm9 = vcmp.ge.f32.partialorder %v328_v45, 0.0  ;;  %v332_v39 = vmul.f32 0.01, %v328_v45  ;;  %v1065_v3 = vadd.f32 %v849_v56, %v779_v62  ;;  %v1066_v22 = vadd.f32 %v850_v6, %v780_v14 }
 0x10d   :  { %v887_v2 = vmul.f32 %v882_v42, %v4373_v61  ;;  %v888_v28 = vmul.f32 %v886_v53, %v4373_v61  ;;  %v901_v33 = vmul.f32 %v896_v54, %v4377_v44  ;;  %v902_v58 = vmul.f32 %v900_v15, %v4377_v44 }
 0x10e   :  { %v333_v37 = vsel %vm331_vm9, %v328_v45, %v332_v39  ;;  %v912_v61 = vrot.slane %v871_v47, %v4436_v29  ;;  %v916_v7 = vrot.slane %v872_v51, %v4436_v29  ;;  %v1008_v6 = vrot.slane %v3323_v17, %v4388_v34 }
 0x10f   :  { %v903_v4 = vadd.f32 %v901_v33, %v887_v2  ;;  %v904_v20 = vadd.f32 %v902_v58, %v888_v28  ;;  %v924_v40 = vpop.permute.xlu1 %923  ;;  %3527 = vmatmul.mubr.msk.f32.vlgmr.msra.gmra.mrb[0].mxu1 %vm343_vm10, %v333_v37  ;;  %v992_v53 = vpop.permute.xlu0 %991 }
 0x110   :  { %v926_v1 = vsel %vm925_vm8, %v922_v38, %v924_v40  ;;  %v927_v5 = vsel %vm925_vm8, %v924_v40, %v922_v38  ;;  %v917_v45 = vmul.f32 %v912_v61, %v907_v11  ;;  %v918_v13 = vmul.f32 %v916_v7, %v907_v11 }
 0x111   :  { %v941_v21 = vmul.f32 %v934_v55, %v926_v1  ;;  %v942_v23 = vmul.f32 %v938_v60, %v927_v5 }
 0x112   :  { %v919_v10 = vadd.f32 %v917_v45, %v903_v4  ;;  %v920_v51 = vadd.f32 %v918_v13, %v904_v20 }
 0x113   :  { %v952_v44 = vrot.slane %v941_v21, %v4392_v49  ;;  %v956_v30 = vrot.slane %v942_v23, %v4392_v49  ;;  %v966_v19 = vrot.slane %v941_v21, %v4388_v34  ;;  %v970_v18 = vrot.slane %v942_v23, %v4388_v34  ;;  %v1017_v27 = vpop.permute.xlu1 %1016 }
 0x114   :  { %v982_v52 = vrot.slane %v941_v21, %v4436_v29  ;;  %v986_v63 = vrot.slane %v942_v23, %v4436_v29 }
 0x115   :  { %v957_v55 = vmul.f32 %v952_v44, %v4383_v43  ;;  %v958_v32 = vmul.f32 %v956_v30, %v4383_v43  ;;  %v971_v12 = vmul.f32 %v966_v19, %v4381_v59  ;;  %v972_v48 = vmul.f32 %v970_v18, %v4381_v59 }
 0x116   :  { %v987_v62 = vmul.f32 %v982_v52, %v977_v36  ;;  %v988_v14 = vmul.f32 %v986_v63, %v977_v36  ;;  %v1004_v59 = vrot.slane %v3323_v17, %v4392_v49 }
 0x117   :  { %v973_v26 = vadd.f32 %v971_v12, %v957_v55  ;;  %v974_v57 = vadd.f32 %v972_v48, %v958_v32 }
 0x118   :  { %v1031_v47 = vpop.permute.xlu1 %1030 }
 0x119   :  { %v989_v56 = vadd.f32 %v987_v62, %v973_v26  ;;  %v990_v43 = vadd.f32 %v988_v14, %v974_v57 }
 0x11b   :  { %v1067_v39 = vadd.f32 %v989_v56, %v919_v10  ;;  %v1068_v42 = vadd.f32 %v990_v43, %v920_v51 }
 0x11c   :  { %v994_v54 = vpop.permute.xlu1 %993 }
 0x11d   :  { %v996_v15 = vsel %vm995_vm11, %v992_v53, %v994_v54  ;;  %v997_v38 = vsel %vm995_vm11, %v994_v54, %v992_v53  ;;  %v1071_v60 = vadd.f32 %v1067_v39, %v1065_v3  ;;  %v1072_v2 = vadd.f32 %v1068_v42, %v1066_v22  ;;  %v1047_v3 = vpop.permute.xlu0 %1046 }
 0x11e   :  { %v1011_v28 = vmul.f32 %v1004_v59, %v996_v15  ;;  %v1012_v33 = vmul.f32 %v1008_v6, %v997_v38 }
 0x11f   :  { %v1073_v58 = vadd.f32 %v1071_v60, %v4600_v41  ;;  %v1074_v37 = vadd.f32 %v1072_v2, %v4602_v31 }
 0x120   :  { %v1022_v4 = vrot.slane %v1011_v28, %v4392_v49  ;;  %v1026_v20 = vrot.slane %v1012_v33, %v4392_v49  ;;  %v1036_v40 = vrot.slane %v1011_v28, %v4388_v34  ;;  %v1040_v11 = vrot.slane %v1012_v33, %v4388_v34  ;;  %v1081_v18 = vpop.permute.xlu1 %1080 }
 0x121   :  { %v1052_v1 = vrot.slane %v1011_v28, %v4436_v29  ;;  %v1056_v5 = vrot.slane %v1012_v33, %v4436_v29 }
 0x122   :  { %v1027_v22 = vmul.f32 %v1022_v4, %v1017_v27  ;;  %v1028_v21 = vmul.f32 %v1026_v20, %v1017_v27  ;;  %v1041_v23 = vmul.f32 %v1036_v40, %v1031_v47  ;;  %v1042_v61 = vmul.f32 %v1040_v11, %v1031_v47  ;;  %v342_v27 = vld [vmem:[%s5062_s5] sm:$0x1] }
 0x123   :  { %v1057_v31 = vmul.f32 %v1052_v1, %v1047_v3  ;;  %v1058_v44 = vmul.f32 %v1056_v5, %v1047_v3 }
 0x124   :  { %v1043_v41 = vadd.f32 %v1041_v23, %v1027_v22  ;;  %v1044_v7 = vadd.f32 %v1042_v61, %v1028_v21 }
 0x126   :  { %v1059_v30 = vadd.f32 %v1057_v31, %v1043_v41  ;;  %v1060_v19 = vadd.f32 %v1058_v44, %v1044_v7 }
 0x128   :  { %v1075_v52 = vadd.f32 %v1073_v58, %v1059_v30  ;;  %v1076_v63 = vadd.f32 %v1074_v37, %v1060_v19 }
 0x12a   :  { %v1083_v55 = vadd.f32 %v1081_v18, %v1075_v52  ;;  %v1084_v32 = vadd.f32 %v1081_v18, %v1076_v63 }
 0x12c   :  { %v1085_v12 = vmax.f32 %v1083_v55, 0.0  ;;  %v1086_v48 = vmax.f32 %v1084_v32, 0.0 }
 0x12e   :  { %1183 = vmatprep.mubr.f32.mxu0 %v1086_v48 }
 0x12f   :  { %1184 = vmatmul.mubr.f32.vlgmr.msra.gmra.mrb[2].mxu0 %v1085_v12 }
 0x1e2   :  { %v413_v45 = vpop.f32.mrb[0].mxu1 }
 0x1e3   :  { %v414_v13 = vadd.f32 %v413_v45, %v342_v27  ;;  %v3528_v36 = vpop.f32.mrb[1].mxu1 }
 0x1e5   :  { %vm417_vm12 = vcmp.ge.f32.partialorder %v414_v13, 0.0  ;;  %v418_v26 = vmul.f32 0.01, %v414_v13 }
 0x1e7   :  { %v4664_v57 = vsel %vm417_vm12, %v414_v13, %v418_v26 }
 0x202   :  { %v3404_v62 = vpop.f32.mrb[2].mxu0 }
 0x203   :  { %v3405_v14 = vpop.f32.mrb[3].mxu0 }
 0x204   :  { %v3406_v17 = vadd.f32 %v3405_v14, %v3404_v62 }
 0x205   :  { %3691 = dma.done.wait [#allocation4], 32768 }
 0x206   :  { %3692 = vsyncadd [#allocation4], 4294934528  ;;  %1296 = vmatprep.mubr.bf16.mxu1 %v5141_v46  ;;  %1378 = vmatprep.mubr.bf16.mxu0 %v5141_v46  ;;  %v1227_v47 = vld [vmem:[#allocation2 + $0x108] sm:$0xff]  ;;  %v1226_v51 = vld [vmem:[#allocation2 + $0x100] sm:$0xff]  ;;  %v4668_v2 = vpack.c.bf16 %v3406_v17, %v3406_v17 }
 0x207   :  { %v1231_v10 = vld [vmem:[#allocation2 + $0x128] sm:$0xff]  ;;  %1264 = vmatprep.subr.bf16.mxu1 %v1227_v47  ;;  %v1230_v56 = vld [vmem:[#allocation2 + $0x120] sm:$0xff]  ;;  %v1229_v58 = vld [vmem:[#allocation2 + $0x118] sm:$0xff] }
 0x208   :  { %1346 = vmatprep.subr.bf16.mxu0 %v1231_v10  ;;  %v1235_v43 = vld [vmem:[#allocation2 + $0x148] sm:$0xff]  ;;  %1265 = vmatpush1.bf16.msra.mxu1 %v1226_v51  ;;  %v1234_v6 = vld [vmem:[#allocation2 + $0x140] sm:$0xff]  ;;  %v4671_v4 = vshrl.u32 %v4668_v2, 16  ;;  %v1228_v20 = vld [vmem:[#allocation2 + $0x110] sm:$0xff] }
 0x209   :  { %v1239_v59 = vld [vmem:[#allocation2 + $0x168] sm:$0xff]  ;;  %1347 = vmatpush1.bf16.msra.mxu0 %v1230_v56  ;;  %1266 = vmatprep.subr.bf16.mxu1 %v1235_v43  ;;  %v1238_v39 = vld [vmem:[#allocation2 + $0x160] sm:$0xff]  ;;  %v1237_v11 = vld [vmem:[#allocation2 + $0x158] sm:$0xff] }
 0x20a   :  { %1348 = vmatprep.subr.bf16.mxu0 %v1239_v59  ;;  %v1243_v42 = vld [vmem:[#allocation2 + $0x188] sm:$0xff]  ;;  %v1242_v54 = vld [vmem:[#allocation2 + $0x180] sm:$0xff]  ;;  %v1236_v5 = vld [vmem:[#allocation2 + $0x150] sm:$0xff]  ;;  %v4680_v18 = vrot.slane %v4671_v4, 1 }
 0x20b   :  { %v1247_v53 = vld [vmem:[#allocation2 + $0x1a8] sm:$0xff]  ;;  %v1246_v15 = vld [vmem:[#allocation2 + $0x1a0] sm:$0xff]  ;;  %v1245_v22 = vld [vmem:[#allocation2 + $0x198] sm:$0xff] }
 0x20c   :  { %1267 = vmatpush1.bf16.msra.mxu1 %v1234_v6  ;;  %v1251_v38 = vld [vmem:[#allocation2 + $0x1c8] sm:$0xff]  ;;  %v1250_v28 = vld [vmem:[#allocation2 + $0x1c0] sm:$0xff]  ;;  %v1244_v23 = vld [vmem:[#allocation2 + $0x190] sm:$0xff] }
 0x20d   :  { %1349 = vmatpush1.bf16.msra.mxu0 %v1238_v39  ;;  %1268 = vmatprep.subr.bf16.mxu1 %v1243_v42  ;;  %v1255_v60 = vld [vmem:[#allocation2 + $0x1e8] sm:$0xff]  ;;  %v1254_v33 = vld [vmem:[#allocation2 + $0x1e0] sm:$0xff]  ;;  %v1253_v41 = vld [vmem:[#allocation2 + $0x1d8] sm:$0xff] }
 0x20e   :  { %1350 = vmatprep.subr.bf16.mxu0 %v1247_v53  ;;  %v1461_v37 = vld [vmem:[#allocation2 + $0x308] sm:$0xff]  ;;  %v1460_v40 = vld [vmem:[#allocation2 + $0x300] sm:$0xff]  ;;  %v1252_v31 = vld [vmem:[#allocation2 + $0x1d0] sm:$0xff] }
 0x20f   :  { %v1469_v1 = vld [vmem:[#allocation2 + $0x348] sm:$0xff]  ;;  %v1468_v3 = vld [vmem:[#allocation2 + $0x340] sm:$0xff]  ;;  %v1233_v30 = vld [vmem:[#allocation2 + $0x138] sm:$0xff] }
 0x210   :  { %1269 = vmatpush1.bf16.msra.mxu1 %v1242_v54  ;;  %v1477_v21 = vld [vmem:[#allocation2 + $0x388] sm:$0xff]  ;;  %v1476_v61 = vld [vmem:[#allocation2 + $0x380] sm:$0xff]  ;;  %v1232_v52 = vld [vmem:[#allocation2 + $0x130] sm:$0xff] }
 0x211   :  { %1351 = vmatpush1.bf16.msra.mxu0 %v1246_v15  ;;  %1270 = vmatprep.subr.bf16.mxu1 %v1251_v38  ;;  %v1485_v7 = vld [vmem:[#allocation2 + $0x3c8] sm:$0xff]  ;;  %v1484_v44 = vld [vmem:[#allocation2 + $0x3c0] sm:$0xff]  ;;  %v1241_v55 = vld [vmem:[#allocation2 + $0x178] sm:$0xff] }
 0x212   :  { %1352 = vmatprep.subr.bf16.mxu0 %v1255_v60  ;;  %v1465_v19 = vld [vmem:[#allocation2 + $0x328] sm:$0xff]  ;;  %v1464_v63 = vld [vmem:[#allocation2 + $0x320] sm:$0xff]  ;;  %v1240_v12 = vld [vmem:[#allocation2 + $0x170] sm:$0xff] }
 0x213   :  { %v1473_v32 = vld [vmem:[#allocation2 + $0x368] sm:$0xff]  ;;  %v1472_v48 = vld [vmem:[#allocation2 + $0x360] sm:$0xff]  ;;  %v1249_v27 = vld [vmem:[#allocation2 + $0x1b8] sm:$0xff] }
 0x214   :  { %1271 = vmatpush1.bf16.msra.mxu1 %v1250_v28  ;;  %v1481_v45 = vld [vmem:[#allocation2 + $0x3a8] sm:$0xff]  ;;  %v1248_v13 = vld [vmem:[#allocation2 + $0x1b0] sm:$0xff]  ;;  %v1480_v36 = vld [vmem:[#allocation2 + $0x3a0] sm:$0xff] }
 0x215   :  { %1353 = vmatpush1.bf16.msra.mxu0 %v1254_v33  ;;  %1305 = vmatprep.subr.bf16.mxu1 %v1229_v58  ;;  %v1257_v26 = vld [vmem:[#allocation2 + $0x1f8] sm:$0xff]  ;;  %v1489_v62 = vld [vmem:[#allocation2 + $0x3e8] sm:$0xff]  ;;  %v1256_v14 = vld [vmem:[#allocation2 + $0x1f0] sm:$0xff] }
 0x216   :  { %1496 = vmatprep.subr.bf16.mxu0 %v1461_v37  ;;  %v1488_v17 = vld [vmem:[#allocation2 + $0x3e0] sm:$0xff]  ;;  %v1463_v47 = vld [vmem:[#allocation2 + $0x318] sm:$0xff]  ;;  %v1693_v10 = vld [vmem:[#allocation2 + $0x508] sm:$0xff] }
 0x217   :  { %3324 = vmatmul.mubr.msk.bf16.vlgmr.msra.gmra.mrb[4].mxu1 %vm343_vm10, %v4671_v4  ;;  %v1462_v51 = vld [vmem:[#allocation2 + $0x310] sm:$0xff]  ;;  %v1692_v56 = vld [vmem:[#allocation2 + $0x500] sm:$0xff]  ;;  %v1471_v43 = vld [vmem:[#allocation2 + $0x358] sm:$0xff] }
 0x218   :  { %3326 = vmatmul.mubr.msk.bf16.vlgmr.msra.gmra.mrb[4].mxu0 %vm343_vm10, %v4671_v4  ;;  %1306 = vmatpush1.bf16.msra.mxu1 %v1228_v20  ;;  %v1701_v59 = vld [vmem:[#allocation2 + $0x548] sm:$0xff]  ;;  %v1470_v6 = vld [vmem:[#allocation2 + $0x350] sm:$0xff]  ;;  %v1700_v39 = vld [vmem:[#allocation2 + $0x540] sm:$0xff]  ;;  %v4695_v20 = vrot.slane %v4671_v4, 2 }
 0x219   :  { %1497 = vmatpush1.bf16.msra.mxu0 %v1460_v40  ;;  %1307 = vmatprep.subr.bf16.mxu1 %v1237_v11  ;;  %v1479_v42 = vld [vmem:[#allocation2 + $0x398] sm:$0xff]  ;;  %v1709_v53 = vld [vmem:[#allocation2 + $0x588] sm:$0xff]  ;;  %v1478_v54 = vld [vmem:[#allocation2 + $0x390] sm:$0xff] }
 0x21a   :  { %1498 = vmatprep.subr.bf16.mxu0 %v1469_v1  ;;  %1337 = vmatprep.mubr.bf16.mxu1 %v5141_v46  ;;  %v1708_v15 = vld [vmem:[#allocation2 + $0x580] sm:$0xff]  ;;  %v1487_v38 = vld [vmem:[#allocation2 + $0x3d8] sm:$0xff]  ;;  %v1717_v60 = vld [vmem:[#allocation2 + $0x5c8] sm:$0xff] }
 0x21b   :  { %1528 = vmatprep.mubr.bf16.mxu0 %v5141_v46  ;;  %v1486_v28 = vld [vmem:[#allocation2 + $0x3d0] sm:$0xff]  ;;  %v1716_v33 = vld [vmem:[#allocation2 + $0x5c0] sm:$0xff]  ;;  %v1467_v58 = vld [vmem:[#allocation2 + $0x338] sm:$0xff] }
 0x21c   :  { %1308 = vmatpush1.bf16.msra.mxu1 %v1236_v5  ;;  %v1697_v37 = vld [vmem:[#allocation2 + $0x528] sm:$0xff]  ;;  %v1466_v40 = vld [vmem:[#allocation2 + $0x330] sm:$0xff]  ;;  %v1696_v11 = vld [vmem:[#allocation2 + $0x520] sm:$0xff] }
 0x21d   :  { %1499 = vmatpush1.bf16.msra.mxu0 %v1468_v3  ;;  %1309 = vmatprep.subr.bf16.mxu1 %v1245_v22  ;;  %v1475_v1 = vld [vmem:[#allocation2 + $0x378] sm:$0xff]  ;;  %v1705_v5 = vld [vmem:[#allocation2 + $0x568] sm:$0xff]  ;;  %v1474_v3 = vld [vmem:[#allocation2 + $0x370] sm:$0xff] }
 0x21e   :  { %1500 = vmatprep.subr.bf16.mxu0 %v1477_v21  ;;  %v1704_v22 = vld [vmem:[#allocation2 + $0x560] sm:$0xff]  ;;  %v1483_v21 = vld [vmem:[#allocation2 + $0x3b8] sm:$0xff] }
 0x220   :  { %1310 = vmatpush1.bf16.msra.mxu1 %v1244_v23  ;;  %v1713_v23 = vld [vmem:[#allocation2 + $0x5a8] sm:$0xff] }
 0x221   :  { %1501 = vmatpush1.bf16.msra.mxu0 %v1476_v61  ;;  %1311 = vmatprep.subr.bf16.mxu1 %v1253_v41  ;;  %v1482_v61 = vld [vmem:[#allocation2 + $0x3b0] sm:$0xff]  ;;  %v1712_v41 = vld [vmem:[#allocation2 + $0x5a0] sm:$0xff] }
 0x222   :  { %1502 = vmatprep.subr.bf16.mxu0 %v1485_v7  ;;  %v1491_v7 = vld [vmem:[#allocation2 + $0x3f8] sm:$0xff] }
 0x224   :  { %1312 = vmatpush1.bf16.msra.mxu1 %v1252_v31  ;;  %v1721_v31 = vld [vmem:[#allocation2 + $0x5e8] sm:$0xff] }
 0x225   :  { %1503 = vmatpush1.bf16.msra.mxu0 %v1484_v44  ;;  %1387 = vmatprep.subr.bf16.mxu1 %v1233_v30  ;;  %v1490_v44 = vld [vmem:[#allocation2 + $0x3f0] sm:$0xff]  ;;  %v1720_v30 = vld [vmem:[#allocation2 + $0x5e0] sm:$0xff] }
 0x226   :  { %1578 = vmatprep.subr.bf16.mxu0 %v1465_v19  ;;  %v1695_v19 = vld [vmem:[#allocation2 + $0x518] sm:$0xff] }
 0x227   :  { %3325 = vmatmul.mubr.msk.bf16.vlgmr.msra.gmra.mrb[8].mxu1 %vm343_vm10, %v4671_v4 }
 0x228   :  { %3328 = vmatmul.mubr.msk.bf16.vlgmr.msra.gmra.mrb[8].mxu0 %vm343_vm10, %v4680_v18  ;;  %1388 = vmatpush1.bf16.msra.mxu1 %v1232_v52  ;;  %v1925_v52 = vld [vmem:[#allocation2 + $0x708] sm:$0xff] }
 0x229   :  { %1579 = vmatpush1.bf16.msra.mxu0 %v1464_v63  ;;  %1389 = vmatprep.subr.bf16.mxu1 %v1241_v55  ;;  %v1694_v63 = vld [vmem:[#allocation2 + $0x510] sm:$0xff]  ;;  %v1924_v55 = vld [vmem:[#allocation2 + $0x700] sm:$0xff] }
 0x22a   :  { %1580 = vmatprep.subr.bf16.mxu0 %v1473_v32  ;;  %1419 = vmatprep.mubr.bf16.mxu1 %v5141_v46  ;;  %v1703_v32 = vld [vmem:[#allocation2 + $0x558] sm:$0xff] }
 0x22b   :  { %1610 = vmatprep.mubr.bf16.mxu0 %v5141_v46 }
 0x22c   :  { %1390 = vmatpush1.bf16.msra.mxu1 %v1240_v12  ;;  %v1933_v12 = vld [vmem:[#allocation2 + $0x748] sm:$0xff] }
 0x22d   :  { %1581 = vmatpush1.bf16.msra.mxu0 %v1472_v48  ;;  %1391 = vmatprep.subr.bf16.mxu1 %v1249_v27  ;;  %v1702_v48 = vld [vmem:[#allocation2 + $0x550] sm:$0xff]  ;;  %v1932_v27 = vld [vmem:[#allocation2 + $0x740] sm:$0xff] }
 0x22e   :  { %1582 = vmatprep.subr.bf16.mxu0 %v1481_v45  ;;  %v1711_v45 = vld [vmem:[#allocation2 + $0x598] sm:$0xff] }
 0x230   :  { %1392 = vmatpush1.bf16.msra.mxu1 %v1248_v13  ;;  %v1941_v13 = vld [vmem:[#allocation2 + $0x788] sm:$0xff] }
 0x231   :  { %1583 = vmatpush1.bf16.msra.mxu0 %v1480_v36  ;;  %1393 = vmatprep.subr.bf16.mxu1 %v1257_v26  ;;  %v1940_v36 = vld [vmem:[#allocation2 + $0x780] sm:$0xff]  ;;  %v1719_v26 = vld [vmem:[#allocation2 + $0x5d8] sm:$0xff] }
 0x232   :  { %1584 = vmatprep.subr.bf16.mxu0 %v1489_v62  ;;  %v1949_v62 = vld [vmem:[#allocation2 + $0x7c8] sm:$0xff] }
 0x234   :  { %1394 = vmatpush1.bf16.msra.mxu1 %v1256_v14  ;;  %v1718_v14 = vld [vmem:[#allocation2 + $0x5d0] sm:$0xff] }
 0x235   :  { %1585 = vmatpush1.bf16.msra.mxu0 %v1488_v17  ;;  %1537 = vmatprep.subr.bf16.mxu1 %v1463_v47  ;;  %v1948_v17 = vld [vmem:[#allocation2 + $0x7c0] sm:$0xff]  ;;  %v1699_v47 = vld [vmem:[#allocation2 + $0x538] sm:$0xff] }
 0x236   :  { %1728 = vmatprep.subr.bf16.mxu0 %v1693_v10  ;;  %v1929_v10 = vld [vmem:[#allocation2 + $0x728] sm:$0xff] }
 0x237   :  { %3327 = vmatmul.mubr.msk.bf16.vlgmr.msra.gmra.mrb[12].mxu1 %vm343_vm10, %v4671_v4 }
 0x238   :  { %3330 = vmatmul.mubr.msk.bf16.vlgmr.msra.gmra.mrb[12].mxu0 %vm343_vm10, %v4680_v18  ;;  %1538 = vmatpush1.bf16.msra.mxu1 %v1462_v51  ;;  %v4710_v51 = vrot.slane %v4671_v4, 3  ;;  %v1706_v4 = vld [vmem:[#allocation2 + $0x570] sm:$0xff] }
 0x239   :  { %1729 = vmatpush1.bf16.msra.mxu0 %v1692_v56  ;;  %1539 = vmatprep.subr.bf16.mxu1 %v1471_v43  ;;  %v1698_v56 = vld [vmem:[#allocation2 + $0x530] sm:$0xff]  ;;  %v1928_v43 = vld [vmem:[#allocation2 + $0x720] sm:$0xff] }
 0x23a   :  { %1730 = vmatprep.subr.bf16.mxu0 %v1701_v59  ;;  %1569 = vmatprep.mubr.bf16.mxu1 %v5141_v46  ;;  %v1707_v59 = vld [vmem:[#allocation2 + $0x578] sm:$0xff] }
 0x23b   :  { %1760 = vmatprep.mubr.bf16.mxu0 %v5141_v46 }
 0x23c   :  { %1540 = vmatpush1.bf16.msra.mxu1 %v1470_v6  ;;  %v1937_v6 = vld [vmem:[#allocation2 + $0x768] sm:$0xff] }
 0x23d   :  { %1731 = vmatpush1.bf16.msra.mxu0 %v1700_v39  ;;  %1541 = vmatprep.subr.bf16.mxu1 %v1479_v42  ;;  %v1936_v39 = vld [vmem:[#allocation2 + $0x760] sm:$0xff]  ;;  %v1715_v42 = vld [vmem:[#allocation2 + $0x5b8] sm:$0xff] }
 0x23e   :  { %1732 = vmatprep.subr.bf16.mxu0 %v1709_v53  ;;  %v1945_v53 = vld [vmem:[#allocation2 + $0x7a8] sm:$0xff] }
 0x240   :  { %1542 = vmatpush1.bf16.msra.mxu1 %v1478_v54  ;;  %v1714_v54 = vld [vmem:[#allocation2 + $0x5b0] sm:$0xff] }
 0x241   :  { %1733 = vmatpush1.bf16.msra.mxu0 %v1708_v15  ;;  %1543 = vmatprep.subr.bf16.mxu1 %v1487_v38  ;;  %v1944_v15 = vld [vmem:[#allocation2 + $0x7a0] sm:$0xff]  ;;  %v1723_v38 = vld [vmem:[#allocation2 + $0x5f8] sm:$0xff] }
 0x242   :  { %1734 = vmatprep.subr.bf16.mxu0 %v1717_v60  ;;  %v1953_v60 = vld [vmem:[#allocation2 + $0x7e8] sm:$0xff] }
 0x244   :  { %1544 = vmatpush1.bf16.msra.mxu1 %v1486_v28  ;;  %v1722_v28 = vld [vmem:[#allocation2 + $0x5f0] sm:$0xff] }
 0x245   :  { %1735 = vmatpush1.bf16.msra.mxu0 %v1716_v33  ;;  %1619 = vmatprep.subr.bf16.mxu1 %v1467_v58  ;;  %v1952_v33 = vld [vmem:[#allocation2 + $0x7e0] sm:$0xff]  ;;  %v1927_v58 = vld [vmem:[#allocation2 + $0x718] sm:$0xff] }
 0x246   :  { %1810 = vmatprep.subr.bf16.mxu0 %v1697_v37  ;;  %v1195_v37 = vld [vmem:[#allocation2 + $0x8] sm:$0xff] }
 0x247   :  { %3329 = vmatmul.mubr.msk.bf16.vlgmr.msra.gmra.mrb[16].mxu1 %vm343_vm10, %v4680_v18 }
 0x248   :  { %3332 = vmatmul.mubr.msk.bf16.vlgmr.msra.gmra.mrb[16].mxu0 %vm343_vm10, %v4695_v20  ;;  %1620 = vmatpush1.bf16.msra.mxu1 %v1466_v40  ;;  %v1926_v40 = vld [vmem:[#allocation2 + $0x710] sm:$0xff] }
 0x249   :  { %1811 = vmatpush1.bf16.msra.mxu0 %v1696_v11  ;;  %1621 = vmatprep.subr.bf16.mxu1 %v1475_v1  ;;  %v1194_v11 = vld [vmem:[#allocation2] sm:$0xff]  ;;  %v1935_v1 = vld [vmem:[#allocation2 + $0x758] sm:$0xff] }
 0x24a   :  { %1812 = vmatprep.subr.bf16.mxu0 %v1705_v5  ;;  %1651 = vmatprep.mubr.bf16.mxu1 %v5141_v46  ;;  %v1203_v5 = vld [vmem:[#allocation2 + $0x48] sm:$0xff] }
 0x24b   :  { %1842 = vmatprep.mubr.bf16.mxu0 %v5141_v46 }
 0x24c   :  { %1622 = vmatpush1.bf16.msra.mxu1 %v1474_v3  ;;  %v1934_v3 = vld [vmem:[#allocation2 + $0x750] sm:$0xff] }
 0x24d   :  { %1813 = vmatpush1.bf16.msra.mxu0 %v1704_v22  ;;  %1623 = vmatprep.subr.bf16.mxu1 %v1483_v21  ;;  %v1202_v22 = vld [vmem:[#allocation2 + $0x40] sm:$0xff]  ;;  %v1943_v21 = vld [vmem:[#allocation2 + $0x798] sm:$0xff] }
 0x24e   :  { %1814 = vmatprep.subr.bf16.mxu0 %v1713_v23  ;;  %v1211_v23 = vld [vmem:[#allocation2 + $0x88] sm:$0xff] }
 0x250   :  { %1624 = vmatpush1.bf16.msra.mxu1 %v1482_v61  ;;  %v1210_v61 = vld [vmem:[#allocation2 + $0x80] sm:$0xff] }
 0x251   :  { %1815 = vmatpush1.bf16.msra.mxu0 %v1712_v41  ;;  %1625 = vmatprep.subr.bf16.mxu1 %v1491_v7  ;;  %v1951_v41 = vld [vmem:[#allocation2 + $0x7d8] sm:$0xff]  ;;  %v1219_v7 = vld [vmem:[#allocation2 + $0xc8] sm:$0xff] }
 0x252   :  { %1816 = vmatprep.subr.bf16.mxu0 %v1721_v31  ;;  %v1950_v31 = vld [vmem:[#allocation2 + $0x7d0] sm:$0xff] }
 0x254   :  { %1626 = vmatpush1.bf16.msra.mxu1 %v1490_v44  ;;  %v1218_v44 = vld [vmem:[#allocation2 + $0xc0] sm:$0xff] }
 0x255   :  { %1817 = vmatpush1.bf16.msra.mxu0 %v1720_v30  ;;  %1769 = vmatprep.subr.bf16.mxu1 %v1695_v19  ;;  %v1931_v30 = vld [vmem:[#allocation2 + $0x738] sm:$0xff]  ;;  %v1199_v19 = vld [vmem:[#allocation2 + $0x28] sm:$0xff] }
 0x256   :  { %1960 = vmatprep.subr.bf16.mxu0 %v1925_v52  ;;  %v1930_v52 = vld [vmem:[#allocation2 + $0x730] sm:$0xff] }
 0x257   :  { %3331 = vmatmul.mubr.msk.bf16.vlgmr.msra.gmra.mrb[20].mxu1 %vm343_vm10, %v4680_v18  ;;  %v1710_v18 = vld [vmem:[#allocation2 + $0x590] sm:$0xff] }
 0x258   :  { %3334 = vmatmul.mubr.msk.bf16.vlgmr.msra.gmra.mrb[20].mxu0 %vm343_vm10, %v4695_v20  ;;  %1770 = vmatpush1.bf16.msra.mxu1 %v1694_v63  ;;  %v1198_v63 = vld [vmem:[#allocation2 + $0x20] sm:$0xff] }
 0x259   :  { %1961 = vmatpush1.bf16.msra.mxu0 %v1924_v55  ;;  %1771 = vmatprep.subr.bf16.mxu1 %v1703_v32  ;;  %v1939_v55 = vld [vmem:[#allocation2 + $0x778] sm:$0xff]  ;;  %v1207_v32 = vld [vmem:[#allocation2 + $0x68] sm:$0xff] }
 0x25a   :  { %1962 = vmatprep.subr.bf16.mxu0 %v1933_v12  ;;  %1801 = vmatprep.mubr.bf16.mxu1 %v5141_v46  ;;  %v1938_v12 = vld [vmem:[#allocation2 + $0x770] sm:$0xff] }
 0x25b   :  { %1992 = vmatprep.mubr.bf16.mxu0 %v5141_v46 }
 0x25c   :  { %1772 = vmatpush1.bf16.msra.mxu1 %v1702_v48  ;;  %v1206_v48 = vld [vmem:[#allocation2 + $0x60] sm:$0xff] }
 0x25d   :  { %1963 = vmatpush1.bf16.msra.mxu0 %v1932_v27  ;;  %1773 = vmatprep.subr.bf16.mxu1 %v1711_v45  ;;  %v1947_v27 = vld [vmem:[#allocation2 + $0x7b8] sm:$0xff]  ;;  %v1215_v45 = vld [vmem:[#allocation2 + $0xa8] sm:$0xff] }
 0x25e   :  { %1964 = vmatprep.subr.bf16.mxu0 %v1941_v13  ;;  %v1946_v13 = vld [vmem:[#allocation2 + $0x7b0] sm:$0xff] }
 0x260   :  { %1774 = vmatpush1.bf16.msra.mxu1 %v1710_v18  ;;  %v1214_v18 = vld [vmem:[#allocation2 + $0xa0] sm:$0xff] }
 0x261   :  { %1965 = vmatpush1.bf16.msra.mxu0 %v1940_v36  ;;  %1775 = vmatprep.subr.bf16.mxu1 %v1719_v26  ;;  %v1955_v36 = vld [vmem:[#allocation2 + $0x7f8] sm:$0xff]  ;;  %v1223_v26 = vld [vmem:[#allocation2 + $0xe8] sm:$0xff] }
 0x262   :  { %1966 = vmatprep.subr.bf16.mxu0 %v1949_v62  ;;  %v1954_v62 = vld [vmem:[#allocation2 + $0x7f0] sm:$0xff] }
 0x264   :  { %1776 = vmatpush1.bf16.msra.mxu1 %v1718_v14  ;;  %v1222_v14 = vld [vmem:[#allocation2 + $0xe0] sm:$0xff] }
 0x265   :  { %1967 = vmatpush1.bf16.msra.mxu0 %v1948_v17  ;;  %1851 = vmatprep.subr.bf16.mxu1 %v1699_v47  ;;  %v1197_v17 = vld [vmem:[#allocation2 + $0x18] sm:$0xff]  ;;  %v1429_v47 = vld [vmem:[#allocation2 + $0x208] sm:$0xff] }
 0x266   :  { %2042 = vmatprep.subr.bf16.mxu0 %v1929_v10  ;;  %v1196_v10 = vld [vmem:[#allocation2 + $0x10] sm:$0xff] }
 0x267   :  { %3333 = vmatmul.mubr.msk.bf16.vlgmr.msra.gmra.mrb[24].mxu1 %vm343_vm10, %v4695_v20 }
 0x268   :  { %3336 = vmatmul.mubr.msk.bf16.vlgmr.msra.gmra.mrb[24].mxu0 %vm343_vm10, %v4710_v51  ;;  %1852 = vmatpush1.bf16.msra.mxu1 %v1698_v56  ;;  %v1428_v56 = vld [vmem:[#allocation2 + $0x200] sm:$0xff] }
 0x269   :  { %2043 = vmatpush1.bf16.msra.mxu0 %v1928_v43  ;;  %1853 = vmatprep.subr.bf16.mxu1 %v1707_v59  ;;  %v1205_v43 = vld [vmem:[#allocation2 + $0x58] sm:$0xff]  ;;  %v1437_v59 = vld [vmem:[#allocation2 + $0x248] sm:$0xff] }
 0x26a   :  { %2044 = vmatprep.subr.bf16.mxu0 %v1937_v6  ;;  %1883 = vmatprep.mubr.bf16.mxu1 %v5141_v46  ;;  %v1204_v6 = vld [vmem:[#allocation2 + $0x50] sm:$0xff] }
 0x26b   :  { %2074 = vmatprep.mubr.bf16.mxu0 %v5141_v46 }
 0x26c   :  { %1854 = vmatpush1.bf16.msra.mxu1 %v1706_v4  ;;  %v1436_v4 = vld [vmem:[#allocation2 + $0x240] sm:$0xff] }
 0x26d   :  { %2045 = vmatpush1.bf16.msra.mxu0 %v1936_v39  ;;  %1855 = vmatprep.subr.bf16.mxu1 %v1715_v42  ;;  %v1213_v39 = vld [vmem:[#allocation2 + $0x98] sm:$0xff]  ;;  %v1445_v42 = vld [vmem:[#allocation2 + $0x288] sm:$0xff] }
 0x26e   :  { %2046 = vmatprep.subr.bf16.mxu0 %v1945_v53  ;;  %v1444_v53 = vld [vmem:[#allocation2 + $0x280] sm:$0xff] }
 0x270   :  { %1856 = vmatpush1.bf16.msra.mxu1 %v1714_v54  ;;  %v1221_v54 = vld [vmem:[#allocation2 + $0xd8] sm:$0xff] }
 0x271   :  { %2047 = vmatpush1.bf16.msra.mxu0 %v1944_v15  ;;  %1857 = vmatprep.subr.bf16.mxu1 %v1723_v38  ;;  %v1453_v15 = vld [vmem:[#allocation2 + $0x2c8] sm:$0xff]  ;;  %v1220_v38 = vld [vmem:[#allocation2 + $0xd0] sm:$0xff] }
 0x272   :  { %2048 = vmatprep.subr.bf16.mxu0 %v1953_v60  ;;  %v1452_v60 = vld [vmem:[#allocation2 + $0x2c0] sm:$0xff] }
 0x274   :  { %1858 = vmatpush1.bf16.msra.mxu1 %v1722_v28  ;;  %v1201_v28 = vld [vmem:[#allocation2 + $0x38] sm:$0xff] }
 0x275   :  { %2049 = vmatpush1.bf16.msra.mxu0 %v1952_v33  ;;  %2001 = vmatprep.subr.bf16.mxu1 %v1927_v58  ;;  %v1433_v33 = vld [vmem:[#allocation2 + $0x228] sm:$0xff]  ;;  %v4737_v58 = vrot.slane %v4668_v2, 1 }
 0x276   :  { %2126 = vmatprep.subr.bf16.mxu0 %v1195_v37  ;;  %v1200_v37 = vld [vmem:[#allocation2 + $0x30] sm:$0xff] }
 0x277   :  { %3335 = vmatmul.mubr.msk.bf16.vlgmr.msra.gmra.mrb[28].mxu1 %vm343_vm10, %v4695_v20  ;;  %v1942_v20 = vld [vmem:[#allocation2 + $0x790] sm:$0xff] }
 0x278   :  { %3338 = vmatmul.mubr.msk.bf16.vlgmr.msra.gmra.mrb[28].mxu0 %vm343_vm10, %v4710_v51  ;;  %2002 = vmatpush1.bf16.msra.mxu1 %v1926_v40  ;;  %v1432_v40 = vld [vmem:[#allocation2 + $0x220] sm:$0xff] }
 0x279   :  { %2127 = vmatpush1.bf16.msra.mxu0 %v1194_v11  ;;  %2003 = vmatprep.subr.bf16.mxu1 %v1935_v1  ;;  %v1209_v11 = vld [vmem:[#allocation2 + $0x78] sm:$0xff]  ;;  %v1441_v1 = vld [vmem:[#allocation2 + $0x268] sm:$0xff] }
 0x27a   :  { %2128 = vmatprep.subr.bf16.mxu0 %v1203_v5  ;;  %2033 = vmatprep.mubr.bf16.mxu1 %v5141_v46  ;;  %v1208_v5 = vld [vmem:[#allocation2 + $0x70] sm:$0xff] }
 0x27b   :  { %2158 = vmatprep.mubr.bf16.mxu0 %v5141_v46 }
 0x27c   :  { %2004 = vmatpush1.bf16.msra.mxu1 %v1934_v3  ;;  %v1440_v3 = vld [vmem:[#allocation2 + $0x260] sm:$0xff] }
 0x27d   :  { %2129 = vmatpush1.bf16.msra.mxu0 %v1202_v22  ;;  %2005 = vmatprep.subr.bf16.mxu1 %v1943_v21  ;;  %v1217_v22 = vld [vmem:[#allocation2 + $0xb8] sm:$0xff]  ;;  %v1449_v21 = vld [vmem:[#allocation2 + $0x2a8] sm:$0xff] }
 0x27e   :  { %2130 = vmatprep.subr.bf16.mxu0 %v1211_v23  ;;  %v1216_v23 = vld [vmem:[#allocation2 + $0xb0] sm:$0xff] }
 0x280   :  { %2006 = vmatpush1.bf16.msra.mxu1 %v1942_v20  ;;  %v1448_v20 = vld [vmem:[#allocation2 + $0x2a0] sm:$0xff] }
 0x281   :  { %2131 = vmatpush1.bf16.msra.mxu0 %v1210_v61  ;;  %2007 = vmatprep.subr.bf16.mxu1 %v1951_v41  ;;  %v1225_v61 = vld [vmem:[#allocation2 + $0xf8] sm:$0xff]  ;;  %v1457_v41 = vld [vmem:[#allocation2 + $0x2e8] sm:$0xff] }
 0x282   :  { %2132 = vmatprep.subr.bf16.mxu0 %v1219_v7  ;;  %v1224_v7 = vld [vmem:[#allocation2 + $0xf0] sm:$0xff] }
 0x284   :  { %2008 = vmatpush1.bf16.msra.mxu1 %v1950_v31  ;;  %v1456_v31 = vld [vmem:[#allocation2 + $0x2e0] sm:$0xff] }
 0x285   :  { %2133 = vmatpush1.bf16.msra.mxu0 %v1218_v44  ;;  %2083 = vmatprep.subr.bf16.mxu1 %v1931_v30  ;;  %v1431_v44 = vld [vmem:[#allocation2 + $0x218] sm:$0xff]  ;;  %v1661_v30 = vld [vmem:[#allocation2 + $0x408] sm:$0xff] }
 0x286   :  { %2208 = vmatprep.subr.bf16.mxu0 %v1199_v19  ;;  %v1430_v19 = vld [vmem:[#allocation2 + $0x210] sm:$0xff] }
 0x287   :  { %3337 = vmatmul.mubr.msk.bf16.vlgmr.msra.gmra.mrb[32].mxu1 %vm343_vm10, %v4710_v51 }
 0x288   :  { %3340 = vmatmul.mubr.msk.bf16.vlgmr.msra.gmra.mrb[32].mxu0 %vm343_vm10, %v4668_v2  ;;  %2084 = vmatpush1.bf16.msra.mxu1 %v1930_v52  ;;  %v1660_v52 = vld [vmem:[#allocation2 + $0x400] sm:$0xff] }
 0x289   :  { %2209 = vmatpush1.bf16.msra.mxu0 %v1198_v63  ;;  %2085 = vmatprep.subr.bf16.mxu1 %v1939_v55  ;;  %v1439_v63 = vld [vmem:[#allocation2 + $0x258] sm:$0xff]  ;;  %v1669_v55 = vld [vmem:[#allocation2 + $0x448] sm:$0xff] }
 0x28a   :  { %2210 = vmatprep.subr.bf16.mxu0 %v1207_v32  ;;  %2115 = vmatprep.mubr.bf16.mxu1 %v5141_v46  ;;  %v1438_v32 = vld [vmem:[#allocation2 + $0x250] sm:$0xff] }
 0x28b   :  { %2240 = vmatprep.mubr.bf16.mxu0 %v5141_v46 }
 0x28c   :  { %2086 = vmatpush1.bf16.msra.mxu1 %v1938_v12  ;;  %v1668_v12 = vld [vmem:[#allocation2 + $0x440] sm:$0xff] }
 0x28d   :  { %2211 = vmatpush1.bf16.msra.mxu0 %v1206_v48  ;;  %2087 = vmatprep.subr.bf16.mxu1 %v1947_v27  ;;  %v1447_v48 = vld [vmem:[#allocation2 + $0x298] sm:$0xff]  ;;  %v1677_v27 = vld [vmem:[#allocation2 + $0x488] sm:$0xff] }
 0x28e   :  { %2212 = vmatprep.subr.bf16.mxu0 %v1215_v45  ;;  %v1446_v45 = vld [vmem:[#allocation2 + $0x290] sm:$0xff] }
 0x290   :  { %2088 = vmatpush1.bf16.msra.mxu1 %v1946_v13  ;;  %v1676_v13 = vld [vmem:[#allocation2 + $0x480] sm:$0xff] }
 0x291   :  { %2213 = vmatpush1.bf16.msra.mxu0 %v1214_v18  ;;  %2089 = vmatprep.subr.bf16.mxu1 %v1955_v36  ;;  %v1455_v18 = vld [vmem:[#allocation2 + $0x2d8] sm:$0xff]  ;;  %v1685_v36 = vld [vmem:[#allocation2 + $0x4c8] sm:$0xff] }
 0x292   :  { %2214 = vmatprep.subr.bf16.mxu0 %v1223_v26  ;;  %v1454_v26 = vld [vmem:[#allocation2 + $0x2d0] sm:$0xff] }
 0x294   :  { %2090 = vmatpush1.bf16.msra.mxu1 %v1954_v62  ;;  %v1684_v62 = vld [vmem:[#allocation2 + $0x4c0] sm:$0xff] }
 0x295   :  { %2215 = vmatpush1.bf16.msra.mxu0 %v1222_v14  ;;  %2167 = vmatprep.subr.bf16.mxu1 %v1197_v17  ;;  %v1435_v14 = vld [vmem:[#allocation2 + $0x238] sm:$0xff]  ;;  %v1665_v17 = vld [vmem:[#allocation2 + $0x428] sm:$0xff] }
 0x296   :  { %2295 = vmatprep.subr.bf16.mxu0 %v1429_v47  ;;  %v4752_v47 = vrot.slane %v4668_v2, 2 }
 0x297   :  { %3339 = vmatmul.mubr.msk.bf16.vlgmr.msra.gmra.mrb[36].mxu1 %vm343_vm10, %v4710_v51  ;;  %v1212_v51 = vld [vmem:[#allocation2 + $0x90] sm:$0xff] }
 0x298   :  { %3342 = vmatmul.mubr.msk.bf16.vlgmr.msra.gmra.mrb[36].mxu0 %vm343_vm10, %v4668_v2  ;;  %2168 = vmatpush1.bf16.msra.mxu1 %v1196_v10  ;;  %v1434_v10 = vld [vmem:[#allocation2 + $0x230] sm:$0xff] }
 0x299   :  { %2296 = vmatpush1.bf16.msra.mxu0 %v1428_v56  ;;  %2169 = vmatprep.subr.bf16.mxu1 %v1205_v43  ;;  %v1664_v56 = vld [vmem:[#allocation2 + $0x420] sm:$0xff]  ;;  %v1443_v43 = vld [vmem:[#allocation2 + $0x278] sm:$0xff] }
 0x29a   :  { %2297 = vmatprep.subr.bf16.mxu0 %v1437_v59  ;;  %2199 = vmatprep.mubr.bf16.mxu1 %v5141_v46  ;;  %v1673_v59 = vld [vmem:[#allocation2 + $0x468] sm:$0xff] }
 0x29b   :  { %2327 = vmatprep.mubr.bf16.mxu0 %v5141_v46 }
 0x29c   :  { %2170 = vmatpush1.bf16.msra.mxu1 %v1204_v6  ;;  %v1442_v6 = vld [vmem:[#allocation2 + $0x270] sm:$0xff] }
 0x29d   :  { %2298 = vmatpush1.bf16.msra.mxu0 %v1436_v4  ;;  %2171 = vmatprep.subr.bf16.mxu1 %v1213_v39  ;;  %v1672_v4 = vld [vmem:[#allocation2 + $0x460] sm:$0xff]  ;;  %v1451_v39 = vld [vmem:[#allocation2 + $0x2b8] sm:$0xff] }
 0x29e   :  { %2299 = vmatprep.subr.bf16.mxu0 %v1445_v42  ;;  %v1681_v42 = vld [vmem:[#allocation2 + $0x4a8] sm:$0xff] }
 0x2a0   :  { %2172 = vmatpush1.bf16.msra.mxu1 %v1212_v51  ;;  %v1450_v51 = vld [vmem:[#allocation2 + $0x2b0] sm:$0xff] }
 0x2a1   :  { %2300 = vmatpush1.bf16.msra.mxu0 %v1444_v53  ;;  %2173 = vmatprep.subr.bf16.mxu1 %v1221_v54  ;;  %v1680_v53 = vld [vmem:[#allocation2 + $0x4a0] sm:$0xff]  ;;  %v1459_v54 = vld [vmem:[#allocation2 + $0x2f8] sm:$0xff] }
 0x2a2   :  { %2301 = vmatprep.subr.bf16.mxu0 %v1453_v15  ;;  %v1689_v15 = vld [vmem:[#allocation2 + $0x4e8] sm:$0xff] }
 0x2a4   :  { %2174 = vmatpush1.bf16.msra.mxu1 %v1220_v38  ;;  %v1458_v38 = vld [vmem:[#allocation2 + $0x2f0] sm:$0xff] }
 0x2a5   :  { %2302 = vmatpush1.bf16.msra.mxu0 %v1452_v60  ;;  %2249 = vmatprep.subr.bf16.mxu1 %v1201_v28  ;;  %v1688_v60 = vld [vmem:[#allocation2 + $0x4e0] sm:$0xff]  ;;  %v1663_v28 = vld [vmem:[#allocation2 + $0x418] sm:$0xff] }
 0x2a6   :  { %2377 = vmatprep.subr.bf16.mxu0 %v1433_v33  ;;  %v1893_v33 = vld [vmem:[#allocation2 + $0x608] sm:$0xff] }
 0x2a7   :  { %3341 = vmatmul.mubr.msk.bf16.vlgmr.msra.gmra.mrb[40].mxu1 %vm343_vm10, %v4668_v2 }
 0x2a8   :  { %3344 = vmatmul.mubr.msk.bf16.vlgmr.msra.gmra.mrb[40].mxu0 %vm343_vm10, %v4737_v58  ;;  %2250 = vmatpush1.bf16.msra.mxu1 %v1200_v37  ;;  %v1662_v37 = vld [vmem:[#allocation2 + $0x410] sm:$0xff] }
 0x2a9   :  { %2378 = vmatpush1.bf16.msra.mxu0 %v1432_v40  ;;  %2251 = vmatprep.subr.bf16.mxu1 %v1209_v11  ;;  %v1892_v40 = vld [vmem:[#allocation2 + $0x600] sm:$0xff]  ;;  %v1671_v11 = vld [vmem:[#allocation2 + $0x458] sm:$0xff] }
 0x2aa   :  { %2379 = vmatprep.subr.bf16.mxu0 %v1441_v1  ;;  %2281 = vmatprep.mubr.bf16.mxu1 %v5141_v46  ;;  %v1901_v1 = vld [vmem:[#allocation2 + $0x648] sm:$0xff] }
 0x2ab   :  { %2409 = vmatprep.mubr.bf16.mxu0 %v5141_v46 }
 0x2ac   :  { %2252 = vmatpush1.bf16.msra.mxu1 %v1208_v5  ;;  %v1670_v5 = vld [vmem:[#allocation2 + $0x450] sm:$0xff] }
 0x2ad   :  { %2380 = vmatpush1.bf16.msra.mxu0 %v1440_v3  ;;  %2253 = vmatprep.subr.bf16.mxu1 %v1217_v22  ;;  %v1900_v3 = vld [vmem:[#allocation2 + $0x640] sm:$0xff]  ;;  %v1679_v22 = vld [vmem:[#allocation2 + $0x498] sm:$0xff] }
 0x2ae   :  { %2381 = vmatprep.subr.bf16.mxu0 %v1449_v21  ;;  %v1909_v21 = vld [vmem:[#allocation2 + $0x688] sm:$0xff] }
 0x2b0   :  { %2254 = vmatpush1.bf16.msra.mxu1 %v1216_v23  ;;  %v1908_v23 = vld [vmem:[#allocation2 + $0x680] sm:$0xff] }
 0x2b1   :  { %2382 = vmatpush1.bf16.msra.mxu0 %v1448_v20  ;;  %2255 = vmatprep.subr.bf16.mxu1 %v1225_v61  ;;  %v1687_v20 = vld [vmem:[#allocation2 + $0x4d8] sm:$0xff]  ;;  %v1917_v61 = vld [vmem:[#allocation2 + $0x6c8] sm:$0xff] }
 0x2b2   :  { %2383 = vmatprep.subr.bf16.mxu0 %v1457_v41  ;;  %v1686_v41 = vld [vmem:[#allocation2 + $0x4d0] sm:$0xff] }
 0x2b4   :  { %2256 = vmatpush1.bf16.msra.mxu1 %v1224_v7  ;;  %v1916_v7 = vld [vmem:[#allocation2 + $0x6c0] sm:$0xff] }
 0x2b5   :  { %2384 = vmatpush1.bf16.msra.mxu0 %v1456_v31  ;;  %2336 = vmatprep.subr.bf16.mxu1 %v1431_v44  ;;  %v1667_v31 = vld [vmem:[#allocation2 + $0x438] sm:$0xff]  ;;  %v1897_v44 = vld [vmem:[#allocation2 + $0x628] sm:$0xff] }
 0x2b6   :  { %2463 = vmatprep.subr.bf16.mxu0 %v1661_v30  ;;  %v4767_v30 = vrot.slane %v4668_v2, 3 }
 0x2b7   :  { %3343 = vmatmul.mubr.msk.bf16.vlgmr.msra.gmra.mrb[44].mxu1 %vm343_vm10, %v4668_v2  ;;  %v1674_v2 = vld [vmem:[#allocation2 + $0x470] sm:$0xff] }
 0x2b8   :  { %3346 = vmatmul.mubr.msk.bf16.vlgmr.msra.gmra.mrb[44].mxu0 %vm343_vm10, %v4737_v58  ;;  %2337 = vmatpush1.bf16.msra.mxu1 %v1430_v19  ;;  %v1666_v19 = vld [vmem:[#allocation2 + $0x430] sm:$0xff] }
 0x2b9   :  { %2464 = vmatpush1.bf16.msra.mxu0 %v1660_v52  ;;  %2338 = vmatprep.subr.bf16.mxu1 %v1439_v63  ;;  %v1896_v52 = vld [vmem:[#allocation2 + $0x620] sm:$0xff]  ;;  %v1675_v63 = vld [vmem:[#allocation2 + $0x478] sm:$0xff] }
 0x2ba   :  { %2465 = vmatprep.subr.bf16.mxu0 %v1669_v55  ;;  %2368 = vmatprep.mubr.bf16.mxu1 %v5141_v46  ;;  %v1905_v55 = vld [vmem:[#allocation2 + $0x668] sm:$0xff] }
 0x2bb   :  { %2495 = vmatprep.mubr.bf16.mxu0 %v5141_v46 }
 0x2bc   :  { %2339 = vmatpush1.bf16.msra.mxu1 %v1438_v32  ;;  %v1904_v32 = vld [vmem:[#allocation2 + $0x660] sm:$0xff] }
 0x2bd   :  { %2466 = vmatpush1.bf16.msra.mxu0 %v1668_v12  ;;  %2340 = vmatprep.subr.bf16.mxu1 %v1447_v48  ;;  %v1683_v48 = vld [vmem:[#allocation2 + $0x4b8] sm:$0xff] }
 0x2be   :  { %2467 = vmatprep.subr.bf16.mxu0 %v1677_v27  ;;  %v1913_v27 = vld [vmem:[#allocation2 + $0x6a8] sm:$0xff] }
 0x2c0   :  { %2341 = vmatpush1.bf16.msra.mxu1 %v1446_v45 }
 0x2c1   :  { %2468 = vmatpush1.bf16.msra.mxu0 %v1676_v13  ;;  %2342 = vmatprep.subr.bf16.mxu1 %v1455_v18 }
 0x2c2   :  { %2469 = vmatprep.subr.bf16.mxu0 %v1685_v36 }
 0x2c4   :  { %2343 = vmatpush1.bf16.msra.mxu1 %v1454_v26 }
 0x2c5   :  { %2470 = vmatpush1.bf16.msra.mxu0 %v1684_v62  ;;  %2418 = vmatprep.subr.bf16.mxu1 %v1435_v14  ;;  %v1682_v14 = vld [vmem:[#allocation2 + $0x4b0] sm:$0xff] }
 0x2c6   :  { %2545 = vmatprep.subr.bf16.mxu0 %v1665_v17  ;;  %v1912_v17 = vld [vmem:[#allocation2 + $0x6a0] sm:$0xff] }
 0x2c7   :  { %3345 = vmatmul.mubr.msk.bf16.vlgmr.msra.gmra.mrb[48].mxu1 %vm343_vm10, %v4737_v58 }
 0x2c8   :  { %3348 = vmatmul.mubr.msk.bf16.vlgmr.msra.gmra.mrb[48].mxu0 %vm343_vm10, %v4752_v47  ;;  %2419 = vmatpush1.bf16.msra.mxu1 %v1434_v10 }
 0x2c9   :  { %2546 = vmatpush1.bf16.msra.mxu0 %v1664_v56  ;;  %2420 = vmatprep.subr.bf16.mxu1 %v1443_v43  ;;  %v1691_v56 = vld [vmem:[#allocation2 + $0x4f8] sm:$0xff]  ;;  %v1921_v43 = vld [vmem:[#allocation2 + $0x6e8] sm:$0xff] }
 0x2ca   :  { %2547 = vmatprep.subr.bf16.mxu0 %v1673_v59  ;;  %2450 = vmatprep.mubr.bf16.mxu1 %v5141_v46  ;;  %v1690_v59 = vld [vmem:[#allocation2 + $0x4f0] sm:$0xff] }
 0x2cb   :  { %2577 = vmatprep.mubr.bf16.mxu0 %v5141_v46 }
 0x2cc   :  { %2421 = vmatpush1.bf16.msra.mxu1 %v1442_v6  ;;  %v1920_v6 = vld [vmem:[#allocation2 + $0x6e0] sm:$0xff] }
 0x2cd   :  { %2548 = vmatpush1.bf16.msra.mxu0 %v1672_v4  ;;  %2422 = vmatprep.subr.bf16.mxu1 %v1451_v39  ;;  %v1895_v4 = vld [vmem:[#allocation2 + $0x618] sm:$0xff]  ;;  %v1894_v39 = vld [vmem:[#allocation2 + $0x610] sm:$0xff] }
 0x2ce   :  { %2549 = vmatprep.subr.bf16.mxu0 %v1681_v42  ;;  %v1903_v42 = vld [vmem:[#allocation2 + $0x658] sm:$0xff] }
 0x2d0   :  { %2423 = vmatpush1.bf16.msra.mxu1 %v1450_v51  ;;  %v1902_v51 = vld [vmem:[#allocation2 + $0x650] sm:$0xff] }
 0x2d1   :  { %2550 = vmatpush1.bf16.msra.mxu0 %v1680_v53  ;;  %2424 = vmatprep.subr.bf16.mxu1 %v1459_v54  ;;  %v1911_v54 = vld [vmem:[#allocation2 + $0x698] sm:$0xff] }
 0x2d2   :  { %2551 = vmatprep.subr.bf16.mxu0 %v1689_v15 }
 0x2d4   :  { %2425 = vmatpush1.bf16.msra.mxu1 %v1458_v38 }
 0x2d5   :  { %2552 = vmatpush1.bf16.msra.mxu0 %v1688_v60  ;;  %2504 = vmatprep.subr.bf16.mxu1 %v1663_v28 }
 0x2d6   :  { %2631 = vmatprep.subr.bf16.mxu0 %v1893_v33 }
 0x2d7   :  { %3347 = vmatmul.mubr.msk.bf16.vlgmr.msra.gmra.mrb[52].mxu1 %vm343_vm10, %v4737_v58  ;;  %v1678_v58 = vld [vmem:[#allocation2 + $0x490] sm:$0xff] }
 0x2d8   :  { %3350 = vmatmul.mubr.msk.bf16.vlgmr.msra.gmra.mrb[52].mxu0 %vm343_vm10, %v4752_v47  ;;  %2505 = vmatpush1.bf16.msra.mxu1 %v1662_v37  ;;  %v1910_v37 = vld [vmem:[#allocation2 + $0x690] sm:$0xff] }
 0x2d9   :  { %2632 = vmatpush1.bf16.msra.mxu0 %v1892_v40  ;;  %2506 = vmatprep.subr.bf16.mxu1 %v1671_v11  ;;  %v1919_v11 = vld [vmem:[#allocation2 + $0x6d8] sm:$0xff] }
 0x2da   :  { %2633 = vmatprep.subr.bf16.mxu0 %v1901_v1  ;;  %2536 = vmatprep.mubr.bf16.mxu1 %v5141_v46  ;;  %v1918_v1 = vld [vmem:[#allocation2 + $0x6d0] sm:$0xff] }
 0x2db   :  { %2663 = vmatprep.mubr.bf16.mxu0 %v5141_v46 }
 0x2dc   :  { %2507 = vmatpush1.bf16.msra.mxu1 %v1670_v5  ;;  %v1899_v5 = vld [vmem:[#allocation2 + $0x638] sm:$0xff] }
 0x2dd   :  { %2634 = vmatpush1.bf16.msra.mxu0 %v1900_v3  ;;  %2508 = vmatprep.subr.bf16.mxu1 %v1679_v22  ;;  %v1898_v3 = vld [vmem:[#allocation2 + $0x630] sm:$0xff]  ;;  %v1907_v22 = vld [vmem:[#allocation2 + $0x678] sm:$0xff] }
 0x2de   :  { %2635 = vmatprep.subr.bf16.mxu0 %v1909_v21  ;;  %v1906_v21 = vld [vmem:[#allocation2 + $0x670] sm:$0xff] }
 0x2e0   :  { %2509 = vmatpush1.bf16.msra.mxu1 %v1678_v58 }
 0x2e1   :  { %2636 = vmatpush1.bf16.msra.mxu0 %v1908_v23  ;;  %2510 = vmatprep.subr.bf16.mxu1 %v1687_v20  ;;  %v1915_v23 = vld [vmem:[#allocation2 + $0x6b8] sm:$0xff] }
 0x2e2   :  { %2637 = vmatprep.subr.bf16.mxu0 %v1917_v61 }
 0x2e4   :  { %2511 = vmatpush1.bf16.msra.mxu1 %v1686_v41 }
 0x2e5   :  { %2638 = vmatpush1.bf16.msra.mxu0 %v1916_v7  ;;  %2586 = vmatprep.subr.bf16.mxu1 %v1667_v31 }
 0x2e6   :  { %2713 = vmatprep.subr.bf16.mxu0 %v1897_v44 }
 0x2e7   :  { %3349 = vmatmul.mubr.msk.bf16.vlgmr.msra.gmra.mrb[56].mxu1 %vm343_vm10, %v4752_v47 }
 0x2e8   :  { %3352 = vmatmul.mubr.msk.bf16.vlgmr.msra.gmra.mrb[56].mxu0 %vm343_vm10, %v4767_v30  ;;  %2587 = vmatpush1.bf16.msra.mxu1 %v1666_v19  ;;  %v1914_v19 = vld [vmem:[#allocation2 + $0x6b0] sm:$0xff] }
 0x2e9   :  { %2714 = vmatpush1.bf16.msra.mxu0 %v1896_v52  ;;  %2588 = vmatprep.subr.bf16.mxu1 %v1675_v63  ;;  %v1923_v63 = vld [vmem:[#allocation2 + $0x6f8] sm:$0xff] }
 0x2ea   :  { %2715 = vmatprep.subr.bf16.mxu0 %v1905_v55  ;;  %v4773_v12 = vpop.f32.mrb[4].mxu1  ;;  %2618 = vmatprep.mubr.bf16.mxu1 %v5141_v46 }
 0x2eb   :  { %2745 = vmatprep.mubr.bf16.mxu0 %v5141_v46  ;;  %v4777_v45 = vpop.f32.mrb[4].mxu0  ;;  %v4779_v13 = vpop.f32.mrb[5].mxu1 }
 0x2ec   :  { %v4781_v18 = vpop.f32.mrb[5].mxu0  ;;  %v1302_v36 = vpop.f32.mrb[6].mxu1  ;;  %2589 = vmatpush1.bf16.msra.mxu1 %v1674_v2 }
 0x2ed   :  { %2716 = vmatpush1.bf16.msra.mxu0 %v1904_v32  ;;  %v1384_v26 = vpop.f32.mrb[6].mxu0  ;;  %v1303_v62 = vpop.f32.mrb[7].mxu1  ;;  %2590 = vmatprep.subr.bf16.mxu1 %v1683_v48 }
 0x2ee   :  { %2717 = vmatprep.subr.bf16.mxu0 %v1913_v27  ;;  %v1385_v10 = vpop.f32.mrb[7].mxu0 }
 0x2f0   :  { %2591 = vmatpush1.bf16.msra.mxu1 %v1682_v14 }
 0x2f1   :  { %2718 = vmatpush1.bf16.msra.mxu0 %v1912_v17  ;;  %2592 = vmatprep.subr.bf16.mxu1 %v1691_v56 }
 0x2f2   :  { %2719 = vmatprep.subr.bf16.mxu0 %v1921_v43 }
 0x2f4   :  { %2593 = vmatpush1.bf16.msra.mxu1 %v1690_v59 }
 0x2f5   :  { %2720 = vmatpush1.bf16.msra.mxu0 %v1920_v6  ;;  %2672 = vmatprep.subr.bf16.mxu1 %v1895_v4 }
 0x2f6   :  { %3407 = vmatprep.subr.bf16.mxu0 %v3874_v8 }
 0x2f7   :  { %3351 = vmatmul.mubr.msk.bf16.vlgmr.msra.gmra.mrb[60].mxu1 %vm343_vm10, %v4752_v47 }
 0x2f8   :  { %3354 = vmatmul.mubr.msk.bf16.vlgmr.msra.gmra.mrb[60].mxu0 %vm343_vm10, %v4767_v30  ;;  %2673 = vmatpush1.bf16.msra.mxu1 %v1894_v39 }
 0x2f9   :  { %2704 = vmatprep.mubr.bf16.mxu1 %v5141_v46  ;;  %2674 = vmatprep.subr.bf16.mxu1 %v1903_v42 }
 0x2fa   :  { %v4788_v53 = vpop.f32.mrb[8].mxu1 }
 0x2fb   :  { %v4790_v15 = vpop.f32.mrb[8].mxu0  ;;  %v4792_v38 = vpop.f32.mrb[9].mxu1 }
 0x2fc   :  { %v4794_v60 = vpop.f32.mrb[9].mxu0  ;;  %v1343_v28 = vpop.f32.mrb[10].mxu1  ;;  %2675 = vmatpush1.bf16.msra.mxu1 %v1902_v51 }
 0x2fd   :  { %v1534_v47 = vpop.f32.mrb[10].mxu0  ;;  %v1344_v33 = vpop.f32.mrb[11].mxu1  ;;  %2676 = vmatprep.subr.bf16.mxu1 %v1911_v54 }
 0x2fe   :  { %v1535_v40 = vpop.f32.mrb[11].mxu0 }
 0x300   :  { %2677 = vmatpush1.bf16.msra.mxu1 %v1910_v37 }
 0x301   :  { %2678 = vmatprep.subr.bf16.mxu1 %v1919_v11 }
 0x304   :  { %2679 = vmatpush1.bf16.msra.mxu1 %v1918_v1 }
 0x305   :  { %2754 = vmatprep.subr.bf16.mxu1 %v1899_v5 }
 0x307   :  { %3353 = vmatmul.mubr.msk.bf16.vlgmr.msra.gmra.mrb[64].mxu1 %vm343_vm10, %v4767_v30 }
 0x308   :  { %2755 = vmatpush1.bf16.msra.mxu1 %v1898_v3  ;;  %2786 = vmatprep.mubr.bf16.mxu1 %v5141_v46  ;;  %v1922_v46 = vld [vmem:[#allocation2 + $0x6f0] sm:$0xff] }
 0x309   :  { %2756 = vmatprep.subr.bf16.mxu1 %v1907_v22 }
 0x30a   :  { %v4799_v58 = vpop.f32.mrb[12].mxu1 }
 0x30b   :  { %v4801_v20 = vpop.f32.mrb[12].mxu0  ;;  %v4803_v61 = vpop.f32.mrb[13].mxu1 }
 0x30c   :  { %v4805_v41 = vpop.f32.mrb[13].mxu0  ;;  %v1425_v7 = vpop.f32.mrb[14].mxu1  ;;  %2757 = vmatpush1.bf16.msra.mxu1 %v1906_v21 }
 0x30d   :  { %v1616_v31 = vpop.f32.mrb[14].mxu0  ;;  %v1426_v44 = vpop.f32.mrb[15].mxu1  ;;  %2758 = vmatprep.subr.bf16.mxu1 %v1915_v23 }
 0x30e   :  { %v1617_v52 = vpop.f32.mrb[15].mxu0 }
 0x310   :  { %2759 = vmatpush1.bf16.msra.mxu1 %v1914_v19 }
 0x311   :  { %2760 = vmatprep.subr.bf16.mxu1 %v1923_v63 }
 0x314   :  { %2761 = vmatpush1.bf16.msra.mxu1 %v1922_v46 }
 0x315   :  { %3429 = vmatprep.subr.bf16.mxu1 %v3954_v24 }
 0x317   :  { %3355 = vmatmul.mubr.msk.bf16.vlgmr.msra.gmra.mrb[68].mxu1 %vm343_vm10, %v4767_v30 }
 0x31a   :  { %v4809_v55 = vpop.f32.mrb[16].mxu1 }
 0x31b   :  { %v4811_v2 = vpop.f32.mrb[16].mxu0  ;;  %v4813_v32 = vpop.f32.mrb[17].mxu1 }
 0x31c   :  { %v4815_v48 = vpop.f32.mrb[17].mxu0  ;;  %v1575_v27 = vpop.f32.mrb[18].mxu1 }
 0x31d   :  { %v1766_v36 = vpop.f32.mrb[18].mxu0  ;;  %v1576_v26 = vpop.f32.mrb[19].mxu1 }
 0x31e   :  { %v1767_v62 = vpop.f32.mrb[19].mxu0 }
 0x32a   :  { %v4817_v14 = vpop.f32.mrb[20].mxu1 }
 0x32b   :  { %v4819_v17 = vpop.f32.mrb[20].mxu0  ;;  %v4821_v10 = vpop.f32.mrb[21].mxu1 }
 0x32c   :  { %v4823_v56 = vpop.f32.mrb[21].mxu0  ;;  %v1657_v30 = vpop.f32.mrb[22].mxu1 }
 0x32d   :  { %v1848_v43 = vpop.f32.mrb[22].mxu0  ;;  %v1658_v59 = vpop.f32.mrb[23].mxu1 }
 0x32e   :  { %v1849_v6 = vpop.f32.mrb[23].mxu0 }
 0x33a   :  { %v4825_v4 = vpop.f32.mrb[24].mxu1 }
 0x33b   :  { %v4827_v39 = vpop.f32.mrb[24].mxu0  ;;  %v4829_v42 = vpop.f32.mrb[25].mxu1 }
 0x33c   :  { %v4831_v51 = vpop.f32.mrb[25].mxu0  ;;  %v1807_v54 = vpop.f32.mrb[26].mxu1 }
 0x33d   :  { %v1998_v28 = vpop.f32.mrb[26].mxu0  ;;  %v1808_v47 = vpop.f32.mrb[27].mxu1 }
 0x33e   :  { %v1999_v33 = vpop.f32.mrb[27].mxu0 }
 0x34a   :  { %v4833_v37 = vpop.f32.mrb[28].mxu1 }
 0x34b   :  { %v4835_v40 = vpop.f32.mrb[28].mxu0  ;;  %v4837_v11 = vpop.f32.mrb[29].mxu1 }
 0x34c   :  { %v4839_v1 = vpop.f32.mrb[29].mxu0  ;;  %v1889_v5 = vpop.f32.mrb[30].mxu1 }
 0x34d   :  { %v2080_v3 = vpop.f32.mrb[30].mxu0  ;;  %v1890_v22 = vpop.f32.mrb[31].mxu1 }
 0x34e   :  { %v2081_v21 = vpop.f32.mrb[31].mxu0 }
 0x35a   :  { %v4841_v23 = vpop.f32.mrb[32].mxu1 }
 0x35b   :  { %v2160_v7 = vpop.f32.mrb[32].mxu0  ;;  %v4844_v44 = vpop.f32.mrb[33].mxu1 }
 0x35c   :  { %v2161_v31 = vadd.f32 %v2160_v7, %v4773_v12  ;;  %v2162_v19 = vpop.f32.mrb[33].mxu0  ;;  %v2039_v63 = vpop.f32.mrb[34].mxu1 }
 0x35d   :  { %v2163_v52 = vadd.f32 %v2162_v19, %v4779_v13  ;;  %v2164_v46 = vpop.f32.mrb[34].mxu0  ;;  %v2040_v27 = vpop.f32.mrb[35].mxu1 }
 0x35e   :  { %v2165_v36 = vpop.f32.mrb[35].mxu0 }
 0x36a   :  { %v4847_v26 = vpop.f32.mrb[36].mxu1 }
 0x36b   :  { %v2242_v62 = vpop.f32.mrb[36].mxu0  ;;  %v4850_v43 = vpop.f32.mrb[37].mxu1 }
 0x36c   :  { %v2243_v30 = vadd.f32 %v2242_v62, %v4777_v45  ;;  %v2244_v59 = vpop.f32.mrb[37].mxu0  ;;  %v2121_v12 = vpop.f32.mrb[38].mxu1 }
 0x36d   :  { %v2245_v6 = vadd.f32 %v2244_v59, %v4781_v18  ;;  %v2246_v54 = vpop.f32.mrb[38].mxu0  ;;  %v2122_v28 = vpop.f32.mrb[39].mxu1 }
 0x36e   :  { %v2247_v47 = vpop.f32.mrb[39].mxu0 }
 0x37a   :  { %v2201_v33 = vpop.f32.mrb[40].mxu1 }
 0x37b   :  { %v2329_v13 = vpop.f32.mrb[40].mxu0  ;;  %v2202_v5 = vadd.f32 %v2201_v33, %v4788_v53  ;;  %v2203_v22 = vpop.f32.mrb[41].mxu1 }
 0x37c   :  { %v2330_v3 = vadd.f32 %v2329_v13, %v4790_v15  ;;  %v2331_v21 = vpop.f32.mrb[41].mxu0  ;;  %v2204_v7 = vadd.f32 %v2203_v22, %v4792_v38  ;;  %v2205_v19 = vpop.f32.mrb[42].mxu1 }
 0x37d   :  { %v2332_v45 = vadd.f32 %v2331_v21, %v4794_v60  ;;  %v2333_v63 = vpop.f32.mrb[42].mxu0  ;;  %v2206_v18 = vpop.f32.mrb[43].mxu1 }
 0x37e   :  { %v4857_v46 = vadd.f32 %v2330_v3, %v2161_v31  ;;  %v2334_v27 = vpop.f32.mrb[43].mxu0 }
 0x37f   :  { %v2796_v36 = vadd.f32 %v2332_v45, %v2163_v52 }
 0x38a   :  { %v2283_v62 = vpop.f32.mrb[44].mxu1 }
 0x38b   :  { %v2411_v59 = vpop.f32.mrb[44].mxu0  ;;  %v2284_v12 = vadd.f32 %v2283_v62, %v4799_v58  ;;  %v2285_v15 = vpop.f32.mrb[45].mxu1 }
 0x38c   :  { %v2412_v53 = vadd.f32 %v2411_v59, %v4801_v20  ;;  %v2413_v54 = vpop.f32.mrb[45].mxu0  ;;  %v2286_v28 = vadd.f32 %v2285_v15, %v4803_v61  ;;  %v2287_v60 = vpop.f32.mrb[46].mxu1 }
 0x38d   :  { %v2414_v38 = vadd.f32 %v2413_v54, %v4805_v41  ;;  %v2415_v47 = vpop.f32.mrb[46].mxu0  ;;  %v2288_v31 = vpop.f32.mrb[47].mxu1 }
 0x38e   :  { %v4863_v33 = vadd.f32 %v2412_v53, %v2243_v30  ;;  %v2416_v13 = vpop.f32.mrb[47].mxu0 }
 0x38f   :  { %v4865_v3 = vadd.f32 %v2414_v38, %v2245_v6 }
 0x39a   :  { %v2370_v52 = vpop.f32.mrb[48].mxu1 }
 0x39b   :  { %v2497_v22 = vpop.f32.mrb[48].mxu0  ;;  %v2371_v58 = vadd.f32 %v2370_v52, %v4809_v55  ;;  %v2372_v21 = vpop.f32.mrb[49].mxu1 }
 0x39c   :  { %v2498_v20 = vadd.f32 %v2497_v22, %v4811_v2  ;;  %v2499_v45 = vpop.f32.mrb[49].mxu0  ;;  %v2373_v61 = vadd.f32 %v2372_v21, %v4813_v32  ;;  %v2374_v19 = vpop.f32.mrb[50].mxu1 }
 0x39d   :  { %v2500_v41 = vadd.f32 %v2499_v45, %v4815_v48  ;;  %v2501_v63 = vpop.f32.mrb[50].mxu0  ;;  %v4871_v30 = vadd.f32 %v2371_v58, %v2202_v5  ;;  %v2375_v18 = vpop.f32.mrb[51].mxu1 }
 0x39e   :  { %v2502_v27 = vpop.f32.mrb[51].mxu0  ;;  %v4873_v6 = vadd.f32 %v2373_v61, %v2204_v7 }
 0x3aa   :  { %v2452_v62 = vpop.f32.mrb[52].mxu1 }
 0x3ab   :  { %v2579_v59 = vpop.f32.mrb[52].mxu0  ;;  %v2453_v55 = vadd.f32 %v2452_v62, %v4817_v14  ;;  %v2454_v53 = vpop.f32.mrb[53].mxu1  ;;  %v4886_v14 = vld [vmem:[%s5068_s11] sm:$0xff] }
 0x3ac   :  { %v2580_v2 = vadd.f32 %v2579_v59, %v4819_v17  ;;  %v2581_v15 = vpop.f32.mrb[53].mxu0  ;;  %v2455_v32 = vadd.f32 %v2454_v53, %v4821_v10  ;;  %v2456_v54 = vpop.f32.mrb[54].mxu1  ;;  %v2824_v45 = vrot.slane %v4886_v14, %v4392_v49 }
 0x3ad   :  { %v2582_v48 = vadd.f32 %v2581_v15, %v4823_v56  ;;  %v2583_v38 = vpop.f32.mrb[54].mxu0  ;;  %v4879_v5 = vadd.f32 %v2453_v55, %v2284_v12  ;;  %v2457_v60 = vpop.f32.mrb[55].mxu1  ;;  %v5150_v54 = vsub.s32 4, %v4379_v35 }
 0x3ae   :  { %v2584_v47 = vpop.f32.mrb[55].mxu0  ;;  %v4881_v7 = vadd.f32 %v2455_v32, %v2286_v28 }
 0x3af   :  { %v2840_v38 = vrot.slane %v4886_v14, %v5150_v54 }
 0x3ba   :  { %v2538_v31 = vpop.f32.mrb[56].mxu1 }
 0x3bb   :  { %v2665_v13 = vpop.f32.mrb[56].mxu0  ;;  %v2539_v17 = vadd.f32 %v2538_v31, %v4825_v4  ;;  %v2540_v56 = vpop.f32.mrb[57].mxu1  ;;  %v2828_v4 = vrot.slane %v4886_v14, %v4388_v34 }
 0x3bc   :  { %v2666_v10 = vadd.f32 %v2665_v13, %v4827_v39  ;;  %v2667_v52 = vpop.f32.mrb[57].mxu0  ;;  %v2541_v12 = vadd.f32 %v2540_v56, %v4829_v42  ;;  %v2542_v58 = vpop.f32.mrb[58].mxu1 }
 0x3bd   :  { %v2668_v22 = vadd.f32 %v2667_v52, %v4831_v51  ;;  %v2669_v28 = vpop.f32.mrb[58].mxu0  ;;  %v2543_v61 = vpop.f32.mrb[59].mxu1 }
 0x3be   :  { %v2803_v21 = vadd.f32 %v2666_v10, %v2498_v20  ;;  %v2670_v19 = vpop.f32.mrb[59].mxu0 }
 0x3bf   :  { %v2804_v63 = vadd.f32 %v2668_v22, %v2500_v41  ;;  %v2835_v22 = vsub.s32 3, %v4379_v35 }
 0x3c0   :  { %v2811_v39 = vadd.f32 %v2803_v21, %v4857_v46 }
 0x3c1   :  { %v2812_v18 = vadd.f32 %v2804_v63, %v2796_v36  ;;  %v2836_v19 = vrot.slane %v4886_v14, %v2835_v22 }
 0x3c2   :  { %v4897_v27 = vadd.f32 %v2824_v45, %v2811_v39 }
 0x3c3   :  { %v2862_v42 = vadd.f32 %v2828_v4, %v2812_v18 }
 0x3c4   :  { %v2869_v51 = vmax.f32 %v4897_v27, 0.0 }
 0x3c5   :  { %v2870_v62 = vmax.f32 %v2862_v42, 0.0 }
 0x3ca   :  { %v2620_v59 = vpop.f32.mrb[60].mxu1 }
 0x3cb   :  { %v2747_v20 = vpop.f32.mrb[60].mxu0  ;;  %v2621_v55 = vadd.f32 %v2620_v59, %v4833_v37  ;;  %v2622_v53 = vpop.f32.mrb[61].mxu1  ;;  %v5151_v37 = vsub.s32 5, %v4379_v35 }
 0x3cc   :  { %v2748_v49 = vadd.f32 %v2747_v20, %v4835_v40  ;;  %v2749_v41 = vpop.f32.mrb[61].mxu0  ;;  %v2623_v15 = vadd.f32 %v2622_v53, %v4837_v11  ;;  %v2624_v46 = vpop.f32.mrb[62].mxu1  ;;  %v5152_v53 = vsub.s32 6, %v4379_v35 }
 0x3cd   :  { %v2750_v34 = vadd.f32 %v2749_v41, %v4839_v1  ;;  %v2751_v36 = vpop.f32.mrb[62].mxu0  ;;  %v2625_v60 = vpop.f32.mrb[63].mxu1  ;;  %v2844_v40 = vrot.slane %v4886_v14, %v5151_v37 }
 0x3ce   :  { %v2807_v32 = vadd.f32 %v2748_v49, %v2580_v2  ;;  %v2752_v47 = vpop.f32.mrb[63].mxu0 }
 0x3cf   :  { %v2808_v31 = vadd.f32 %v2750_v34, %v2582_v48 }
 0x3d0   :  { %v2815_v13 = vadd.f32 %v2807_v32, %v4863_v33 }
 0x3d1   :  { %v2816_v11 = vadd.f32 %v2808_v31, %v4865_v3  ;;  %v2832_v3 = vrot.slane %v4886_v14, %v4436_v29 }
 0x3d2   :  { %v4912_v10 = vadd.f32 %v2840_v38, %v2815_v13 }
 0x3d3   :  { %v4914_v1 = vadd.f32 %v2844_v40, %v2816_v11 }
 0x3d4   :  { %v2873_v2 = vmax.f32 %v4912_v10, 0.0 }
 0x3d5   :  { %v2874_v56 = vmax.f32 %v4914_v1, 0.0 }
 0x3da   :  { %v2706_v52 = vpop.f32.mrb[64].mxu1 }
 0x3db   :  { %v2707_v48 = vadd.f32 %v2706_v52, %v4841_v23  ;;  %v2708_v58 = vpop.f32.mrb[65].mxu1 }
 0x3dc   :  { %v2709_v28 = vadd.f32 %v2708_v58, %v4844_v44  ;;  %v2710_v21 = vpop.f32.mrb[66].mxu1  ;;  %v2851_v44 = vsub.s32 7, %v4379_v35  ;;  %v2882_v35 = vpack.c.bf16 %v2870_v62, %v2870_v62 }
 0x3dd   :  { %v2805_v33 = vadd.f32 %v2707_v48, %v2539_v17  ;;  %v2711_v45 = vpop.f32.mrb[67].mxu1 }
 0x3de   :  { %v2806_v61 = vadd.f32 %v2709_v28, %v2541_v12  ;;  %v2852_v34 = vrot.slane %v4886_v14, %v2851_v44 }
 0x3df   :  { %v2813_v63 = vadd.f32 %v2805_v33, %v4871_v30  ;;  %v2848_v30 = vrot.slane %v4886_v14, %v5152_v53 }
 0x3e0   :  { %v2814_v4 = vadd.f32 %v2806_v61, %v4873_v6 }
 0x3e1   :  { %v2863_v39 = vadd.f32 %v2832_v3, %v2813_v63 }
 0x3e2   :  { %v2864_v18 = vadd.f32 %v2836_v19, %v2814_v4 }
 0x3e3   :  { %v2871_v42 = vmax.f32 %v2863_v39, 0.0 }
 0x3e4   :  { %v2872_v23 = vmax.f32 %v2864_v18, 0.0 }
 0x3ea   :  { %v2788_v59 = vpop.f32.mrb[68].mxu1 }
 0x3eb   :  { %v2789_v17 = vadd.f32 %v2788_v59, %v4847_v26  ;;  %v2790_v20 = vpop.f32.mrb[69].mxu1 }
 0x3ec   :  { %v2791_v29 = vadd.f32 %v2790_v20, %v4850_v43  ;;  %v2792_v49 = vpop.f32.mrb[70].mxu1 }
 0x3ed   :  { %v2809_v12 = vadd.f32 %v2789_v17, %v2621_v55  ;;  %v2793_v41 = vpop.f32.mrb[71].mxu1  ;;  %v2884_v55 = vpack.c.bf16 %v2872_v23, %v2872_v23 }
 0x3ee   :  { %v2810_v6 = vadd.f32 %v2791_v29, %v2623_v15 }
 0x3ef   :  { %v2817_v46 = vadd.f32 %v2809_v12, %v4879_v5 }
 0x3f0   :  { %v2818_v36 = vadd.f32 %v2810_v6, %v4881_v7 }
 0x3f1   :  { %v4935_v32 = vadd.f32 %v2848_v30, %v2817_v46 }
 0x3f2   :  { %v2868_v26 = vadd.f32 %v2852_v34, %v2818_v36 }
 0x3f3   :  { %v2875_v54 = vmax.f32 %v4935_v32, 0.0 }
 0x3f4   :  { %v2876_v43 = vmax.f32 %v2868_v26, 0.0 }
 0x3f5   :  { %3693 = dma.done.wait [#allocation4 + $0x1], 8192 }
 0x3f6   :  { %3694 = vsyncadd [#allocation4 + $0x1], 4294959104  ;;  %3408 = vmatpush3.bf16.msra.mxu0 %v3834_v0  ;;  %3430 = vmatpush3.bf16.msra.mxu1 %v3914_v16  ;;  %v5153_v5 = vld [vmem:[#allocation10_spill] sm:$0xff]  ;;  %v5154_v7 = vld [vmem:[#allocation23_spill] sm:$0xff]  ;;  %v2881_v21 = vpack.c.bf16 %v2869_v51, %v2869_v51  ;;  %v2883_v33 = vpack.c.bf16 %v2871_v42, %v2871_v42  ;;  %v2886_v63 = vpack.c.bf16 %v2874_v56, %v2874_v56  ;;  %vm3123_vm13 = vcmask 392192  }
 0x3f7   :  { %3409 = vmatprep.subr.bf16.mxu0 %v3879_v9  ;;  %3431 = vmatprep.subr.bf16.mxu1 %v3959_v25  ;;  %v5155_v8 = vld [vmem:[#allocation17_spill] sm:$0xff]  ;;  %v5156_v24 = vld [vmem:[#allocation30_spill] sm:$0xff]  ;;  %v5157_v14 = vld [vmem:[#allocation11_spill] sm:$0xff]  ;;  %v2888_v4 = vpack.c.bf16 %v2876_v43, %v2876_v43  ;;  %vm3197_vm14 = vcmask 130048   ;;  %vm3284_vm15 = vcmp.lt.s32.totalorder %v4385_v50, 4  ;;  %vm3286_vm0 = vcmask 57344  }
 0x3f8   :  { %2986 = vmatprep.mubr.bf16.mxu0 %v2882_v35  ;;  %3026 = vmatprep.mubr.bf16.mxu1 %v2884_v55  ;;  %v5158_v62 = vld [vmem:[#allocation24_spill] sm:$0xff]  ;;  %v5159_v0 = vld [vmem:[#allocation18_spill] sm:$0xff]  ;;  %v5160_v16 = vld [vmem:[#allocation31_spill] sm:$0xff] }
 0x3f9   :  { %v5161_v9 = vld [vmem:[#allocation12_spill] sm:$0xff]  ;;  %v5162_v25 = vld [vmem:[#allocation25_spill] sm:$0xff]  ;;  %v5163_v15 = vld [vmem:[#allocation19_spill] sm:$0xff] }
 0x3fa   :  { %3410 = vmatpush3.bf16.msra.mxu0 %v5153_v5  ;;  %3432 = vmatpush3.bf16.msra.mxu1 %v5154_v7  ;;  %v5164_v38 = vld [vmem:[#allocation32_spill] sm:$0xff]  ;;  %v5165_v60 = vld [vmem:[#allocation13_spill] sm:$0xff]  ;;  %v5166_v47 = vld [vmem:[#allocation26_spill] sm:$0xff] }
 0x3fb   :  { %3411 = vmatprep.subr.bf16.mxu0 %v5155_v8  ;;  %3433 = vmatprep.subr.bf16.mxu1 %v5156_v24  ;;  %v5167_v31 = vld [vmem:[#allocation20_spill] sm:$0xff]  ;;  %v5168_v37 = vld [vmem:[#allocation33_spill] sm:$0xff]  ;;  %v5169_v40 = vld [vmem:[#allocation14_spill] sm:$0xff]  ;;  %v2885_v8 = vpack.c.bf16 %v2873_v2, %v2873_v2  ;;  %v2887_v24 = vpack.c.bf16 %v2875_v54, %v2875_v54 }
 0x3fc   :  { %v5170_v13 = vld [vmem:[#allocation27_spill] sm:$0xff]  ;;  %v5171_v11 = vld [vmem:[#allocation21_spill] sm:$0xff]  ;;  %v5172_v52 = vld [vmem:[#allocation34_spill] sm:$0xff] }
 0x3fd   :  { %v5173_v22 = vld [vmem:[#allocation15_spill] sm:$0xff]  ;;  %v5174_v48 = vld [vmem:[#allocation28_spill] sm:$0xff]  ;;  %v5175_v58 = vld [vmem:[#allocation22_spill] sm:$0xff] }
 0x3fe   :  { %3412 = vmatpush3.bf16.msra.mxu0 %v5157_v14  ;;  %3434 = vmatpush3.bf16.msra.mxu1 %v5158_v62  ;;  %v5176_v28 = vld [vmem:[#allocation35_spill] sm:$0xff]  ;;  %v5177_v3 = vld [vmem:[#allocation16_spill] sm:$0xff]  ;;  %v5178_v45 = vld [vmem:[#allocation29_spill] sm:$0xff] }
 0x3ff   :  { %3413 = vmatprep.subr.bf16.mxu0 %v5159_v0  ;;  %3435 = vmatprep.subr.bf16.mxu1 %v5160_v16  ;;  %v5179_v61 = vld [vmem:[#allocation44_spill] sm:$0xff]  ;;  %v5183_v51 = vld [vmem:[#allocation45_spill] sm:$0xff]  ;;  %v5187_v1 = vld [vmem:[#allocation46_spill] sm:$0xff]  ;;  %v5211_v0 = vmov 0.0|0.0   ;;  %v5212_v16 = vmov 0.0  }
 0x400   :  { %v5180_v19 = vld [vmem:[#allocation60_spill] sm:$0xff]  ;;  %v5184_v18 = vld [vmem:[#allocation61_spill] sm:$0xff]  ;;  %v5188_v56 = vld [vmem:[#allocation62_spill] sm:$0xff] }
 0x401   :  { %v5181_v39 = vld [vmem:[#allocation36_spill] sm:$0xff]  ;;  %v5185_v42 = vld [vmem:[#allocation37_spill] sm:$0xff]  ;;  %v5189_v59 = vld [vmem:[#allocation38_spill] sm:$0xff] }
 0x402   :  { %3414 = vmatpush3.bf16.msra.mxu0 %v5161_v9  ;;  %3436 = vmatpush3.bf16.msra.mxu1 %v5162_v25  ;;  %v5182_v27 = vld [vmem:[#allocation52_spill] sm:$0xff]  ;;  %v5186_v23 = vld [vmem:[#allocation53_spill] sm:$0xff]  ;;  %v5190_v44 = vld [vmem:[#allocation54_spill] sm:$0xff] }
 0x403   :  { %3415 = vmatprep.subr.bf16.mxu0 %v5163_v15  ;;  %3437 = vmatprep.subr.bf16.mxu1 %v5164_v38  ;;  %v5191_v17 = vld [vmem:[#allocation47_spill] sm:$0xff]  ;;  %v5195_v12 = vld [vmem:[#allocation48_spill] sm:$0xff]  ;;  %v5199_v6 = vld [vmem:[#allocation49_spill] sm:$0xff] }
 0x404   :  { %v5192_v20 = vld [vmem:[#allocation63_spill] sm:$0xff]  ;;  %v5196_v53 = vld [vmem:[#allocation64_spill] sm:$0xff]  ;;  %v5200_v34 = vld [vmem:[#allocation65_spill] sm:$0xff] }
 0x405   :  { %v5193_v29 = vld [vmem:[#allocation39_spill] sm:$0xff]  ;;  %v5197_v30 = vld [vmem:[#allocation40_spill] sm:$0xff]  ;;  %v5201_v46 = vld [vmem:[#allocation41_spill] sm:$0xff] }
 0x406   :  { %3416 = vmatpush3.bf16.msra.mxu0 %v5165_v60  ;;  %3438 = vmatpush3.bf16.msra.mxu1 %v5166_v47  ;;  %v5194_v49 = vld [vmem:[#allocation55_spill] sm:$0xff]  ;;  %v5198_v41 = vld [vmem:[#allocation56_spill] sm:$0xff]  ;;  %v5202_v36 = vld [vmem:[#allocation57_spill] sm:$0xff] }
 0x407   :  { %3417 = vmatprep.subr.bf16.mxu0 %v5167_v31  ;;  %3439 = vmatprep.subr.bf16.mxu1 %v5168_v37  ;;  %v5203_v26 = vld [vmem:[#allocation50_spill] sm:$0xff]  ;;  %v5207_v5 = vld [vmem:[#allocation51_spill] sm:$0xff]  ;;  %v3117_v10 = vld [vmem:[%s5071_s14 + $0x10] sm:$0xff] }
 0x408   :  { %v5204_v43 = vld [vmem:[#allocation66_spill] sm:$0xff]  ;;  %v5208_v7 = vld [vmem:[#allocation67_spill] sm:$0xff]  ;;  %v3118_v2 = vld [vmem:[%s5071_s14 + $0x18] sm:$0xff] }
 0x409   :  { %v5205_v35 = vld [vmem:[#allocation42_spill] sm:$0xff]  ;;  %v5209_v14 = vld [vmem:[#allocation43_spill] sm:$0xff]  ;;  %v3596_v32 = vpack.c.bf16 %v3118_v2, %v3117_v10  ;;  %v3121_v15 = vld [vmem:[%s5071_s14 + $0x30] sm:$0xff] }
 0x40a   :  { %3418 = vmatpush3.bf16.msra.mxu0 %v5169_v40  ;;  %3440 = vmatpush3.bf16.msra.mxu1 %v5170_v13  ;;  %v5206_v55 = vld [vmem:[#allocation58_spill] sm:$0xff]  ;;  %v5210_v62 = vld [vmem:[#allocation59_spill] sm:$0xff]  ;;  %v3122_v38 = vld [vmem:[%s5071_s14 + $0x38] sm:$0xff] }
 0x40b   :  { %3419 = vmatprep.subr.bf16.mxu0 %v5171_v11  ;;  %3441 = vmatprep.subr.bf16.mxu1 %v5172_v52  ;;  %v3119_v54 = vld [vmem:[%s5071_s14 + $0x20] sm:$0xff]  ;;  %v3120_v9 = vld [vmem:[%s5071_s14 + $0x28] sm:$0xff]  ;;  %v3602_v60 = vpack.c.bf16 %v3122_v38, %v3121_v15 }
 0x40c   :  { %v3599_v25 = vpack.c.bf16 %v3120_v9, %v3119_v54  ;;  %v2953_v37 = vld [vmem:[%s5070_s13] sm:$0x1] }
 0x40e   :  { %3420 = vmatpush3.bf16.msra.mxu0 %v5173_v22  ;;  %3442 = vmatpush3.bf16.msra.mxu1 %v5174_v48 }
 0x40f   :  { %3421 = vmatprep.subr.bf16.mxu0 %v5175_v58  ;;  %3443 = vmatprep.subr.bf16.mxu1 %v5176_v28 }
 0x412   :  { %3422 = vmatpush3.bf16.msra.mxu0 %v5177_v3  ;;  %3444 = vmatpush3.bf16.msra.mxu1 %v5178_v45 }
 0x413   :  { %3451 = vmatprep.subr.bf16.mxu0 %v5179_v61  ;;  %3473 = vmatprep.subr.bf16.mxu1 %v5180_v19 }
 0x415   :  { %2987 = vmatmul.mubr.bf16.vlgmr.msra.gmra.mrb[64].mxu0 %v2881_v21  ;;  %3027 = vmatmul.mubr.bf16.vlgmr.msra.gmra.mrb[72].mxu1 %v2883_v33 }
 0x416   :  { %3452 = vmatpush3.bf16.msra.mxu0 %v5181_v39  ;;  %3474 = vmatpush3.bf16.msra.mxu1 %v5182_v27 }
 0x417   :  { %3453 = vmatprep.subr.bf16.mxu0 %v5183_v51  ;;  %3475 = vmatprep.subr.bf16.mxu1 %v5184_v18 }
 0x418   :  { %3066 = vmatprep.mubr.bf16.mxu0 %v2886_v63  ;;  %3106 = vmatprep.mubr.bf16.mxu1 %v2888_v4 }
 0x41a   :  { %3454 = vmatpush3.bf16.msra.mxu0 %v5185_v42  ;;  %3476 = vmatpush3.bf16.msra.mxu1 %v5186_v23  ;;  %v3115_v23 = vld [vmem:[%s5071_s14] sm:$0xff] }
 0x41b   :  { %3455 = vmatprep.subr.bf16.mxu0 %v5187_v1  ;;  %3477 = vmatprep.subr.bf16.mxu1 %v5188_v56  ;;  %v3116_v1 = vld [vmem:[%s5071_s14 + $0x8] sm:$0xff] }
 0x41e   :  { %3456 = vmatpush3.bf16.msra.mxu0 %v5189_v59  ;;  %3478 = vmatpush3.bf16.msra.mxu1 %v5190_v44  ;;  %v3605_v59 = vpack.c.bf16 %v3116_v1, %v3115_v23 }
 0x41f   :  { %3457 = vmatprep.subr.bf16.mxu0 %v5191_v17  ;;  %3479 = vmatprep.subr.bf16.mxu1 %v5192_v20 }
 0x422   :  { %3458 = vmatpush3.bf16.msra.mxu0 %v5193_v29  ;;  %3480 = vmatpush3.bf16.msra.mxu1 %v5194_v49  ;;  %v3271_v49 = vld [vmem:[%s5072_s15] sm:$0x1] }
 0x423   :  { %3459 = vmatprep.subr.bf16.mxu0 %v5195_v12  ;;  %3481 = vmatprep.subr.bf16.mxu1 %v5196_v53 }
 0x426   :  { %3460 = vmatpush3.bf16.msra.mxu0 %v5197_v30  ;;  %3482 = vmatpush3.bf16.msra.mxu1 %v5198_v41 }
 0x427   :  { %3461 = vmatprep.subr.bf16.mxu0 %v5199_v6  ;;  %3483 = vmatprep.subr.bf16.mxu1 %v5200_v34 }
 0x42a   :  { %3462 = vmatpush3.bf16.msra.mxu0 %v5201_v46  ;;  %3484 = vmatpush3.bf16.msra.mxu1 %v5202_v36 }
 0x42b   :  { %3463 = vmatprep.subr.bf16.mxu0 %v5203_v26  ;;  %3485 = vmatprep.subr.bf16.mxu1 %v5204_v43 }
 0x42e   :  { %3464 = vmatpush3.bf16.msra.mxu0 %v5205_v35  ;;  %3486 = vmatpush3.bf16.msra.mxu1 %v5206_v55 }
 0x42f   :  { %3465 = vmatprep.subr.bf16.mxu0 %v5207_v5  ;;  %3487 = vmatprep.subr.bf16.mxu1 %v5208_v7 }
 0x432   :  { %3466 = vmatpush3.bf16.msra.mxu0 %v5209_v14  ;;  %3488 = vmatpush3.bf16.msra.mxu1 %v5210_v62 }
 0x433   :  { %3595 = vmatprep.subr.bf16.mxu0 %v5211_v0 }
 0x435   :  { %3067 = vmatmul.mubr.bf16.vlgmr.msra.gmra.mrb[68].mxu0 %v2885_v8  ;;  %3107 = vmatmul.mubr.bf16.vlgmr.msra.gmra.mrb[76].mxu1 %v2887_v24 }
 0x436   :  { %3541 = vmatprep.mubr.msk.f32.mxu0 %vm3708_vm1, %v5212_v16  ;;  %3597 = vmatpush3.bf16.msra.mxu0 %v3596_v32 }
 0x437   :  { %3598 = vmatprep.subr.bf16.mxu0 %v5211_v0 }
 0x43a   :  { %3600 = vmatpush3.bf16.msra.mxu0 %v3599_v25 }
 0x43b   :  { %3601 = vmatprep.subr.bf16.mxu0 %v5211_v0 }
 0x43e   :  { %3603 = vmatpush3.bf16.msra.mxu0 %v3602_v60 }
 0x43f   :  { %3604 = vmatprep.subr.bf16.mxu0 %v5211_v0 }
 0x4e8   :  { %v3423_v47 = vpop.f32.mrb[64].mxu0  ;;  %v3445_v31 = vpop.f32.mrb[72].mxu1 }
 0x4e9   :  { %v3424_v40 = vpop.f32.mrb[65].mxu0  ;;  %v3446_v13 = vpop.f32.mrb[73].mxu1 }
 0x4ea   :  { %v3425_v11 = vadd.f32 %v3424_v40, %v3423_v47  ;;  %v3447_v52 = vadd.f32 %v3446_v13, %v3445_v31  ;;  %v3426_v22 = vpop.f32.mrb[66].mxu0  ;;  %v3448_v48 = vpop.f32.mrb[74].mxu1 }
 0x4eb   :  { %v3427_v58 = vpop.f32.mrb[67].mxu0  ;;  %v3449_v28 = vpop.f32.mrb[75].mxu1 }
 0x4ec   :  { %v2989_v21 = vadd.f32 %v3425_v11, %v2953_v37 }
 0x4ee   :  { %v3029_v33 = vadd.f32 %v3447_v52, %v2989_v21 }
 0x508   :  { %v3467_v3 = vpop.f32.mrb[68].mxu0  ;;  %v3489_v45 = vpop.f32.mrb[76].mxu1 }
 0x509   :  { %v3468_v61 = vpop.f32.mrb[69].mxu0  ;;  %v3490_v19 = vpop.f32.mrb[77].mxu1 }
 0x50a   :  { %v3469_v63 = vadd.f32 %v3468_v61, %v3467_v3  ;;  %v3491_v4 = vadd.f32 %v3490_v19, %v3489_v45  ;;  %v3470_v39 = vpop.f32.mrb[70].mxu0  ;;  %v3492_v27 = vpop.f32.mrb[78].mxu1 }
 0x50b   :  { %v3471_v51 = vpop.f32.mrb[71].mxu0  ;;  %v3493_v18 = vpop.f32.mrb[79].mxu1 }
 0x50c   :  { %v3069_v42 = vadd.f32 %v3469_v63, %v3029_v33 }
 0x50e   :  { %v3109_v56 = vadd.f32 %v3491_v4, %v3069_v42 }
 0x510   :  { %v3114_v44 = vmax.f32 %v3109_v56, 0.0 }
 0x512   :  { %3542 = vmatmul.mubr.msk.f32.vlgmr.msra.gmra.mrb[72].mxu0 %vm3123_vm13, %v3114_v44 }
 0x513   :  { %3606 = vmatpush3.bf16.msra.mxu0 %v3605_v59  ;;  %3548 = vmatprep.mubr.msk.f32.mxu0 %vm3708_vm1, %v5212_v16 }
 0x516   :  { %3549 = vmatmul.mubr.msk.f32.vlgmr.msra.gmra.mrb[74].mxu0 %vm3197_vm14, %v4664_v57 }
 0x5e5   :  { %v3193_v17 = vpop.f32.mrb[72].mxu0 }
 0x5e6   :  { %v3543_v20 = vpop.f32.mrb[73].mxu0 }
 0x5e9   :  { %v3267_v29 = vpop.f32.mrb[74].mxu0 }
 0x5ea   :  { %v3268_v12 = vadd.f32 %v3267_v29, %v3193_v17  ;;  %v3550_v53 = vpop.f32.mrb[75].mxu0 }
 0x5ec   :  { %v3272_v30 = vadd.f32 %v3271_v49, %v3268_v12 }
 0x5ee   :  { %v3358_v41 = vmul.f32 -1.442695, %v3272_v30  ;;  %v3273_v6 = vand.u32 2147483647, %v3272_v30 }
 0x5f0   :  { %3685 = vpow2.f32 %v3358_v41  ;;  %v3274_v34 = vadd.f32 1.0, %v3273_v6 }
 0x5f2   :  { %3687 = vrcp.f32 %v3274_v34 }
 0x5fa   :  { %v3686_v46 = vpop.eup %3685 }
 0x5fb   :  { %v3280_v36 = vadd.f32 1.0, %v3686_v46 }
 0x5fc   :  { %v3688_v26 = vpop.eup %3687 }
 0x5fd   :  { %3689 = vrcp.f32 %v3280_v36  ;;  %v3276_v43 = vmul.f32 %v3688_v26, %v3272_v30 }
 0x607   :  { %v3690_v57 = vpop.eup %3689 }
 0x608   :  { %v3283_v35 = vmul.f32 0.6, %v3690_v57 }
 0x60a   :  { %v3285_v55 = vsel %vm3284_vm15, %v3276_v43, %v3283_v35 }
 0x60b   :  { %3287 = vst.msk [vmem:[%s5073_s16] sm:$0x1] %vm3286_vm0, %v3285_v55 }
 0x60c   :  { %3292 = vsyncmov [#allocation4] }
 0x60f   :  { %s3293_s4 = vpop.sfrf %3292 }
 0x610   :  { %p3359_p0 = scmp.ne.s32.totalorder %s3293_s4, 0 }
 0x612   :  { %3297 = shalt.err (%p3359_p0)  }
 0x613   :  { %3299 = vsyncmov [#allocation4 + $0x1] }
 0x616   :  { %s3300_s0 = vpop.sfrf %3299 }
 0x617   :  { %p3360_p1 = scmp.ne.s32.totalorder %s3300_s0, 0 }
 0x619   :  { %3304 = shalt.err (%p3360_p1)  }

</bundles_post_ra>
